<compile_context>
chip_gen: v7x
topology: tpu7x:2x2x1
jax: 0.10.0
libtpu: 0.0.40
codegen_flags: <defaults>
</compile_context>

<pallas_src>
import functools

import jax
import jax.numpy as jnp
from jax.experimental import pallas as pl
from jax.experimental.pallas import tpu as pltpu

_LANE = 128


def _round_up(x, m):
    return (x + m - 1) // m * m


def _vmem_capacity_bytes():
    """Per-generation VMEM capacity (v5e/v6e: 128 MiB, v7x: 64 MiB)."""
    try:
        return int(pltpu.get_tpu_info().vmem_capacity_bytes)
    except Exception:
        return 64 * 1024 * 1024  # conservative fallback


def _conv_stats_kernel(x_ref, w_ref, out_ref, stats_ref,
                       acc_ref, xpad_ref, col_ref, *, H, W, d, ci_blk):
    """Pass 1: dilated 3x3 conv (im2col-fused per kh) + per-channel partial BN stats.

    x_ref:    (1, H, W, ci_blk)        unpadded NHWC input block (compute dtype)
    w_ref:    (3, 3*Cin_p, co_blk)     fused weights; per-kh K layout is
                                       [ci-block][kw][ci-within-block]
    out_ref:  (1, H, W, co_blk)        conv output block (bf16 or f32)
    stats_ref:(1, 2, co_blk)           [sum, sum of squares] over this image's pixels
    acc_ref:  (H*W, co_blk) f32        accumulator, resident across Cin blocks
    xpad_ref: (H+2d, W+2d, ci_blk)     zero-halo slab built in VMEM
    col_ref:  (H*W, 3*ci_blk)          im2col scratch for one kernel row
    """
    ci = pl.program_id(2)
    n_ci = pl.num_programs(2)
    Hp, Wp, _ = xpad_ref.shape
    co_blk = out_ref.shape[-1]
    cdt = xpad_ref.dtype

    @pl.when(ci == 0)
    def _init():
        acc_ref[...] = jnp.zeros_like(acc_ref)
        # Zero only the halo border strips once per (co, n); the center region is
        # overwritten every ci step below, so the border stays zero thereafter.
        if d > 0:
            zrow = jnp.zeros((d, Wp, ci_blk), cdt)
            xpad_ref[0:d, :, :] = zrow
            xpad_ref[Hp - d:Hp, :, :] = zrow
            zcol = jnp.zeros((H, d, ci_blk), cdt)
            xpad_ref[d:d + H, 0:d, :] = zcol
            xpad_ref[d:d + H, Wp - d:Wp, :] = zcol

    # Place the current Cin block in the slab center (VMEM->VMEM; no HBM halo).
    xpad_ref[d:d + H, d:d + W, :] = x_ref[0]

    # Offset of this Cin block inside the fused-K weight layout.
    k0 = pl.multiple_of(ci * (3 * ci_blk), 128)

    acc = acc_ref[...]
    for kh in range(3):
        # im2col: pack the 3 kw-shifted windows side by side along lanes.
        for kw in range(3):
            col_ref[:, kw * ci_blk:(kw + 1) * ci_blk] = (
                xpad_ref[kh * d:kh * d + H, kw * d:kw * d + W, :]
                .reshape(H * W, ci_blk))
        wk = w_ref[kh, pl.ds(k0, 3 * ci_blk), :]          # (3*ci_blk, co_blk)
        acc = acc + jax.lax.dot_general(                  # MXU, K = 3*ci_blk, f32 acc
            col_ref[...], wk, (((1,), (0,)), ((), ())),
            preferred_element_type=jnp.float32)
    acc_ref[...] = acc

    @pl.when(ci == n_ci - 1)
    def _finalize():
        out_ref[...] = acc.reshape(1, H, W, co_blk).astype(out_ref.dtype)
        # BN statistics from the f32 accumulator (not the downcast output).
        s = jnp.sum(acc, axis=0, keepdims=True)           # (1, co_blk)
        ss = jnp.sum(acc * acc, axis=0, keepdims=True)    # (1, co_blk)
        stats_ref[...] = jnp.concatenate([s, ss], axis=0)[None]


def _bn_relu_kernel(y_ref, scale_ref, shift_ref, o_ref):
    """Pass 2: y * scale + shift, then ReLU (per output-channel affine)."""
    y = y_ref[...].astype(jnp.float32)
    o_ref[...] = jnp.maximum(y * scale_ref[...] + shift_ref[...], 0.0).astype(o_ref.dtype)


def aspp_conv_forward(x_nchw, w_oihw, gamma, beta, dilation, *,
                      compute_dtype=jnp.bfloat16, eps=1e-5):
    """Pallas ASPPConv forward. x_nchw: (N, Cin, H, W) f32 -> (N, Cout, H, W) f32."""
    N, Cin, H, W = x_nchw.shape
    Cout = w_oihw.shape[0]
    d = int(dilation)
    Hp, Wp = H + 2 * d, W + 2 * d

    Cin_p = _round_up(Cin, _LANE)
    Cout_p = _round_up(Cout, _LANE)

    cdt = jnp.dtype(compute_dtype)
    # bf16 conv intermediate on the bf16 path (halves pass-1 writeback + pass-2 read).
    conv_dtype = jnp.float32 if cdt == jnp.float32 else jnp.bfloat16
    c_bytes = cdt.itemsize
    o_bytes = jnp.dtype(conv_dtype).itemsize

    vmem_cap = _vmem_capacity_bytes()
    budget = int(vmem_cap * 0.6)                  # block budget (headroom for temporaries)
    vmem_limit = int(vmem_cap * 9 // 10)

    # --- block selection: biggest co_blk first (input is re-streamed n_co times),
    # then biggest ci_blk (fewer reduction steps / larger K), within the budget. ---
    def est(ci_b, co_b):
        return (2 * H * W * ci_b * c_bytes            # input block, double-buffered
                + 2 * 9 * Cin_p * co_b * c_bytes      # resident weight block, double-buffered
                + 2 * H * W * co_b * o_bytes          # output block, double-buffered
                + Hp * Wp * ci_b * c_bytes            # padded slab scratch
                + H * W * 3 * ci_b * c_bytes          # im2col scratch
                + 2 * H * W * co_b * 4)               # acc scratch + value-chain temporaries

    co_cands = [c for c in (512, 384, 256, 128) if c <= Cout_p and Cout_p % c == 0]
    ci_cands = [c for c in (512, 384, 256, 128) if c <= Cin_p and Cin_p % c == 0]
    ci_blk, co_blk = ci_cands[-1], co_cands[-1]
    picked = False
    for cb in co_cands:
        for ib in ci_cands:
            if est(ib, cb) <= budget:
                ci_blk, co_blk = ib, cb
                picked = True
                break
        if picked:
            break
    n_ci = Cin_p // ci_blk
    n_co = Cout_p // co_blk

    # --- layout glue (plain JAX; channel pad only, NO spatial halo pad) ---
    x_nhwc = jnp.transpose(x_nchw, (0, 2, 3, 1)).astype(compute_dtype)
    x_nhwc = jnp.pad(x_nhwc, ((0, 0), (0, 0), (0, 0), (0, Cin_p - Cin)))
    w_hwio = jnp.transpose(w_oihw, (2, 3, 1, 0)).astype(compute_dtype)   # OIHW -> HWIO
    w_hwio = jnp.pad(w_hwio, ((0, 0), (0, 0), (0, Cin_p - Cin), (0, Cout_p - Cout)))
    # Fused per-kh K layout: [ci-block][kw][ci-within-block] so one contiguous
    # (3*ci_blk, co_blk) slice per (kh, ci) inside the kernel.
    w_fused = jnp.transpose(w_hwio.reshape(3, 3, n_ci, ci_blk, Cout_p),
                            (0, 2, 1, 3, 4)).reshape(3, 3 * Cin_p, Cout_p)

    cost = pl.CostEstimate(
        flops=2 * N * H * W * 9 * Cin_p * Cout_p,
        transcendentals=0,
        bytes_accessed=(n_co * N * H * W * Cin_p * c_bytes   # input, once per co block
                        + 9 * Cin_p * Cout_p * c_bytes        # weights, once total
                        + N * H * W * Cout_p * o_bytes        # conv intermediate write
                        + N * 2 * Cout_p * 4),
    )

    kernel1 = functools.partial(_conv_stats_kernel, H=H, W=W, d=d, ci_blk=ci_blk)
    conv_out, stats = pl.pallas_call(
        kernel1,
        out_shape=(jax.ShapeDtypeStruct((N, H, W, Cout_p), conv_dtype),
                   jax.ShapeDtypeStruct((N, 2, Cout_p), jnp.float32)),
        grid_spec=pltpu.PrefetchScalarGridSpec(
            num_scalar_prefetch=0,
            grid=(n_co, N, n_ci),                 # co outermost -> weights resident per co
            in_specs=[
                pl.BlockSpec((1, H, W, ci_blk), lambda co, n, ci: (n, 0, 0, ci)),
                pl.BlockSpec((3, 3 * Cin_p, co_blk), lambda co, n, ci: (0, 0, co)),
            ],
            out_specs=(
                pl.BlockSpec((1, H, W, co_blk), lambda co, n, ci: (n, 0, 0, co)),
                pl.BlockSpec((1, 2, co_blk), lambda co, n, ci: (n, 0, co)),
            ),
            scratch_shapes=[
                pltpu.VMEM((H * W, co_blk), jnp.float32),        # accumulator
                pltpu.VMEM((Hp, Wp, ci_blk), compute_dtype),     # zero-halo slab
                pltpu.VMEM((H * W, 3 * ci_blk), compute_dtype),  # im2col (per kh)
            ],
        ),
        compiler_params=pltpu.CompilerParams(
            dimension_semantics=("parallel", "parallel", "arbitrary"),
            vmem_limit_bytes=vmem_limit,
        ),
        cost_estimate=cost,
    )(x_nhwc, w_fused)

    # --- finalize whole-batch BN statistics (tiny, plain JAX) ---
    # NOTE: E[x^2]-E[x]^2 in f32; fine for post-conv activations, differs slightly
    # from a two-pass/Welford formulation when |mean| >> std.
    count = N * H * W
    mean = jnp.sum(stats[:, 0, :], axis=0) / count
    var = jnp.maximum(jnp.sum(stats[:, 1, :], axis=0) / count - mean * mean, 0.0)  # biased
    inv = jax.lax.rsqrt(var + eps)
    gamma_p = jnp.pad(gamma.astype(jnp.float32), (0, Cout_p - Cout))
    beta_p = jnp.pad(beta.astype(jnp.float32), (0, Cout_p - Cout))
    scale = (gamma_p * inv).reshape(1, 1, 1, Cout_p)
    shift = (beta_p - mean * gamma_p * inv).reshape(1, 1, 1, Cout_p)

    # --- pass 2: affine + ReLU, large contiguous lane-dense blocks ---
    co2 = _LANE
    for cand in (Cout_p, 512, 384, 256, 128):
        if cand <= Cout_p and Cout_p % cand == 0 and 2 * H * W * cand * (o_bytes + 4) <= budget:
            co2 = cand
            break
    n_co2 = Cout_p // co2
    # Alias the conv intermediate as the output when dtypes match (f32 path) to
    # avoid allocating a second N*H*W*Cout_p HBM buffer.
    alias = {0: 0} if jnp.dtype(conv_dtype) == jnp.dtype(jnp.float32) else {}

    out_nhwc = pl.pallas_call(
        _bn_relu_kernel,
        out_shape=jax.ShapeDtypeStruct((N, H, W, Cout_p), jnp.float32),
        grid_spec=pltpu.PrefetchScalarGridSpec(
            num_scalar_prefetch=0,
            grid=(N, n_co2),
            in_specs=[
                pl.BlockSpec((1, H, W, co2), lambda n, co: (n, 0, 0, co)),
                pl.BlockSpec((1, 1, 1, co2), lambda n, co: (0, 0, 0, co)),
                pl.BlockSpec((1, 1, 1, co2), lambda n, co: (0, 0, 0, co)),
            ],
            out_specs=pl.BlockSpec((1, H, W, co2), lambda n, co: (n, 0, 0, co)),
        ),
        compiler_params=pltpu.CompilerParams(
            dimension_semantics=("parallel", "parallel"),
            vmem_limit_bytes=vmem_limit,
        ),
        input_output_aliases=alias,
    )(conv_out, scale, shift)

    # Drop the channel padding, back to NCHW.
    return jnp.transpose(out_nhwc[..., :Cout], (0, 3, 1, 2))


def aspp_conv_reference(x_nchw, w_oihw, gamma, beta, dilation):
    """Pure-JAX reference matching PyTorch ASPPConv.forward (train-mode BN)."""
    d = int(dilation)
    y = jax.lax.conv_general_dilated(
        x_nchw, w_oihw,
        window_strides=(1, 1),
        padding=((d, d), (d, d)),
        rhs_dilation=(d, d),
        dimension_numbers=("NCHW", "OIHW", "NCHW"),
    )
    mean = jnp.mean(y, axis=(0, 2, 3), keepdims=True)
    var = jnp.var(y, axis=(0, 2, 3), keepdims=True)  # biased, like BN
    yn = (y - mean) * jax.lax.rsqrt(var + 1e-5)
    yn = yn * gamma[None, :, None, None] + beta[None, :, None, None]
    return jnp.maximum(yn, 0.0)


if __name__ == "__main__":
    # Small deterministic example: N=2, Cin=4, H=W=16, Cout=8, dilation=2.
    N, Cin, H, W = 2, 4, 16, 16
    Cout, dilation = 8, 2

    key = jax.random.PRNGKey(0)
    kx, kw = jax.random.split(key)
    x = jax.random.normal(kx, (N, Cin, H, W), dtype=jnp.float32)
    w = jax.random.normal(kw, (Cout, Cin, 3, 3), dtype=jnp.float32) * 0.1
    gamma = jnp.ones((Cout,), jnp.float32)   # nn.BatchNorm2d default weight
    beta = jnp.zeros((Cout,), jnp.float32)   # nn.BatchNorm2d default bias

    ref = aspp_conv_reference(x, w, gamma, beta, dilation)

    fwd_f32 = jax.jit(functools.partial(aspp_conv_forward, dilation=dilation,
                                        compute_dtype=jnp.float32))
    fwd_bf16 = jax.jit(functools.partial(aspp_conv_forward, dilation=dilation,
                                         compute_dtype=jnp.bfloat16))

    # f32 MXU path: tight tolerance validates the tiled kernel structure.
    out_f32 = jax.block_until_ready(fwd_f32(x, w, gamma, beta))
    assert out_f32.shape == (N, Cout, H, W)
    assert jnp.allclose(out_f32, ref, rtol=1e-4, atol=1e-4), \
        float(jnp.max(jnp.abs(out_f32 - ref)))

    # bf16 MXU path (default / fast): looser tolerance for bf16 operand rounding.
    out_bf16 = jax.block_until_ready(fwd_bf16(x, w, gamma, beta))
    assert out_bf16.shape == (N, Cout, H, W)
    assert jnp.allclose(out_bf16, ref, rtol=5e-2, atol=5e-2), \
        float(jnp.max(jnp.abs(out_bf16 - ref)))

    print("KERNEL_OK")
</pallas_src>

<mosaic_0001>
module attributes {stable_mosaic.version = 11 : i64} {
  func.func @_conv_stats_kernel(%arg0: i32, %arg1: i32, %arg2: i32, %arg3: memref<1x16x16x128xf32, #tpu.memory_space<vmem>>, %arg4: memref<3x384x128xf32, #tpu.memory_space<vmem>>, %arg5: memref<1x16x16x128xf32, #tpu.memory_space<vmem>>, %arg6: memref<1x2x128xf32, #tpu.memory_space<vmem>>, %arg7: memref<256x128xf32, #tpu.memory_space<vmem>>, %arg8: memref<20x20x128xf32, #tpu.memory_space<vmem>>, %arg9: memref<256x384xf32, #tpu.memory_space<vmem>>) attributes {dimension_semantics = [#tpu.dimension_semantics<parallel>, #tpu.dimension_semantics<parallel>, #tpu.dimension_semantics<arbitrary>], iteration_bounds = array<i64: 1, 2, 1>, scalar_prefetch = 0 : i64, scratch_operands = 3 : i64, tpu.core_type = #tpu.core_type<tc>, window_params = [{transform_indices = @transform_0, window_bounds = array<i64: 1, 16, 16, 128>}, {transform_indices = @transform_1, window_bounds = array<i64: 3, 384, 128>}, {transform_indices = @transform_2, window_bounds = array<i64: 1, 16, 16, 128>}, {transform_indices = @transform_3, window_bounds = array<i64: 1, 2, 128>}]} {
    %c0_i32 = arith.constant 0 : i32
    %0 = arith.cmpi eq, %arg2, %c0_i32 : i32
    %1 = arith.extui %0 : i1 to i32
    %c0_i32_0 = arith.constant 0 : i32
    %2 = arith.cmpi ne, %1, %c0_i32_0 : i32
    scf.if %2 {
      %cst_67 = arith.constant 0.000000e+00 : f32
      %58 = vector.broadcast %cst_67 : f32 to vector<256x128xf32>
      %c0_68 = arith.constant 0 : index
      %c0_69 = arith.constant 0 : index
      %59 = vector.load %arg7[%c0_68, %c0_69] : memref<256x128xf32, #tpu.memory_space<vmem>>, vector<256x128xf32>
      tpu.vector_store %arg7[%c0_68, %c0_69], %58 {strides = array<i32>} : memref<256x128xf32, #tpu.memory_space<vmem>>, vector<256x128xf32>,
      %cst_70 = arith.constant 0.000000e+00 : f32
      %60 = vector.broadcast %cst_70 : f32 to vector<2x20x128xf32>
      %c0_71 = arith.constant 0 : index
      %c0_72 = arith.constant 0 : index
      %c0_73 = arith.constant 0 : index
      %61 = vector.load %arg8[%c0_71, %c0_72, %c0_73] : memref<20x20x128xf32, #tpu.memory_space<vmem>>, vector<2x20x128xf32>
      tpu.vector_store %arg8[%c0_71, %c0_72, %c0_73], %60 {strides = array<i32>} : memref<20x20x128xf32, #tpu.memory_space<vmem>>, vector<2x20x128xf32>,
      %c18 = arith.constant 18 : index
      %c0_74 = arith.constant 0 : index
      %c0_75 = arith.constant 0 : index
      %62 = vector.load %arg8[%c18, %c0_74, %c0_75] : memref<20x20x128xf32, #tpu.memory_space<vmem>>, vector<2x20x128xf32>
      tpu.vector_store %arg8[%c18, %c0_74, %c0_75], %60 {strides = array<i32>} : memref<20x20x128xf32, #tpu.memory_space<vmem>>, vector<2x20x128xf32>,
      %cst_76 = arith.constant 0.000000e+00 : f32
      %63 = vector.broadcast %cst_76 : f32 to vector<16x2x128xf32>
      %c2_77 = arith.constant 2 : index
      %c0_78 = arith.constant 0 : index
      %c0_79 = arith.constant 0 : index
      %64 = vector.load %arg8[%c2_77, %c0_78, %c0_79] : memref<20x20x128xf32, #tpu.memory_space<vmem>>, vector<16x2x128xf32>
      tpu.vector_store %arg8[%c2_77, %c0_78, %c0_79], %63 {strides = array<i32>} : memref<20x20x128xf32, #tpu.memory_space<vmem>>, vector<16x2x128xf32>,
      %c2_80 = arith.constant 2 : index
      %c18_81 = arith.constant 18 : index
      %c0_82 = arith.constant 0 : index
      %65 = vector.load %arg8[%c2_80, %c18_81, %c0_82] : memref<20x20x128xf32, #tpu.memory_space<vmem>>, vector<16x2x128xf32>
      tpu.vector_store %arg8[%c2_80, %c18_81, %c0_82], %63 {strides = array<i32>} : memref<20x20x128xf32, #tpu.memory_space<vmem>>, vector<16x2x128xf32>,
    } else {
    }
    %c0 = arith.constant 0 : index
    %c0_1 = arith.constant 0 : index
    %c0_2 = arith.constant 0 : index
    %c0_3 = arith.constant 0 : index
    %3 = vector.load %arg3[%c0, %c0_1, %c0_2, %c0_3] : memref<1x16x16x128xf32, #tpu.memory_space<vmem>>, vector<1x16x16x128xf32>
    %4 = vector.shape_cast %3 : vector<1x16x16x128xf32> to vector<16x16x128xf32>
    %c2 = arith.constant 2 : index
    %c2_4 = arith.constant 2 : index
    %c0_5 = arith.constant 0 : index
    %5 = vector.load %arg8[%c2, %c2_4, %c0_5] : memref<20x20x128xf32, #tpu.memory_space<vmem>>, vector<16x16x128xf32>
    tpu.vector_store %arg8[%c2, %c2_4, %c0_5], %4 {strides = array<i32>} : memref<20x20x128xf32, #tpu.memory_space<vmem>>, vector<16x16x128xf32>,
    %c384_i32 = arith.constant 384 : i32
    %6 = arith.muli %arg2, %c384_i32 : i32
    %7 = tpu.assume_multiple %6, 128 : i32
    %c0_6 = arith.constant 0 : index
    %c0_7 = arith.constant 0 : index
    %8 = vector.load %arg7[%c0_6, %c0_7] : memref<256x128xf32, #tpu.memory_space<vmem>>, vector<256x128xf32>
    %c0_8 = arith.constant 0 : index
    %c0_9 = arith.constant 0 : index
    %c0_10 = arith.constant 0 : index
    %9 = vector.load %arg8[%c0_8, %c0_9, %c0_10] : memref<20x20x128xf32, #tpu.memory_space<vmem>>, vector<16x16x128xf32>
    %10 = vector.shape_cast %9 : vector<16x16x128xf32> to vector<256x128xf32>
    %c0_11 = arith.constant 0 : index
    %c0_12 = arith.constant 0 : index
    %11 = vector.load %arg9[%c0_11, %c0_12] : memref<256x384xf32, #tpu.memory_space<vmem>>, vector<256x128xf32>
    tpu.vector_store %arg9[%c0_11, %c0_12], %10 {strides = array<i32>} : memref<256x384xf32, #tpu.memory_space<vmem>>, vector<256x128xf32>,
    %c0_13 = arith.constant 0 : index
    %c2_14 = arith.constant 2 : index
    %c0_15 = arith.constant 0 : index
    %12 = vector.load %arg8[%c0_13, %c2_14, %c0_15] : memref<20x20x128xf32, #tpu.memory_space<vmem>>, vector<16x16x128xf32>
    %13 = vector.shape_cast %12 : vector<16x16x128xf32> to vector<256x128xf32>
    %c0_16 = arith.constant 0 : index
    %c128 = arith.constant 128 : index
    %14 = vector.load %arg9[%c0_16, %c128] : memref<256x384xf32, #tpu.memory_space<vmem>>, vector<256x128xf32>
    tpu.vector_store %arg9[%c0_16, %c128], %13 {strides = array<i32>} : memref<256x384xf32, #tpu.memory_space<vmem>>, vector<256x128xf32>,
    %c0_17 = arith.constant 0 : index
    %c4 = arith.constant 4 : index
    %c0_18 = arith.constant 0 : index
    %15 = vector.load %arg8[%c0_17, %c4, %c0_18] : memref<20x20x128xf32, #tpu.memory_space<vmem>>, vector<16x16x128xf32>
    %16 = vector.shape_cast %15 : vector<16x16x128xf32> to vector<256x128xf32>
    %c0_19 = arith.constant 0 : index
    %c256 = arith.constant 256 : index
    %17 = vector.load %arg9[%c0_19, %c256] : memref<256x384xf32, #tpu.memory_space<vmem>>, vector<256x128xf32>
    tpu.vector_store %arg9[%c0_19, %c256], %16 {strides = array<i32>} : memref<256x384xf32, #tpu.memory_space<vmem>>, vector<256x128xf32>,
    %c0_20 = arith.constant 0 : index
    %18 = arith.index_cast %7 : i32 to index
    %c0_21 = arith.constant 0 : index
    %19 = vector.load %arg4[%c0_20, %18, %c0_21] : memref<3x384x128xf32, #tpu.memory_space<vmem>>, vector<1x384x128xf32>
    %20 = vector.shape_cast %19 : vector<1x384x128xf32> to vector<384x128xf32>
    %c0_22 = arith.constant 0 : index
    %c0_23 = arith.constant 0 : index
    %21 = vector.load %arg9[%c0_22, %c0_23] : memref<256x384xf32, #tpu.memory_space<vmem>>, vector<256x384xf32>
    %cst = arith.constant dense<0.000000e+00> : vector<256x128xf32>
    %22 = tpu.matmul %21, %20, %cst {dimension_numbers = #tpu.dot_dimension_numbers<[1], [0], [0], [1], [0, 0, 1, 1], [], []>} : vector<256x384xf32>, vector<384x128xf32>, vector<256x128xf32> -> vector<256x128xf32>
    %23 = arith.addf %8, %22 : vector<256x128xf32>
    %c2_24 = arith.constant 2 : index
    %c0_25 = arith.constant 0 : index
    %c0_26 = arith.constant 0 : index
    %24 = vector.load %arg8[%c2_24, %c0_25, %c0_26] : memref<20x20x128xf32, #tpu.memory_space<vmem>>, vector<16x16x128xf32>
    %25 = vector.shape_cast %24 : vector<16x16x128xf32> to vector<256x128xf32>
    %c0_27 = arith.constant 0 : index
    %c0_28 = arith.constant 0 : index
    %26 = vector.load %arg9[%c0_27, %c0_28] : memref<256x384xf32, #tpu.memory_space<vmem>>, vector<256x128xf32>
    tpu.vector_store %arg9[%c0_27, %c0_28], %25 {strides = array<i32>} : memref<256x384xf32, #tpu.memory_space<vmem>>, vector<256x128xf32>,
    %c2_29 = arith.constant 2 : index
    %c2_30 = arith.constant 2 : index
    %c0_31 = arith.constant 0 : index
    %27 = vector.load %arg8[%c2_29, %c2_30, %c0_31] : memref<20x20x128xf32, #tpu.memory_space<vmem>>, vector<16x16x128xf32>
    %28 = vector.shape_cast %27 : vector<16x16x128xf32> to vector<256x128xf32>
    %c0_32 = arith.constant 0 : index
    %c128_33 = arith.constant 128 : index
    %29 = vector.load %arg9[%c0_32, %c128_33] : memref<256x384xf32, #tpu.memory_space<vmem>>, vector<256x128xf32>
    tpu.vector_store %arg9[%c0_32, %c128_33], %28 {strides = array<i32>} : memref<256x384xf32, #tpu.memory_space<vmem>>, vector<256x128xf32>,
    %c2_34 = arith.constant 2 : index
    %c4_35 = arith.constant 4 : index
    %c0_36 = arith.constant 0 : index
    %30 = vector.load %arg8[%c2_34, %c4_35, %c0_36] : memref<20x20x128xf32, #tpu.memory_space<vmem>>, vector<16x16x128xf32>
    %31 = vector.shape_cast %30 : vector<16x16x128xf32> to vector<256x128xf32>
    %c0_37 = arith.constant 0 : index
    %c256_38 = arith.constant 256 : index
    %32 = vector.load %arg9[%c0_37, %c256_38] : memref<256x384xf32, #tpu.memory_space<vmem>>, vector<256x128xf32>
    tpu.vector_store %arg9[%c0_37, %c256_38], %31 {strides = array<i32>} : memref<256x384xf32, #tpu.memory_space<vmem>>, vector<256x128xf32>,
    %c1 = arith.constant 1 : index
    %33 = arith.index_cast %7 : i32 to index
    %c0_39 = arith.constant 0 : index
    %34 = vector.load %arg4[%c1, %33, %c0_39] : memref<3x384x128xf32, #tpu.memory_space<vmem>>, vector<1x384x128xf32>
    %35 = vector.shape_cast %34 : vector<1x384x128xf32> to vector<384x128xf32>
    %c0_40 = arith.constant 0 : index
    %c0_41 = arith.constant 0 : index
    %36 = vector.load %arg9[%c0_40, %c0_41] : memref<256x384xf32, #tpu.memory_space<vmem>>, vector<256x384xf32>
    %cst_42 = arith.constant dense<0.000000e+00> : vector<256x128xf32>
    %37 = tpu.matmul %36, %35, %cst_42 {dimension_numbers = #tpu.dot_dimension_numbers<[1], [0], [0], [1], [0, 0, 1, 1], [], []>} : vector<256x384xf32>, vector<384x128xf32>, vector<256x128xf32> -> vector<256x128xf32>
    %38 = arith.addf %23, %37 : vector<256x128xf32>
    %c4_43 = arith.constant 4 : index
    %c0_44 = arith.constant 0 : index
    %c0_45 = arith.constant 0 : index
    %39 = vector.load %arg8[%c4_43, %c0_44, %c0_45] : memref<20x20x128xf32, #tpu.memory_space<vmem>>, vector<16x16x128xf32>
    %40 = vector.shape_cast %39 : vector<16x16x128xf32> to vector<256x128xf32>
    %c0_46 = arith.constant 0 : index
    %c0_47 = arith.constant 0 : index
    %41 = vector.load %arg9[%c0_46, %c0_47] : memref<256x384xf32, #tpu.memory_space<vmem>>, vector<256x128xf32>
    tpu.vector_store %arg9[%c0_46, %c0_47], %40 {strides = array<i32>} : memref<256x384xf32, #tpu.memory_space<vmem>>, vector<256x128xf32>,
    %c4_48 = arith.constant 4 : index
    %c2_49 = arith.constant 2 : index
    %c0_50 = arith.constant 0 : index
    %42 = vector.load %arg8[%c4_48, %c2_49, %c0_50] : memref<20x20x128xf32, #tpu.memory_space<vmem>>, vector<16x16x128xf32>
    %43 = vector.shape_cast %42 : vector<16x16x128xf32> to vector<256x128xf32>
    %c0_51 = arith.constant 0 : index
    %c128_52 = arith.constant 128 : index
    %44 = vector.load %arg9[%c0_51, %c128_52] : memref<256x384xf32, #tpu.memory_space<vmem>>, vector<256x128xf32>
    tpu.vector_store %arg9[%c0_51, %c128_52], %43 {strides = array<i32>} : memref<256x384xf32, #tpu.memory_space<vmem>>, vector<256x128xf32>,
    %c4_53 = arith.constant 4 : index
    %c4_54 = arith.constant 4 : index
    %c0_55 = arith.constant 0 : index
    %45 = vector.load %arg8[%c4_53, %c4_54, %c0_55] : memref<20x20x128xf32, #tpu.memory_space<vmem>>, vector<16x16x128xf32>
    %46 = vector.shape_cast %45 : vector<16x16x128xf32> to vector<256x128xf32>
    %c0_56 = arith.constant 0 : index
    %c256_57 = arith.constant 256 : index
    %47 = vector.load %arg9[%c0_56, %c256_57] : memref<256x384xf32, #tpu.memory_space<vmem>>, vector<256x128xf32>
    tpu.vector_store %arg9[%c0_56, %c256_57], %46 {strides = array<i32>} : memref<256x384xf32, #tpu.memory_space<vmem>>, vector<256x128xf32>,
    %c2_58 = arith.constant 2 : index
    %48 = arith.index_cast %7 : i32 to index
    %c0_59 = arith.constant 0 : index
    %49 = vector.load %arg4[%c2_58, %48, %c0_59] : memref<3x384x128xf32, #tpu.memory_space<vmem>>, vector<1x384x128xf32>
    %50 = vector.shape_cast %49 : vector<1x384x128xf32> to vector<384x128xf32>
    %c0_60 = arith.constant 0 : index
    %c0_61 = arith.constant 0 : index
    %51 = vector.load %arg9[%c0_60, %c0_61] : memref<256x384xf32, #tpu.memory_space<vmem>>, vector<256x384xf32>
    %cst_62 = arith.constant dense<0.000000e+00> : vector<256x128xf32>
    %52 = tpu.matmul %51, %50, %cst_62 {dimension_numbers = #tpu.dot_dimension_numbers<[1], [0], [0], [1], [0, 0, 1, 1], [], []>} : vector<256x384xf32>, vector<384x128xf32>, vector<256x128xf32> -> vector<256x128xf32>
    %53 = arith.addf %38, %52 : vector<256x128xf32>
    %c0_63 = arith.constant 0 : index
    %c0_64 = arith.constant 0 : index
    %54 = vector.load %arg7[%c0_63, %c0_64] : memref<256x128xf32, #tpu.memory_space<vmem>>, vector<256x128xf32>
    tpu.vector_store %arg7[%c0_63, %c0_64], %53 {strides = array<i32>} : memref<256x128xf32, #tpu.memory_space<vmem>>, vector<256x128xf32>,
    %c0_i32_65 = arith.constant 0 : i32
    %55 = arith.cmpi eq, %arg2, %c0_i32_65 : i32
    %56 = arith.extui %55 : i1 to i32
    %c0_i32_66 = arith.constant 0 : i32
    %57 = arith.cmpi ne, %56, %c0_i32_66 : i32
    scf.if %57 {
      %58 = vector.shape_cast %53 : vector<256x128xf32> to vector<1x16x16x128xf32>
      %c0_67 = arith.constant 0 : index
      %c0_68 = arith.constant 0 : index
      %c0_69 = arith.constant 0 : index
      %c0_70 = arith.constant 0 : index
      %59 = vector.load %arg5[%c0_67, %c0_68, %c0_69, %c0_70] : memref<1x16x16x128xf32, #tpu.memory_space<vmem>>, vector<1x16x16x128xf32>
      tpu.vector_store %arg5[%c0_67, %c0_68, %c0_69, %c0_70], %58 {strides = array<i32>} : memref<1x16x16x128xf32, #tpu.memory_space<vmem>>, vector<1x16x16x128xf32>,
      %cst_71 = arith.constant dense<0.000000e+00> : vector<128xf32>
      %60 = vector.multi_reduction <add>, %53, %cst_71 [0] : vector<256x128xf32> to vector<128xf32>
      %61 = vector.shape_cast %60 : vector<128xf32> to vector<1x128xf32>
      %62 = arith.mulf %53, %53 : vector<256x128xf32>
      %cst_72 = arith.constant dense<0.000000e+00> : vector<128xf32>
      %63 = vector.multi_reduction <add>, %62, %cst_72 [0] : vector<256x128xf32> to vector<128xf32>
      %64 = vector.shape_cast %63 : vector<128xf32> to vector<1x128xf32>
      %65 = tpu.concatenate %61, %64 in 0 : vector<1x128xf32>, vector<1x128xf32> -> vector<2x128xf32>
      %66 = vector.shape_cast %65 : vector<2x128xf32> to vector<1x2x128xf32>
      %c0_73 = arith.constant 0 : index
      %c0_74 = arith.constant 0 : index
      %c0_75 = arith.constant 0 : index
      %67 = vector.load %arg6[%c0_73, %c0_74, %c0_75] : memref<1x2x128xf32, #tpu.memory_space<vmem>>, vector<1x2x128xf32>
      tpu.vector_store %arg6[%c0_73, %c0_74, %c0_75], %66 {strides = array<i32>} : memref<1x2x128xf32, #tpu.memory_space<vmem>>, vector<1x2x128xf32>,
    } else {
    }
    return
  }
  func.func @transform_0(%arg0: i32, %arg1: i32, %arg2: i32) -> (i32, i32, i32, i32) {
    %c0_i32 = arith.constant 0 : i32
    %c0_i32_0 = arith.constant 0 : i32
    %c0_i32_1 = arith.constant 0 : i32
    return %arg1, %c0_i32, %c0_i32_0, %arg2 : i32, i32, i32, i32
  }
  func.func @transform_1(%arg0: i32, %arg1: i32, %arg2: i32) -> (i32, i32, i32) {
    %c0_i32 = arith.constant 0 : i32
    %c0_i32_0 = arith.constant 0 : i32
    %c0_i32_1 = arith.constant 0 : i32
    return %c0_i32, %c0_i32_0, %arg0 : i32, i32, i32
  }
  func.func @transform_2(%arg0: i32, %arg1: i32, %arg2: i32) -> (i32, i32, i32, i32) {
    %c0_i32 = arith.constant 0 : i32
    %c0_i32_0 = arith.constant 0 : i32
    %c0_i32_1 = arith.constant 0 : i32
    return %arg1, %c0_i32, %c0_i32_0, %arg0 : i32, i32, i32, i32
  }
  func.func @transform_3(%arg0: i32, %arg1: i32, %arg2: i32) -> (i32, i32, i32) {
    %c0_i32 = arith.constant 0 : i32
    %c0_i32_0 = arith.constant 0 : i32
    return %arg1, %c0_i32, %arg0 : i32, i32, i32
  }
}

module attributes {stable_mosaic.version = 11 : i64} {
  func.func @_bn_relu_kernel(%arg0: i32, %arg1: i32, %arg2: memref<1x16x16x128xf32, #tpu.memory_space<vmem>>, %arg3: memref<1x1x1x128xf32, #tpu.memory_space<vmem>>, %arg4: memref<1x1x1x128xf32, #tpu.memory_space<vmem>>, %arg5: memref<1x16x16x128xf32, #tpu.memory_space<vmem>>) attributes {dimension_semantics = [#tpu.dimension_semantics<parallel>, #tpu.dimension_semantics<parallel>], iteration_bounds = array<i64: 2, 1>, scalar_prefetch = 0 : i64, scratch_operands = 0 : i64, tpu.core_type = #tpu.core_type<tc>, window_params = [{transform_indices = @transform_0, window_bounds = array<i64: 1, 16, 16, 128>}, {transform_indices = @transform_1, window_bounds = array<i64: 1, 1, 1, 128>}, {transform_indices = @transform_2, window_bounds = array<i64: 1, 1, 1, 128>}, {transform_indices = @transform_3, window_bounds = array<i64: 1, 16, 16, 128>}]} {
    %c0 = arith.constant 0 : index
    %c0_0 = arith.constant 0 : index
    %c0_1 = arith.constant 0 : index
    %c0_2 = arith.constant 0 : index
    %0 = vector.load %arg2[%c0, %c0_0, %c0_1, %c0_2] : memref<1x16x16x128xf32, #tpu.memory_space<vmem>>, vector<1x16x16x128xf32>
    %c0_3 = arith.constant 0 : index
    %c0_4 = arith.constant 0 : index
    %c0_5 = arith.constant 0 : index
    %c0_6 = arith.constant 0 : index
    %1 = vector.load %arg3[%c0_3, %c0_4, %c0_5, %c0_6] : memref<1x1x1x128xf32, #tpu.memory_space<vmem>>, vector<1x1x1x128xf32>
    %2 = vector.broadcast %1 : vector<1x1x1x128xf32> to vector<1x16x16x128xf32>
    %3 = arith.mulf %0, %2 : vector<1x16x16x128xf32>
    %c0_7 = arith.constant 0 : index
    %c0_8 = arith.constant 0 : index
    %c0_9 = arith.constant 0 : index
    %c0_10 = arith.constant 0 : index
    %4 = vector.load %arg4[%c0_7, %c0_8, %c0_9, %c0_10] : memref<1x1x1x128xf32, #tpu.memory_space<vmem>>, vector<1x1x1x128xf32>
    %5 = vector.broadcast %4 : vector<1x1x1x128xf32> to vector<1x16x16x128xf32>
    %6 = arith.addf %3, %5 : vector<1x16x16x128xf32>
    %cst = arith.constant 0.000000e+00 : f32
    %7 = vector.broadcast %cst : f32 to vector<1x16x16x128xf32>
    %8 = arith.maximumf %6, %7 : vector<1x16x16x128xf32>
    %c0_11 = arith.constant 0 : index
    %c0_12 = arith.constant 0 : index
    %c0_13 = arith.constant 0 : index
    %c0_14 = arith.constant 0 : index
    %9 = vector.load %arg5[%c0_11, %c0_12, %c0_13, %c0_14] : memref<1x16x16x128xf32, #tpu.memory_space<vmem>>, vector<1x16x16x128xf32>
    tpu.vector_store %arg5[%c0_11, %c0_12, %c0_13, %c0_14], %8 {strides = array<i32>} : memref<1x16x16x128xf32, #tpu.memory_space<vmem>>, vector<1x16x16x128xf32>,
    return
  }
  func.func @transform_0(%arg0: i32, %arg1: i32) -> (i32, i32, i32, i32) {
    %c0_i32 = arith.constant 0 : i32
    %c0_i32_0 = arith.constant 0 : i32
    %c0_i32_1 = arith.constant 0 : i32
    return %arg0, %c0_i32, %c0_i32_0, %arg1 : i32, i32, i32, i32
  }
  func.func @transform_1(%arg0: i32, %arg1: i32) -> (i32, i32, i32, i32) {
    %c0_i32 = arith.constant 0 : i32
    %c0_i32_0 = arith.constant 0 : i32
    %c0_i32_1 = arith.constant 0 : i32
    %c0_i32_2 = arith.constant 0 : i32
    return %c0_i32, %c0_i32_0, %c0_i32_1, %arg1 : i32, i32, i32, i32
  }
  func.func @transform_2(%arg0: i32, %arg1: i32) -> (i32, i32, i32, i32) {
    %c0_i32 = arith.constant 0 : i32
    %c0_i32_0 = arith.constant 0 : i32
    %c0_i32_1 = arith.constant 0 : i32
    %c0_i32_2 = arith.constant 0 : i32
    return %c0_i32, %c0_i32_0, %c0_i32_1, %arg1 : i32, i32, i32, i32
  }
  func.func @transform_3(%arg0: i32, %arg1: i32) -> (i32, i32, i32, i32) {
    %c0_i32 = arith.constant 0 : i32
    %c0_i32_0 = arith.constant 0 : i32
    %c0_i32_1 = arith.constant 0 : i32
    return %arg0, %c0_i32, %c0_i32_0, %arg1 : i32, i32, i32, i32
  }
}

</mosaic_0001>

<bundles_post_ra>
// kernel: aspp_conv_forward.3
= control target key start
LH: loop header
LB: loop body
LE: loop exit
PB: predicated region body
PF: predicated region fallthrough
CT: control target
= control target key end

     0   :  { %s597_s12 = smov 0   ;;  %s599_s13 = smov 0   ;;  %s803_s0 = inlined_call_operand.vmem [shape: f32[2,16,16,128], index: 0, kind: input, shape index: {}, may-alias: {0,3}]   ;;  %s804_s1 = inlined_call_operand.vmem [shape: f32[1,1,1,128], index: 1, kind: input, shape index: {}]   ;;  %s805_s2 = inlined_call_operand.vmem [shape: f32[1,1,1,128], index: 2, kind: input, shape index: {}]   ;;  %s806_s3 = inlined_call_operand.vmem [shape: f32[2,16,16,128], index: 3, kind: output, shape index: {}, may-alias: {0,3}]  }
   0x1   :  { %s601_s14 = smov 0  }
   0x2 LB: > { %s25_s15 = sadd.s32 1, %s571_s13  ;;  %p518_p0 = scmp.ge.s32.totalorder %s575_s14, 1  ;;  %s575_s14 = sphi %s601_s14, %s13_s14   ;;  %s571_s13 = sphi %s599_s13, %s808_s13   ;;  %s567_s12 = sphi %s597_s12, %s807_s12  }
   0x3   : > { %p27_p1 = scmp.ge.s32.totalorder %s25_s15, 2  ;;  %p172_p2 = scmp.lt.s32.totalorder %s575_s14, 3 }
   0x5   : > { %s810_s15 = smov (%p27_p1, %s25_s15), 0  ;;  %p173_p3 = pnand %p518_p0, %p172_p2 }
   0x6   : > { %p208_p4 = scmp.lt.s32.totalorder (!%p173_p3), %s567_s12, 1  ;;  %v621_v0 = vld [vmem:[%s804_s1] ss:$0 sm:$0xff] (!%p173_p3) }
   0x7   : > { %176 = sbr.rel (%p173_p3) target bundleno = 47 (0x2f), region = 32  ;;  %v633_v1 = vld [vmem:[%s805_s2] ss:$0 sm:$0xff] (!%p173_p3) }
   0xe   : > { %s812_s12 = smov (!%p208_p4, %s567_s12), 1 }
   0xf   : > { %s527_s16 = sshll.u32 %s812_s12, 8 }
  0x10   : > { %s628_s21 = scalar_lea.vmem %s803_s0, %s527_s16  ;;  %s675_s26 = scalar_lea.vmem %s806_s3, %s527_s16 }
  0x11   : > { %v230_v2 = vld [vmem:[%s628_s21] sm:$0xff]  ;;  %v231_v3 = vld [vmem:[%s628_s21 + $0x8] sm:$0xff]  ;;  %v232_v4 = vld [vmem:[%s628_s21 + $0x10] sm:$0xff] }
  0x12   : > { %v233_v5 = vld [vmem:[%s628_s21 + $0x18] sm:$0xff]  ;;  %v234_v6 = vld [vmem:[%s628_s21 + $0x20] sm:$0xff]  ;;  %v235_v7 = vld [vmem:[%s628_s21 + $0x28] sm:$0xff]  ;;  %v269_v8 = vmul.f32 %v621_v0, %v230_v2  ;;  %v270_v9 = vmul.f32 %v621_v0, %v231_v3  ;;  %v271_v10 = vmul.f32 %v621_v0, %v232_v4 }
  0x13   : > { %v236_v11 = vld [vmem:[%s628_s21 + $0x30] sm:$0xff]  ;;  %v237_v12 = vld [vmem:[%s628_s21 + $0x38] sm:$0xff]  ;;  %v272_v13 = vmul.f32 %v621_v0, %v233_v5  ;;  %v273_v14 = vmul.f32 %v621_v0, %v234_v6  ;;  %v274_v15 = vmul.f32 %v621_v0, %v235_v7  ;;  %v238_v20 = vld [vmem:[%s628_s21 + $0x40] sm:$0xff] }
  0x14   : > { %v308_v16 = vadd.f32 %v633_v1, %v269_v8  ;;  %v309_v17 = vadd.f32 %v633_v1, %v270_v9  ;;  %v310_v18 = vadd.f32 %v633_v1, %v271_v10  ;;  %v275_v19 = vmul.f32 %v621_v0, %v236_v11  ;;  %v239_v21 = vld [vmem:[%s628_s21 + $0x48] sm:$0xff]  ;;  %v240_v22 = vld [vmem:[%s628_s21 + $0x50] sm:$0xff]  ;;  %v241_v27 = vld [vmem:[%s628_s21 + $0x58] sm:$0xff] }
  0x15   : > { %v311_v23 = vadd.f32 %v633_v1, %v272_v13  ;;  %v312_v24 = vadd.f32 %v633_v1, %v273_v14  ;;  %v313_v25 = vadd.f32 %v633_v1, %v274_v15  ;;  %v276_v26 = vmul.f32 %v621_v0, %v237_v12  ;;  %v242_v28 = vld [vmem:[%s628_s21 + $0x60] sm:$0xff]  ;;  %v243_v29 = vld [vmem:[%s628_s21 + $0x68] sm:$0xff]  ;;  %v244_v34 = vld [vmem:[%s628_s21 + $0x70] sm:$0xff] }
  0x16   : > { %v340_v30 = vmax.f32 %v308_v16, 0.0  ;;  %v341_v31 = vmax.f32 %v309_v17, 0.0  ;;  %v342_v32 = vmax.f32 %v310_v18, 0.0  ;;  %v314_v33 = vadd.f32 %v633_v1, %v275_v19  ;;  %v245_v39 = vld [vmem:[%s628_s21 + $0x78] sm:$0xff]  ;;  %v246_v44 = vld [vmem:[%s628_s21 + $0x80] sm:$0xff]  ;;  %v247_v45 = vld [vmem:[%s628_s21 + $0x88] sm:$0xff] }
  0x17   : > { %v343_v35 = vmax.f32 %v311_v23, 0.0  ;;  %v344_v36 = vmax.f32 %v312_v24, 0.0  ;;  %v345_v37 = vmax.f32 %v313_v25, 0.0  ;;  %v315_v38 = vadd.f32 %v633_v1, %v276_v26  ;;  %v248_v46 = vld [vmem:[%s628_s21 + $0x90] sm:$0xff]  ;;  %v249_v47 = vld [vmem:[%s628_s21 + $0x98] sm:$0xff]  ;;  %v250_v48 = vld [vmem:[%s628_s21 + $0xa0] sm:$0xff] }
  0x18   : > { %v346_v40 = vmax.f32 %v314_v33, 0.0  ;;  %v277_v41 = vmul.f32 %v621_v0, %v238_v20  ;;  %v278_v42 = vmul.f32 %v621_v0, %v239_v21  ;;  %v279_v43 = vmul.f32 %v621_v0, %v240_v22  ;;  %v251_v49 = vld [vmem:[%s628_s21 + $0xa8] sm:$0xff]  ;;  %v252_v50 = vld [vmem:[%s628_s21 + $0xb0] sm:$0xff]  ;;  %v253_v51 = vld [vmem:[%s628_s21 + $0xb8] sm:$0xff] }
  0x19   : > { %v686_v52 = vld [vmem:[%s628_s21 + $0xc0] sm:$0xff]  ;;  %v689_v53 = vld [vmem:[%s628_s21 + $0xc8] sm:$0xff]  ;;  %v347_v54 = vmax.f32 %v315_v38, 0.0  ;;  %v280_v55 = vmul.f32 %v621_v0, %v241_v27  ;;  %v281_v56 = vmul.f32 %v621_v0, %v242_v28  ;;  %v282_v57 = vmul.f32 %v621_v0, %v243_v29  ;;  %v695_v58 = vld [vmem:[%s628_s21 + $0xd0] sm:$0xff] }
  0x1a   : > { %v698_v59 = vld [vmem:[%s628_s21 + $0xd8] sm:$0xff]  ;;  %v701_v60 = vld [vmem:[%s628_s21 + $0xe0] sm:$0xff]  ;;  %v316_v61 = vadd.f32 %v633_v1, %v277_v41  ;;  %v317_v62 = vadd.f32 %v633_v1, %v278_v42  ;;  %v318_v63 = vadd.f32 %v633_v1, %v279_v43  ;;  %v283_v2 = vmul.f32 %v621_v0, %v244_v34  ;;  %v708_v3 = vld [vmem:[%s628_s21 + $0xe8] sm:$0xff] }
  0x1b   : > { %v711_v4 = vld [vmem:[%s628_s21 + $0xf0] sm:$0xff]  ;;  %v714_v5 = vld [vmem:[%s628_s21 + $0xf8] sm:$0xff]  ;;  %v319_v6 = vadd.f32 %v633_v1, %v280_v55  ;;  %v320_v7 = vadd.f32 %v633_v1, %v281_v56  ;;  %v321_v8 = vadd.f32 %v633_v1, %v282_v57  ;;  %v284_v9 = vmul.f32 %v621_v0, %v245_v39 }
  0x1c   : > { %372 = vst [vmem:[%s675_s26] sm:$0xff] %v340_v30  ;;  %373 = vst [vmem:[%s675_s26 + $0x8] sm:$0xff] %v341_v31  ;;  %v348_v10 = vmax.f32 %v316_v61, 0.0  ;;  %v349_v11 = vmax.f32 %v317_v62, 0.0  ;;  %v350_v12 = vmax.f32 %v318_v63, 0.0  ;;  %v322_v13 = vadd.f32 %v633_v1, %v283_v2 }
  0x1d   : > { %374 = vst [vmem:[%s675_s26 + $0x10] sm:$0xff] %v342_v32  ;;  %375 = vst [vmem:[%s675_s26 + $0x18] sm:$0xff] %v343_v35  ;;  %v351_v14 = vmax.f32 %v319_v6, 0.0  ;;  %v352_v15 = vmax.f32 %v320_v7, 0.0  ;;  %v353_v16 = vmax.f32 %v321_v8, 0.0  ;;  %v323_v17 = vadd.f32 %v633_v1, %v284_v9 }
  0x1e   : > { %376 = vst [vmem:[%s675_s26 + $0x20] sm:$0xff] %v344_v36  ;;  %377 = vst [vmem:[%s675_s26 + $0x28] sm:$0xff] %v345_v37  ;;  %v354_v18 = vmax.f32 %v322_v13, 0.0  ;;  %v285_v19 = vmul.f32 %v621_v0, %v246_v44  ;;  %v286_v20 = vmul.f32 %v621_v0, %v247_v45  ;;  %v287_v21 = vmul.f32 %v621_v0, %v248_v46 }
  0x1f   : > { %378 = vst [vmem:[%s675_s26 + $0x30] sm:$0xff] %v346_v40  ;;  %379 = vst [vmem:[%s675_s26 + $0x38] sm:$0xff] %v347_v54  ;;  %v355_v22 = vmax.f32 %v323_v17, 0.0  ;;  %v288_v23 = vmul.f32 %v621_v0, %v249_v47  ;;  %v289_v24 = vmul.f32 %v621_v0, %v250_v48  ;;  %v290_v25 = vmul.f32 %v621_v0, %v251_v49 }
  0x20   : > { %380 = vst [vmem:[%s675_s26 + $0x40] sm:$0xff] %v348_v10  ;;  %381 = vst [vmem:[%s675_s26 + $0x48] sm:$0xff] %v349_v11  ;;  %v324_v26 = vadd.f32 %v633_v1, %v285_v19  ;;  %v325_v27 = vadd.f32 %v633_v1, %v286_v20  ;;  %v326_v28 = vadd.f32 %v633_v1, %v287_v21 }
  0x21   : > { %382 = vst [vmem:[%s675_s26 + $0x50] sm:$0xff] %v350_v12  ;;  %383 = vst [vmem:[%s675_s26 + $0x58] sm:$0xff] %v351_v14  ;;  %v291_v29 = vmul.f32 %v621_v0, %v252_v50  ;;  %v327_v30 = vadd.f32 %v633_v1, %v288_v23  ;;  %v328_v31 = vadd.f32 %v633_v1, %v289_v24 }
  0x22   : > { %384 = vst [vmem:[%s675_s26 + $0x60] sm:$0xff] %v352_v15  ;;  %385 = vst [vmem:[%s675_s26 + $0x68] sm:$0xff] %v353_v16  ;;  %v329_v32 = vadd.f32 %v633_v1, %v290_v25  ;;  %v292_v33 = vmul.f32 %v621_v0, %v253_v51  ;;  %v356_v34 = vmax.f32 %v324_v26, 0.0  ;;  %v357_v35 = vmax.f32 %v325_v27, 0.0 }
  0x23   : > { %386 = vst [vmem:[%s675_s26 + $0x70] sm:$0xff] %v354_v18  ;;  %387 = vst [vmem:[%s675_s26 + $0x78] sm:$0xff] %v355_v22  ;;  %v358_v36 = vmax.f32 %v326_v28, 0.0  ;;  %v330_v37 = vadd.f32 %v633_v1, %v291_v29  ;;  %v359_v38 = vmax.f32 %v327_v30, 0.0  ;;  %v360_v39 = vmax.f32 %v328_v31, 0.0 }
  0x24   : > { %v361_v40 = vmax.f32 %v329_v32, 0.0  ;;  %v331_v41 = vadd.f32 %v633_v1, %v292_v33  ;;  %388 = vst [vmem:[%s675_s26 + $0x80] sm:$0xff] %v356_v34  ;;  %389 = vst [vmem:[%s675_s26 + $0x88] sm:$0xff] %v357_v35  ;;  %v293_v43 = vmul.f32 %v621_v0, %v686_v52  ;;  %v294_v44 = vmul.f32 %v621_v0, %v689_v53 }
  0x25   : > { %390 = vst [vmem:[%s675_s26 + $0x90] sm:$0xff] %v358_v36  ;;  %v362_v42 = vmax.f32 %v330_v37, 0.0  ;;  %v295_v45 = vmul.f32 %v621_v0, %v695_v58  ;;  %391 = vst [vmem:[%s675_s26 + $0x98] sm:$0xff] %v359_v38  ;;  %v296_v47 = vmul.f32 %v621_v0, %v698_v59  ;;  %v297_v48 = vmul.f32 %v621_v0, %v701_v60 }
  0x26   : > { %392 = vst [vmem:[%s675_s26 + $0xa0] sm:$0xff] %v360_v39  ;;  %393 = vst [vmem:[%s675_s26 + $0xa8] sm:$0xff] %v361_v40  ;;  %v363_v46 = vmax.f32 %v331_v41, 0.0  ;;  %v298_v49 = vmul.f32 %v621_v0, %v708_v3  ;;  %v332_v50 = vadd.f32 %v633_v1, %v293_v43  ;;  %v333_v51 = vadd.f32 %v633_v1, %v294_v44 }
  0x27   : > { %394 = vst [vmem:[%s675_s26 + $0xb0] sm:$0xff] %v362_v42  ;;  %v334_v52 = vadd.f32 %v633_v1, %v295_v45  ;;  %v299_v53 = vmul.f32 %v621_v0, %v711_v4  ;;  %v335_v54 = vadd.f32 %v633_v1, %v296_v47  ;;  %v336_v55 = vadd.f32 %v633_v1, %v297_v48 }
  0x28   : > { %395 = vst [vmem:[%s675_s26 + $0xb8] sm:$0xff] %v363_v46  ;;  %v337_v56 = vadd.f32 %v633_v1, %v298_v49  ;;  %v300_v57 = vmul.f32 %v621_v0, %v714_v5  ;;  %v364_v58 = vmax.f32 %v332_v50, 0.0  ;;  %v365_v59 = vmax.f32 %v333_v51, 0.0 }
  0x29   : > { %v366_v60 = vmax.f32 %v334_v52, 0.0  ;;  %v338_v61 = vadd.f32 %v633_v1, %v299_v53  ;;  %v367_v62 = vmax.f32 %v335_v54, 0.0  ;;  %v368_v63 = vmax.f32 %v336_v55, 0.0 }
  0x2a   : > { %v369_v2 = vmax.f32 %v337_v56, 0.0  ;;  %v339_v3 = vadd.f32 %v633_v1, %v300_v57  ;;  %396 = vst [vmem:[%s675_s26 + $0xc0] sm:$0xff] %v364_v58  ;;  %397 = vst [vmem:[%s675_s26 + $0xc8] sm:$0xff] %v365_v59 }
  0x2b   : > { %398 = vst [vmem:[%s675_s26 + $0xd0] sm:$0xff] %v366_v60  ;;  %v370_v4 = vmax.f32 %v338_v61, 0.0  ;;  %399 = vst [vmem:[%s675_s26 + $0xd8] sm:$0xff] %v367_v62 }
  0x2c   : > { %400 = vst [vmem:[%s675_s26 + $0xe0] sm:$0xff] %v368_v63  ;;  %401 = vst [vmem:[%s675_s26 + $0xe8] sm:$0xff] %v369_v2  ;;  %v371_v0 = vmax.f32 %v339_v3, 0.0 }
  0x2d   : > { %402 = vst [vmem:[%s675_s26 + $0xf0] sm:$0xff] %v370_v4 }
  0x2e   : > { %403 = vst [vmem:[%s675_s26 + $0xf8] sm:$0xff] %v371_v0 }
  0x2f PF: > { %s13_s14 = sadd.s32 1, %s575_s14   ;;  %s807_s12 = smov %s571_s13 }
  0x30   : > { %p10_p5 = scmp.ge.s32.totalorder %s13_s14, 4   ;;  %s808_s13 = smov %s810_s15 }
  0x32   :  { %12 = sbr.rel (!%p10_p5) target bundleno = 2 (0x2), region = 68 }

// kernel: aspp_conv_forward.2
= control target key start
LH: loop header
LB: loop body
LE: loop exit
PB: predicated region body
PF: predicated region fallthrough
CT: control target
= control target key end

     0   :  { %s4024_s12 = smov 0   ;;  %s4026_s13 = smov 0   ;;  %s5483_s0 = inlined_call_operand.vmem [shape: f32[2,16,16,128], index: 0, kind: input, shape index: {}]   ;;  %s5484_s1 = inlined_call_operand.vmem [shape: f32[3,384,128], index: 1, kind: input, shape index: {}]   ;;  %s5485_s2 = inlined_call_operand.vmem [shape: f32[2,16,16,128], index: 2, kind: output, shape index: {0}]   ;;  %s5486_s3 = inlined_call_operand.vmem [shape: f32[2,2,128], index: 3, kind: output, shape index: {1}]  }
   0x1   :  { %s4028_s14 = smov 0  }
   0x2 LB: > { %s29_s15 = sadd.s32 1, %s3996_s13  ;;  %p3217_p0 = scmp.ge.s32.totalorder %s4000_s14, 1  ;;  %s4000_s14 = sphi %s4028_s14, %s14_s14   ;;  %s3996_s13 = sphi %s4026_s13, %s5516_s13   ;;  %s3992_s12 = sphi %s4024_s12, %s5515_s12  }
   0x3   : > { %p31_p1 = scmp.ge.s32.totalorder %s29_s15, 2  ;;  %p177_p2 = scmp.lt.s32.totalorder %s4000_s14, 3 }
   0x5   : > { %s5518_s15 = smov (%p31_p1, %s29_s15), 0  ;;  %p178_p3 = pnand %p3217_p0, %p177_p2 }
   0x7   : > { %181 = sbr.rel (%p178_p3) target bundleno = 600 (0x258), region = 28 }
   0xe   : > { %v618_v0 = vld [vmem:[%s5484_s1] sm:$0xff]  ;;  %v619_v1 = vld [vmem:[%s5484_s1 + $0x8] sm:$0xff]  ;;  %p218_p4 = scmp.lt.s32.totalorder %s3992_s12, 1  ;;  %v5487_v3 = vmov 0.0|0.0   ;;  %v4061_v6 = vld [vmem:[%s5484_s1 + $0x10] sm:$0xff]  ;;  %v4003_v8 = vmov 0.0  }
   0xf   : > { %v650_v2 = vld [vmem:[%s5484_s1 + $0x100] sm:$0xff]  ;;  %3707 = vmatprep.subr.bf16.mxu0 %v5487_v3  ;;  %v3708_v4 = vpack.c.bf16 %v619_v1, %v618_v0  ;;  %v651_v5 = vld [vmem:[%s5484_s1 + $0x108] sm:$0xff]  ;;  %v621_v7 = vld [vmem:[%s5484_s1 + $0x18] sm:$0xff]  ;;  %281 = vst [vmem:[#allocation3] sm:$0xff] %v4003_v8  ;;  %vm3058_vm0 = vcmask 1040384  }
  0x10   : > { %282 = vst [vmem:[#allocation3 + $0x8] sm:$0xff] %v4003_v8  ;;  %283 = vst [vmem:[#allocation3 + $0x10] sm:$0xf] %v4003_v8  ;;  %v3755_v9 = vpack.c.bf16 %v651_v5, %v650_v2  ;;  %v652_v10 = vld [vmem:[%s5484_s1 + $0x110] sm:$0xff]  ;;  %v653_v11 = vld [vmem:[%s5484_s1 + $0x118] sm:$0xff]  ;;  %v3711_v12 = vpack.c.bf16 %v621_v7, %v4061_v6  ;;  %s5520_s12 = smov (!%p218_p4, %s3992_s12), 1 }
  0x11   : > { %284 = vst [vmem:[#allocation3 + $0x18] sm:$0xff] %v4003_v8  ;;  %285 = vst [vmem:[#allocation3 + $0x20] sm:$0xff] %v4003_v8  ;;  %3709 = vmatpush1.bf16.msra.mxu0 %v3708_v4  ;;  %v3759_v13 = vpack.c.bf16 %v653_v11, %v652_v10  ;;  %v654_v14 = vld [vmem:[%s5484_s1 + $0x120] sm:$0xff]  ;;  %v655_v15 = vld [vmem:[%s5484_s1 + $0x128] sm:$0xff]  ;;  %s3321_s25 = sshll.u32 %s5520_s12, 8 }
  0x12   : > { %286 = vst [vmem:[#allocation3 + $0x28] sm:$0xf] %v4003_v8  ;;  %288 = vst [vmem:[#allocation3 + $0x1b0] sm:$0xff] %v4003_v8  ;;  %3756 = vmatprep.subr.bf16.mxu1 %v3755_v9  ;;  %3710 = vmatprep.subr.bf16.mxu0 %v5487_v3  ;;  %v622_v16 = vld [vmem:[%s5484_s1 + $0x20] sm:$0xff]  ;;  %v623_v17 = vld [vmem:[%s5484_s1 + $0x28] sm:$0xff]  ;;  %v3763_v18 = vpack.c.bf16 %v655_v15, %v654_v14  ;;  %s4160_s5 = scalar_lea.vmem %s5483_s0, %s3321_s25  ;;  %s5397_s29 = scalar_lea.vmem %s5485_s2, %s3321_s25 }
  0x13   : > { %289 = vst [vmem:[#allocation3 + $0x1b8] sm:$0xff] %v4003_v8  ;;  %290 = vst [vmem:[#allocation3 + $0x1c0] sm:$0xf] %v4003_v8  ;;  %3758 = vmatpush3.bf16.msra.mxu1 %v3755_v9  ;;  %v3714_v19 = vpack.c.bf16 %v623_v17, %v622_v16  ;;  %v656_v20 = vld [vmem:[%s5484_s1 + $0x130] sm:$0xff]  ;;  %v657_v21 = vld [vmem:[%s5484_s1 + $0x138] sm:$0xff]  ;;  %s3222_s25 = sshll.u32 %s5520_s12, 1 }
  0x14   : > { %291 = vst [vmem:[#allocation3 + $0x1c8] sm:$0xff] %v4003_v8  ;;  %292 = vst [vmem:[#allocation3 + $0x1d0] sm:$0xff] %v4003_v8  ;;  %3760 = vmatprep.subr.bf16.mxu1 %v3759_v13  ;;  %v624_v22 = vld [vmem:[%s5484_s1 + $0x30] sm:$0xff]  ;;  %v625_v23 = vld [vmem:[%s5484_s1 + $0x38] sm:$0xff]  ;;  %v3767_v24 = vpack.c.bf16 %v657_v21, %v656_v20  ;;  %s244_s6 = scalar_lea.vmem %s5486_s3, %s3222_s25 }
  0x15   : > { %293 = vst [vmem:[#allocation3 + $0x1d8] sm:$0xf] %v4003_v8  ;;  %295 = vst [vmem:[#allocation3 + $0x30] sm:$0x3] %v4003_v8  ;;  %3712 = vmatpush1.bf16.msra.mxu0 %v3711_v12  ;;  %v3717_v26 = vpack.c.bf16 %v625_v23, %v624_v22  ;;  %v658_v27 = vld [vmem:[%s5484_s1 + $0x140] sm:$0xff]  ;;  %v659_v28 = vld [vmem:[%s5484_s1 + $0x148] sm:$0xff] }
  0x16   : > { %296 = vst [vmem:[#allocation3 + $0x48] sm:$0x3] %v4003_v8  ;;  %297 = vst [vmem:[#allocation3 + $0x60] sm:$0x3] %v4003_v8  ;;  %3713 = vmatprep.subr.bf16.mxu0 %v5487_v3  ;;  %v626_v29 = vld [vmem:[%s5484_s1 + $0x40] sm:$0xff]  ;;  %v627_v30 = vld [vmem:[%s5484_s1 + $0x48] sm:$0xff]  ;;  %v3771_v31 = vpack.c.bf16 %v659_v28, %v658_v27 }
  0x17   : > { %298 = vst [vmem:[#allocation3 + $0x78] sm:$0x3] %v4003_v8  ;;  %299 = vst [vmem:[#allocation3 + $0x90] sm:$0x3] %v4003_v8  ;;  %3762 = vmatpush3.bf16.msra.mxu1 %v3759_v13  ;;  %v553_v25 = vld [vmem:[#allocation3 + $0x4] sm:$0xff]  ;;  %v3720_v33 = vpack.c.bf16 %v627_v30, %v626_v29  ;;  %v660_v34 = vld [vmem:[%s5484_s1 + $0x150] sm:$0xff] }
  0x18   : > { %300 = vst [vmem:[#allocation3 + $0xa8] sm:$0x3] %v4003_v8  ;;  %301 = vst [vmem:[#allocation3 + $0xc0] sm:$0x3] %v4003_v8  ;;  %3764 = vmatprep.subr.bf16.mxu1 %v3763_v18  ;;  %3499 = vmatprep.mubr.f32.mxu1 %v553_v25  ;;  %v4170_v32 = vld [vmem:[%s4160_s5] sm:$0xff]  ;;  %v661_v35 = vld [vmem:[%s5484_s1 + $0x158] sm:$0xff] }
  0x19   : > { %302 = vst [vmem:[#allocation3 + $0xd8] sm:$0x3] %v4003_v8  ;;  %303 = vst [vmem:[#allocation3 + $0xf0] sm:$0x3] %v4003_v8  ;;  %3715 = vmatpush1.bf16.msra.mxu0 %v3714_v19  ;;  %v4179_v36 = vld [vmem:[%s4160_s5 + $0x8] sm:$0xff]  ;;  %v628_v37 = vld [vmem:[%s5484_s1 + $0x50] sm:$0xff]  ;;  %v3775_v41 = vpack.c.bf16 %v661_v35, %v660_v34 }
  0x1a   : > { %304 = vst [vmem:[#allocation3 + $0x108] sm:$0x3] %v4003_v8  ;;  %305 = vst [vmem:[#allocation3 + $0x120] sm:$0x3] %v4003_v8  ;;  %3716 = vmatprep.subr.bf16.mxu0 %v5487_v3  ;;  %v629_v38 = vld [vmem:[%s5484_s1 + $0x58] sm:$0xff]  ;;  %v4191_v39 = vld [vmem:[%s4160_s5 + $0x10] sm:$0xff] }
  0x1b   : > { %306 = vst [vmem:[#allocation3 + $0x138] sm:$0x3] %v4003_v8  ;;  %307 = vst [vmem:[#allocation3 + $0x150] sm:$0x3] %v4003_v8  ;;  %3766 = vmatpush3.bf16.msra.mxu1 %v3763_v18  ;;  %v4194_v40 = vld [vmem:[%s4160_s5 + $0x18] sm:$0xff]  ;;  %v4199_v42 = vld [vmem:[%s4160_s5 + $0x20] sm:$0xff]  ;;  %v3723_v43 = vpack.c.bf16 %v629_v38, %v628_v37 }
  0x1c   : > { %308 = vst [vmem:[#allocation3 + $0x168] sm:$0x3] %v4003_v8  ;;  %309 = vst [vmem:[#allocation3 + $0x180] sm:$0x3] %v4003_v8  ;;  %3768 = vmatprep.subr.bf16.mxu1 %v3767_v24  ;;  %v662_v44 = vld [vmem:[%s5484_s1 + $0x160] sm:$0xff]  ;;  %v663_v45 = vld [vmem:[%s5484_s1 + $0x168] sm:$0xff] }
  0x1d   : > { %310 = vst [vmem:[#allocation3 + $0x198] sm:$0x3] %v4003_v8  ;;  %311 = vst [vmem:[#allocation3 + $0x42] sm:$0x3] %v4003_v8  ;;  %3718 = vmatpush1.bf16.msra.mxu0 %v3717_v26  ;;  %v4208_v46 = vld [vmem:[%s4160_s5 + $0x28] sm:$0xff]  ;;  %v630_v47 = vld [vmem:[%s5484_s1 + $0x60] sm:$0xff]  ;;  %v3779_v51 = vpack.c.bf16 %v663_v45, %v662_v44 }
  0x1e   : > { %312 = vst [vmem:[#allocation3 + $0x5a] sm:$0x3] %v4003_v8  ;;  %313 = vst [vmem:[#allocation3 + $0x72] sm:$0x3] %v4003_v8  ;;  %3719 = vmatprep.subr.bf16.mxu0 %v5487_v3  ;;  %v631_v48 = vld [vmem:[%s5484_s1 + $0x68] sm:$0xff]  ;;  %v4220_v49 = vld [vmem:[%s4160_s5 + $0x30] sm:$0xff] }
  0x1f   : > { %314 = vst [vmem:[#allocation3 + $0x8a] sm:$0x3] %v4003_v8  ;;  %315 = vst [vmem:[#allocation3 + $0xa2] sm:$0x3] %v4003_v8  ;;  %3770 = vmatpush3.bf16.msra.mxu1 %v3767_v24  ;;  %v4223_v50 = vld [vmem:[%s4160_s5 + $0x38] sm:$0xff]  ;;  %v4228_v52 = vld [vmem:[%s4160_s5 + $0x40] sm:$0xff]  ;;  %v3726_v53 = vpack.c.bf16 %v631_v48, %v630_v47 }
  0x20   : > { %316 = vst [vmem:[#allocation3 + $0xba] sm:$0x3] %v4003_v8  ;;  %317 = vst [vmem:[#allocation3 + $0xd2] sm:$0x3] %v4003_v8  ;;  %3772 = vmatprep.subr.bf16.mxu1 %v3771_v31  ;;  %v664_v54 = vld [vmem:[%s5484_s1 + $0x170] sm:$0xff]  ;;  %v665_v55 = vld [vmem:[%s5484_s1 + $0x178] sm:$0xff] }
  0x21   : > { %318 = vst [vmem:[#allocation3 + $0xea] sm:$0x3] %v4003_v8  ;;  %319 = vst [vmem:[#allocation3 + $0x102] sm:$0x3] %v4003_v8  ;;  %3721 = vmatpush1.bf16.msra.mxu0 %v3720_v33  ;;  %v4237_v56 = vld [vmem:[%s4160_s5 + $0x48] sm:$0xff]  ;;  %v632_v57 = vld [vmem:[%s5484_s1 + $0x70] sm:$0xff]  ;;  %v3783_v59 = vpack.c.bf16 %v665_v55, %v664_v54 }
  0x22   : > { %320 = vst [vmem:[#allocation3 + $0x11a] sm:$0x3] %v4003_v8  ;;  %321 = vst [vmem:[#allocation3 + $0x132] sm:$0x3] %v4003_v8  ;;  %3722 = vmatprep.subr.bf16.mxu0 %v5487_v3  ;;  %v633_v58 = vld [vmem:[%s5484_s1 + $0x78] sm:$0xff]  ;;  %v4249_v60 = vld [vmem:[%s4160_s5 + $0x50] sm:$0xff] }
  0x23   : > { %322 = vst [vmem:[#allocation3 + $0x14a] sm:$0x3] %v4003_v8  ;;  %323 = vst [vmem:[#allocation3 + $0x162] sm:$0x3] %v4003_v8  ;;  %3774 = vmatpush3.bf16.msra.mxu1 %v3771_v31  ;;  %v4252_v61 = vld [vmem:[%s4160_s5 + $0x58] sm:$0xff]  ;;  %v3729_v62 = vpack.c.bf16 %v633_v58, %v632_v57  ;;  %v634_v63 = vld [vmem:[%s5484_s1 + $0x80] sm:$0xff] }
  0x24   : > { %324 = vst [vmem:[#allocation3 + $0x17a] sm:$0x3] %v4003_v8  ;;  %325 = vst [vmem:[#allocation3 + $0x192] sm:$0x3] %v4003_v8  ;;  %3776 = vmatprep.subr.bf16.mxu1 %v3775_v41  ;;  %v635_v0 = vld [vmem:[%s5484_s1 + $0x88] sm:$0xff]  ;;  %v4264_v2 = vld [vmem:[%s4160_s5 + $0x60] sm:$0xff] }
  0x25   : > { %326 = vst [vmem:[#allocation3 + $0x1aa] sm:$0x3] %v4003_v8  ;;  %360 = vst [vmem:[#allocation3 + $0x32] sm:$0xff] %v4170_v32  ;;  %3724 = vmatpush1.bf16.msra.mxu0 %v3723_v43  ;;  %v489_v1 = vld [vmem:[#allocation3 + $0x2] sm:$0xff]  ;;  %v3732_v7 = vpack.c.bf16 %v635_v0, %v634_v63  ;;  %v636_v9 = vld [vmem:[%s5484_s1 + $0x90] sm:$0xff] }
  0x26   : > { %361 = vst [vmem:[#allocation3 + $0x3a] sm:$0xff] %v4179_v36  ;;  %362 = vst [vmem:[#allocation3 + $0x4a] sm:$0xff] %v4191_v39  ;;  %3725 = vmatprep.subr.bf16.mxu0 %v5487_v3  ;;  %826 = vmatprep.mubr.f32.mxu0 %v489_v1  ;;  %v3223_v4 = vld [vmem:[%s5484_s1 + $0x180] sm:$0xff]  ;;  %v3224_v5 = vld [vmem:[%s5484_s1 + $0x188] sm:$0xff] }
  0x27   : > { %363 = vst [vmem:[#allocation3 + $0x52] sm:$0xff] %v4194_v40  ;;  %364 = vst [vmem:[#allocation3 + $0x62] sm:$0xff] %v4199_v42  ;;  %3778 = vmatpush3.bf16.msra.mxu1 %v3775_v41  ;;  %v4273_v6 = vld [vmem:[%s4160_s5 + $0x68] sm:$0xff]  ;;  %v637_v10 = vld [vmem:[%s5484_s1 + $0x98] sm:$0xff]  ;;  %v3788_v14 = vpack.c.bf16 %v3224_v5, %v3223_v4 }
  0x28   : > { %365 = vst [vmem:[#allocation3 + $0x6a] sm:$0xff] %v4208_v46  ;;  %366 = vst [vmem:[#allocation3 + $0x7a] sm:$0xff] %v4220_v49  ;;  %3780 = vmatprep.subr.bf16.mxu1 %v3779_v51  ;;  %v4285_v11 = vld [vmem:[%s4160_s5 + $0x70] sm:$0xff]  ;;  %v4288_v12 = vld [vmem:[%s4160_s5 + $0x78] sm:$0xff]  ;;  %v3735_v20 = vpack.c.bf16 %v637_v10, %v636_v9 }
  0x29   : > { %367 = vst [vmem:[#allocation3 + $0x82] sm:$0xff] %v4223_v50  ;;  %368 = vst [vmem:[#allocation3 + $0x92] sm:$0xff] %v4228_v52  ;;  %3727 = vmatpush1.bf16.msra.mxu0 %v3726_v53  ;;  %v554_v13 = vld [vmem:[#allocation3 + $0xc] sm:$0xff]  ;;  %v555_v15 = vld [vmem:[#allocation3 + $0x1c] sm:$0xff] }
  0x2a   : > { %369 = vst [vmem:[#allocation3 + $0x9a] sm:$0xff] %v4237_v56  ;;  %370 = vst [vmem:[#allocation3 + $0xaa] sm:$0xff] %v4249_v60  ;;  %3728 = vmatprep.subr.bf16.mxu0 %v5487_v3  ;;  %v4293_v16 = vld [vmem:[%s4160_s5 + $0x80] sm:$0xff]  ;;  %v3225_v17 = vld [vmem:[%s5484_s1 + $0x190] sm:$0xff] }
  0x2b   : > { %371 = vst [vmem:[#allocation3 + $0xb2] sm:$0xff] %v4252_v61  ;;  %3782 = vmatpush3.bf16.msra.mxu1 %v3779_v51  ;;  %372 = vst [vmem:[#allocation3 + $0xc2] sm:$0xff] %v4264_v2  ;;  %v3226_v18 = vld [vmem:[%s5484_s1 + $0x198] sm:$0xff]  ;;  %v4303_v19 = vld [vmem:[%s4160_s5 + $0x88] sm:$0xff] }
  0x2c   : > { %3784 = vmatprep.subr.bf16.mxu1 %v3783_v59  ;;  %373 = vst [vmem:[#allocation3 + $0xca] sm:$0xff] %v4273_v6  ;;  %374 = vst [vmem:[#allocation3 + $0xda] sm:$0xff] %v4285_v11  ;;  %v638_v21 = vld [vmem:[%s5484_s1 + $0xa0] sm:$0xff]  ;;  %v639_v22 = vld [vmem:[%s5484_s1 + $0xa8] sm:$0xff]  ;;  %v3791_v26 = vpack.c.bf16 %v3226_v18, %v3225_v17 }
  0x2d   : > { %3730 = vmatpush1.bf16.msra.mxu0 %v3729_v62  ;;  %375 = vst [vmem:[#allocation3 + $0xe2] sm:$0xff] %v4288_v12  ;;  %376 = vst [vmem:[#allocation3 + $0xf2] sm:$0xff] %v4293_v16  ;;  %v4315_v23 = vld [vmem:[%s4160_s5 + $0x90] sm:$0xff]  ;;  %v4318_v24 = vld [vmem:[%s4160_s5 + $0x98] sm:$0xff]  ;;  %v3738_v33 = vpack.c.bf16 %v639_v22, %v638_v21 }
  0x2e   : > { %3731 = vmatprep.subr.bf16.mxu0 %v5487_v3  ;;  %377 = vst [vmem:[#allocation3 + $0xfa] sm:$0xff] %v4303_v19  ;;  %v556_v25 = vld [vmem:[#allocation3 + $0x24] sm:$0xff]  ;;  %378 = vst [vmem:[#allocation3 + $0x10a] sm:$0xff] %v4315_v23  ;;  %v557_v29 = vld [vmem:[#allocation3 + $0x34] sm:$0xff] }
  0x2f   : > { %3786 = vmatpush3.bf16.msra.mxu1 %v3783_v59  ;;  %v3227_v27 = vld [vmem:[%s5484_s1 + $0x1a0] sm:$0xff]  ;;  %379 = vst [vmem:[#allocation3 + $0x112] sm:$0xff] %v4318_v24  ;;  %v3228_v30 = vld [vmem:[%s5484_s1 + $0x1a8] sm:$0xff]  ;;  %v640_v34 = vld [vmem:[%s5484_s1 + $0xb0] sm:$0xff] }
  0x30   : > { %3787 = vmatprep.subr.bf16.mxu1 %v5487_v3  ;;  %v4326_v28 = vld [vmem:[%s4160_s5 + $0xa0] sm:$0xff]  ;;  %v4333_v31 = vld [vmem:[%s4160_s5 + $0xa8] sm:$0xff]  ;;  %v641_v35 = vld [vmem:[%s5484_s1 + $0xb8] sm:$0xff]  ;;  %v3794_v41 = vpack.c.bf16 %v3228_v30, %v3227_v27 }
  0x31   : > { %3733 = vmatpush1.bf16.msra.mxu0 %v3732_v7  ;;  %380 = vst [vmem:[#allocation3 + $0x122] sm:$0xff] %v4326_v28  ;;  %381 = vst [vmem:[#allocation3 + $0x12a] sm:$0xff] %v4333_v31  ;;  %v4345_v37 = vld [vmem:[%s4160_s5 + $0xb0] sm:$0xff]  ;;  %v558_v38 = vld [vmem:[#allocation3 + $0x3c] sm:$0xff]  ;;  %v3741_v48 = vpack.c.bf16 %v641_v35, %v640_v34 }
  0x32   : > { %3500 = vmatmul.mubr.f32.vlgmr.msra.gmra.mrb[0].mxu1 %v554_v13  ;;  %3734 = vmatprep.subr.bf16.mxu0 %v5487_v3  ;;  %v4348_v43 = vld [vmem:[%s4160_s5 + $0xb8] sm:$0xff]  ;;  %382 = vst [vmem:[#allocation3 + $0x13a] sm:$0xff] %v4345_v37  ;;  %v559_v44 = vld [vmem:[#allocation3 + $0x4c] sm:$0xff]  ;;  %v4360_v51 = vld [vmem:[%s4160_s5 + $0xc0] sm:$0xff] }
  0x33   : > { %3789 = vmatpush1.bf16.msra.mxu1 %v3788_v14  ;;  %3502 = vmatprep.mubr.f32.mxu1 %v555_v15  ;;  %v3229_v45 = vld [vmem:[%s5484_s1 + $0x1b0] sm:$0xff]  ;;  %v3230_v47 = vld [vmem:[%s5484_s1 + $0x1b8] sm:$0xff]  ;;  %383 = vst [vmem:[#allocation3 + $0x142] sm:$0xff] %v4348_v43  ;;  %v4363_v53 = vld [vmem:[%s4160_s5 + $0xc8] sm:$0xff] }
  0x34   : > { %3790 = vmatprep.subr.bf16.mxu1 %v5487_v3  ;;  %v642_v54 = vld [vmem:[%s5484_s1 + $0xc0] sm:$0xff]  ;;  %v643_v55 = vld [vmem:[%s5484_s1 + $0xc8] sm:$0xff]  ;;  %384 = vst [vmem:[#allocation3 + $0x152] sm:$0xff] %v4360_v51  ;;  %385 = vst [vmem:[#allocation3 + $0x15a] sm:$0xff] %v4363_v53  ;;  %v3797_v58 = vpack.c.bf16 %v3230_v47, %v3229_v45 }
  0x35   : > { %3736 = vmatpush1.bf16.msra.mxu0 %v3735_v20  ;;  %v560_v57 = vld [vmem:[#allocation3 + $0x54] sm:$0xff]  ;;  %v561_v63 = vld [vmem:[#allocation3 + $0x64] sm:$0xff]  ;;  %v3744_v4 = vpack.c.bf16 %v643_v55, %v642_v54  ;;  %v562_v9 = vld [vmem:[#allocation3 + $0x6c] sm:$0xff] }
  0x36   : > { %3503 = vmatmul.mubr.f32.gmra.mrb[2].mxu1 %v556_v25  ;;  %3737 = vmatprep.subr.bf16.mxu0 %v5487_v3  ;;  %v4375_v59 = vld [vmem:[%s4160_s5 + $0xd0] sm:$0xff]  ;;  %v4378_v62 = vld [vmem:[%s4160_s5 + $0xd8] sm:$0xff]  ;;  %v3231_v0 = vld [vmem:[%s5484_s1 + $0x1c0] sm:$0xff] }
  0x37   : > { %3792 = vmatpush1.bf16.msra.mxu1 %v3791_v26  ;;  %3505 = vmatprep.mubr.f32.mxu1 %v557_v29  ;;  %v3232_v1 = vld [vmem:[%s5484_s1 + $0x1c8] sm:$0xff]  ;;  %386 = vst [vmem:[#allocation3 + $0x16a] sm:$0xff] %v4375_v59  ;;  %387 = vst [vmem:[#allocation3 + $0x172] sm:$0xff] %v4378_v62  ;;  %v644_v5 = vld [vmem:[%s5484_s1 + $0xd0] sm:$0xff] }
  0x38   : > { %3793 = vmatprep.subr.bf16.mxu1 %v5487_v3  ;;  %v645_v7 = vld [vmem:[%s5484_s1 + $0xd8] sm:$0xff]  ;;  %v3800_v10 = vpack.c.bf16 %v3232_v1, %v3231_v0  ;;  %v3233_v14 = vld [vmem:[%s5484_s1 + $0x1d0] sm:$0xff]  ;;  %v646_v18 = vld [vmem:[%s5484_s1 + $0xe0] sm:$0xff] }
  0x39   : > { %3739 = vmatpush1.bf16.msra.mxu0 %v3738_v33  ;;  %v4397_v13 = vld [vmem:[#allocation3 + $0x7c] sm:$0xff]  ;;  %v3747_v17 = vpack.c.bf16 %v645_v7, %v644_v5  ;;  %v647_v20 = vld [vmem:[%s5484_s1 + $0xe8] sm:$0xff]  ;;  %v4416_v25 = vld [vmem:[#allocation3 + $0x94] sm:$0xff] }
  0x3a   : > { %3506 = vmatmul.mubr.f32.gmra.mrb[4].mxu1 %v558_v38  ;;  %3740 = vmatprep.subr.bf16.mxu0 %v5487_v3  ;;  %v3234_v15 = vld [vmem:[%s5484_s1 + $0x1d8] sm:$0xff]  ;;  %v4413_v21 = vld [vmem:[#allocation3 + $0x84] sm:$0xff]  ;;  %v3750_v29 = vpack.c.bf16 %v647_v20, %v646_v18  ;;  %v648_v30 = vld [vmem:[%s5484_s1 + $0xf0] sm:$0xff] }
  0x3b   : > { %3795 = vmatpush1.bf16.msra.mxu1 %v3794_v41  ;;  %3508 = vmatprep.mubr.f32.mxu1 %v559_v44  ;;  %v3803_v22 = vpack.c.bf16 %v3234_v15, %v3233_v14  ;;  %v3235_v26 = vld [vmem:[%s5484_s1 + $0x1e0] sm:$0xff]  ;;  %v3236_v27 = vld [vmem:[%s5484_s1 + $0x1e8] sm:$0xff]  ;;  %v649_v33 = vld [vmem:[%s5484_s1 + $0xf8] sm:$0xff] }
  0x3c   : > { %3796 = vmatprep.subr.bf16.mxu1 %v5487_v3  ;;  %v4433_v34 = vld [vmem:[#allocation3 + $0x9c] sm:$0xff]  ;;  %v3806_v35 = vpack.c.bf16 %v3236_v27, %v3235_v26  ;;  %v3256_v41 = vld [vmem:[%s5484_s1 + $0x288] sm:$0xff]  ;;  %v3237_v45 = vld [vmem:[%s5484_s1 + $0x1f0] sm:$0xff] }
  0x3d   : > { %3742 = vmatpush1.bf16.msra.mxu0 %v3741_v48  ;;  %v3255_v38 = vld [vmem:[%s5484_s1 + $0x280] sm:$0xff]  ;;  %v4442_v44 = vld [vmem:[#allocation3 + $0xac] sm:$0xff]  ;;  %v3238_v47 = vld [vmem:[%s5484_s1 + $0x1f8] sm:$0xff]  ;;  %v3753_v48 = vpack.c.bf16 %v649_v33, %v648_v30 }
  0x3e   : > { %3509 = vmatmul.mubr.f32.gmra.mrb[6].mxu1 %v560_v57  ;;  %3743 = vmatprep.subr.bf16.mxu0 %v5487_v3  ;;  %v3835_v54 = vpack.c.bf16 %v3256_v41, %v3255_v38  ;;  %v4453_v55 = vld [vmem:[#allocation3 + $0xb4] sm:$0xff]  ;;  %v3809_v57 = vpack.c.bf16 %v3238_v47, %v3237_v45  ;;  %v4462_v0 = vld [vmem:[#allocation3 + $0xc4] sm:$0xff] }
  0x3f   : > { %3798 = vmatpush1.bf16.msra.mxu1 %v3797_v58  ;;  %3511 = vmatprep.mubr.f32.mxu1 %v561_v63  ;;  %v3257_v58 = vld [vmem:[%s5484_s1 + $0x290] sm:$0xff]  ;;  %v3258_v63 = vld [vmem:[%s5484_s1 + $0x298] sm:$0xff]  ;;  %v3239_v1 = vld [vmem:[%s5484_s1 + $0x200] sm:$0xff] }
  0x40   : > { %3799 = vmatprep.subr.bf16.mxu1 %v5487_v3  ;;  %v490_v5 = vld [vmem:[#allocation3 + $0xa] sm:$0xff]  ;;  %v3839_v7 = vpack.c.bf16 %v3258_v63, %v3257_v58  ;;  %v3259_v14 = vld [vmem:[%s5484_s1 + $0x2a0] sm:$0xff]  ;;  %v3242_v20 = vld [vmem:[%s5484_s1 + $0x218] sm:$0xff] }
  0x41   : > { %3745 = vmatpush1.bf16.msra.mxu0 %v3744_v4  ;;  %v3240_v4 = vld [vmem:[%s5484_s1 + $0x208] sm:$0xff]  ;;  %v3241_v18 = vld [vmem:[%s5484_s1 + $0x210] sm:$0xff]  ;;  %v3262_v33 = vld [vmem:[%s5484_s1 + $0x2b8] sm:$0xff] }
  0x42   : > { %3512 = vmatmul.mubr.f32.gmra.mrb[8].mxu1 %v562_v9  ;;  %3746 = vmatprep.subr.bf16.mxu0 %v5487_v3  ;;  %v4472_v9 = vld [vmem:[#allocation3 + $0xcc] sm:$0xff]  ;;  %v4492_v27 = vld [vmem:[#allocation3 + $0xe4] sm:$0xff] }
  0x43   : > { %3801 = vmatpush1.bf16.msra.mxu1 %v3800_v10  ;;  %3514 = vmatprep.mubr.f32.mxu1 %v4397_v13  ;;  %v3812_v10 = vpack.c.bf16 %v3240_v4, %v3239_v1  ;;  %v3260_v15 = vld [vmem:[%s5484_s1 + $0x2a8] sm:$0xff]  ;;  %v3261_v30 = vld [vmem:[%s5484_s1 + $0x2b0] sm:$0xff]  ;;  %v3243_v38 = vld [vmem:[%s5484_s1 + $0x220] sm:$0xff] }
  0x44   : > { %3802 = vmatprep.subr.bf16.mxu1 %v5487_v3  ;;  %v3843_v26 = vpack.c.bf16 %v3260_v15, %v3259_v14  ;;  %v3244_v41 = vld [vmem:[%s5484_s1 + $0x228] sm:$0xff]  ;;  %v3847_v47 = vpack.c.bf16 %v3262_v33, %v3261_v30  ;;  %v3245_v1 = vld [vmem:[%s5484_s1 + $0x230] sm:$0xff]  ;;  %v3246_v4 = vld [vmem:[%s5484_s1 + $0x238] sm:$0xff] }
  0x45   : > { %3748 = vmatpush1.bf16.msra.mxu0 %v3747_v17  ;;  %v4482_v17 = vld [vmem:[#allocation3 + $0xdc] sm:$0xff]  ;;  %v3264_v58 = vld [vmem:[%s5484_s1 + $0x2c8] sm:$0xff]  ;;  %v3821_v14 = vpack.c.bf16 %v3246_v4, %v3245_v1  ;;  %v3265_v15 = vld [vmem:[%s5484_s1 + $0x2d0] sm:$0xff] }
  0x46   : > { %3515 = vmatmul.mubr.f32.gmra.mrb[10].mxu1 %v4413_v21  ;;  %3749 = vmatprep.subr.bf16.mxu0 %v5487_v3  ;;  %v492_v45 = vld [vmem:[#allocation3 + $0x22] sm:$0xff]  ;;  %v4522_v63 = vld [vmem:[#allocation3 + $0x10c] sm:$0xff] }
  0x47   : > { %3804 = vmatpush1.bf16.msra.mxu1 %v3803_v22  ;;  %3517 = vmatprep.mubr.f32.mxu1 %v4416_v25  ;;  %v491_v22 = vld [vmem:[#allocation3 + $0x1a] sm:$0xff]  ;;  %v4558_v30 = vld [vmem:[%s4160_s5 + $0xe8] sm:$0xff]  ;;  %v4585_v1 = vld [vmem:[%s4160_s5 + $0xf0] sm:$0xff] }
  0x48   : > { %3805 = vmatprep.subr.bf16.mxu1 %v5487_v3  ;;  %389 = vst [vmem:[#allocation3 + $0x18a] sm:$0xff] %v4558_v30  ;;  %v4563_v33 = vld [vmem:[#allocation3 + $0x12c] sm:$0xff]  ;;  %390 = vst [vmem:[#allocation3 + $0x19a] sm:$0xff] %v4585_v1 }
  0x49   : > { %3751 = vmatpush1.bf16.msra.mxu0 %v3750_v29  ;;  %v3815_v29 = vpack.c.bf16 %v3242_v20, %v3241_v18  ;;  %v3266_v18 = vld [vmem:[%s5484_s1 + $0x2d8] sm:$0xff]  ;;  %v4546_v20 = vld [vmem:[#allocation3 + $0x124] sm:$0xff]  ;;  %5494 = vst [vmem:[#allocation5_spill] sm:$0xff] %v4563_v33 }
  0x4a   : > { %3518 = vmatmul.mubr.f32.gmra.mrb[12].mxu1 %v4433_v34  ;;  %3752 = vmatprep.subr.bf16.mxu0 %v5487_v3 }
  0x4b   : > { %3807 = vmatpush1.bf16.msra.mxu1 %v3806_v35  ;;  %3520 = vmatprep.mubr.f32.mxu1 %v4442_v44  ;;  %v4502_v35 = vld [vmem:[#allocation3 + $0xf4] sm:$0xff] }
  0x4c   : > { %3808 = vmatprep.subr.bf16.mxu1 %v5487_v3 }
  0x4d   : > { %3754 = vmatpush1.bf16.msra.mxu0 %v3753_v48  ;;  %v4512_v48 = vld [vmem:[#allocation3 + $0xfc] sm:$0xff] }
  0x4e   : > { %3521 = vmatmul.mubr.f32.gmra.mrb[14].mxu1 %v4453_v55  ;;  %3836 = vmatprep.subr.bf16.mxu0 %v3835_v54 }
  0x4f   : > { %3810 = vmatpush1.bf16.msra.mxu1 %v3809_v57  ;;  %3523 = vmatprep.mubr.f32.mxu1 %v4462_v0  ;;  %v3263_v57 = vld [vmem:[%s5484_s1 + $0x2c0] sm:$0xff] }
  0x50   : > { %827 = vmatmul.mubr.f32.vlgmr.msra.gmra.mrb[0].mxu0 %v4003_v8  ;;  %3811 = vmatprep.subr.bf16.mxu1 %v5487_v3 }
  0x51   : > { %831 = vmatprep.mubr.f32.mxu0 %v490_v5  ;;  %3838 = vmatpush3.bf16.msra.mxu0 %v3835_v54  ;;  %v3818_v54 = vpack.c.bf16 %v3244_v41, %v3243_v38  ;;  %v4531_v5 = vld [vmem:[%s4160_s5 + $0xe0] sm:$0xff] }
  0x52   : > { %3524 = vmatmul.mubr.f32.gmra.mrb[16].mxu1 %v4472_v9  ;;  %3840 = vmatprep.subr.bf16.mxu0 %v3839_v7  ;;  %388 = vst [vmem:[#allocation3 + $0x182] sm:$0xff] %v4531_v5  ;;  %v3267_v41 = vld [vmem:[%s5484_s1 + $0x2e0] sm:$0xff] }
  0x53   : > { %3813 = vmatpush1.bf16.msra.mxu1 %v3812_v10  ;;  %3526 = vmatprep.mubr.f32.mxu1 %v4482_v17  ;;  %v4536_v10 = vld [vmem:[#allocation3 + $0x114] sm:$0xff] }
  0x54   : > { %832 = vmatmul.mubr.f32.gmra.mrb[2].mxu0 %v4003_v8  ;;  %3814 = vmatprep.subr.bf16.mxu1 %v5487_v3 }
  0x55   : > { %836 = vmatprep.mubr.f32.mxu0 %v491_v22  ;;  %3842 = vmatpush3.bf16.msra.mxu0 %v3839_v7  ;;  %v3851_v7 = vpack.c.bf16 %v3264_v58, %v3263_v57  ;;  %v3247_v22 = vld [vmem:[%s5484_s1 + $0x240] sm:$0xff]  ;;  %v3250_v57 = vld [vmem:[%s5484_s1 + $0x258] sm:$0xff] }
  0x56   : > { %3527 = vmatmul.mubr.f32.gmra.mrb[18].mxu1 %v4492_v27  ;;  %3844 = vmatprep.subr.bf16.mxu0 %v3843_v26  ;;  %v4582_v58 = vld [vmem:[#allocation3 + $0x38] sm:$0xff] }
  0x57   : > { %3816 = vmatpush1.bf16.msra.mxu1 %v3815_v29  ;;  %3529 = vmatprep.mubr.f32.mxu1 %v4502_v35  ;;  %v4555_v29 = vld [vmem:[#allocation3 + $0x30] sm:$0xff] }
  0x58   : > { %837 = vmatmul.mubr.f32.gmra.mrb[4].mxu0 %v4003_v8  ;;  %3817 = vmatprep.subr.bf16.mxu1 %v5487_v3 }
  0x59   : > { %841 = vmatprep.mubr.f32.mxu0 %v492_v45  ;;  %3846 = vmatpush3.bf16.msra.mxu0 %v3843_v26  ;;  %v3248_v26 = vld [vmem:[%s5484_s1 + $0x248] sm:$0xff] }
  0x5a   : > { %3530 = vmatmul.mubr.f32.gmra.mrb[20].mxu1 %v4512_v48  ;;  %3848 = vmatprep.subr.bf16.mxu0 %v3847_v47  ;;  %v3824_v38 = vpack.c.bf16 %v3248_v26, %v3247_v22  ;;  %v3268_v45 = vld [vmem:[%s5484_s1 + $0x2e8] sm:$0xff]  ;;  %v4600_v22 = vld [vmem:[#allocation3 + $0x154] sm:$0xff]  ;;  %v3251_v26 = vld [vmem:[%s5484_s1 + $0x260] sm:$0xff] }
  0x5b   : > { %3819 = vmatpush1.bf16.msra.mxu1 %v3818_v54  ;;  %3532 = vmatprep.mubr.f32.mxu1 %v4522_v63  ;;  %v3249_v54 = vld [vmem:[%s5484_s1 + $0x250] sm:$0xff]  ;;  %v3859_v4 = vpack.c.bf16 %v3268_v45, %v3267_v41  ;;  %v4609_v41 = vld [vmem:[#allocation3 + $0x48] sm:$0xff]  ;;  %v4612_v45 = vld [vmem:[%s4160_s5 + $0xf8] sm:$0xff] }
  0x5c   : > { %842 = vmatmul.mubr.f32.gmra.mrb[6].mxu0 %v4003_v8  ;;  %3820 = vmatprep.subr.bf16.mxu1 %v5487_v3  ;;  %v3855_v8 = vpack.c.bf16 %v3266_v18, %v3265_v15  ;;  %v3827_v15 = vpack.c.bf16 %v3250_v57, %v3249_v54  ;;  %v3269_v18 = vld [vmem:[%s5484_s1 + $0x2f0] sm:$0xff]  ;;  %391 = vst [vmem:[#allocation3 + $0x1a2] sm:$0xff] %v4612_v45  ;;  %v4617_v57 = vld [vmem:[#allocation3 + $0x15c] sm:$0xff] }
  0x5d   : > { %846 = vmatprep.mubr.f32.mxu0 %v4170_v32  ;;  %3850 = vmatpush3.bf16.msra.mxu0 %v3847_v47  ;;  %v4573_v47 = vld [vmem:[#allocation3 + $0x13c] sm:$0xff]  ;;  %5496 = vst [vmem:[#allocation7_spill] sm:$0xff] %v4617_v57 }
  0x5e   : > { %3533 = vmatmul.mubr.f32.gmra.mrb[22].mxu1 %v4536_v10  ;;  %3852 = vmatprep.subr.bf16.mxu0 %v3851_v7  ;;  %5495 = vst [vmem:[#allocation6_spill] sm:$0xff] %v4573_v47 }
  0x5f   : > { %3822 = vmatpush1.bf16.msra.mxu1 %v3821_v14  ;;  %3535 = vmatprep.mubr.f32.mxu1 %v4546_v20  ;;  %v4590_v14 = vld [vmem:[#allocation3 + $0x144] sm:$0xff] }
  0x60   : > { %847 = vmatmul.mubr.f32.gmra.mrb[8].mxu0 %v4555_v29  ;;  %3823 = vmatprep.subr.bf16.mxu1 %v5487_v3 }
  0x61   : > { %851 = vmatprep.mubr.f32.mxu0 %v4179_v36  ;;  %3854 = vmatpush3.bf16.msra.mxu0 %v3851_v7  ;;  %v3270_v7 = vld [vmem:[%s5484_s1 + $0x2f8] sm:$0xff] }
  0x62   : > { %3536 = vmatmul.mubr.f32.gmra.mrb[24].mxu1 %v4563_v33  ;;  %3856 = vmatprep.subr.bf16.mxu0 %v3855_v8  ;;  %v3863_v54 = vpack.c.bf16 %v3270_v7, %v3269_v18  ;;  %v4621_v33 = vld [vmem:[#allocation3 + $0x16c] sm:$0xff]  ;;  %v3254_v18 = vld [vmem:[%s5484_s1 + $0x278] sm:$0xff] }
  0x63   : > { %3825 = vmatpush1.bf16.msra.mxu1 %v3824_v38  ;;  %3538 = vmatprep.mubr.f32.mxu1 %v4573_v47  ;;  %v3252_v38 = vld [vmem:[%s5484_s1 + $0x268] sm:$0xff]  ;;  %v5497_v47 = vmov 0.0|0.0   ;;  %5498 = vst [vmem:[#allocation8_spill] sm:$0xff] %v4621_v33  ;;  %v4632_v7 = vld [vmem:[#allocation3 + $0x174] sm:$0xff] }
  0x64   : > { %852 = vmatmul.mubr.f32.gmra.mrb[10].mxu0 %v4582_v58  ;;  %3826 = vmatprep.subr.bf16.mxu1 %v5487_v3  ;;  %v3830_v3 = vpack.c.bf16 %v3252_v38, %v3251_v26  ;;  %5499 = vst [vmem:[#allocation9_spill] sm:$0xff] %v4632_v7  ;;  %v3271_v38 = vld [vmem:[%s5484_s1 + $0x300] sm:$0xff] }
  0x65   : > { %856 = vmatprep.mubr.f32.mxu0 %v4191_v39  ;;  %3858 = vmatpush3.bf16.msra.mxu0 %v3855_v8  ;;  %v3253_v8 = vld [vmem:[%s5484_s1 + $0x270] sm:$0xff] }
  0x66   : > { %3539 = vmatmul.mubr.f32.gmra.mrb[26].mxu1 %v4590_v14  ;;  %3860 = vmatprep.subr.bf16.mxu0 %v3859_v4  ;;  %v3833_v26 = vpack.c.bf16 %v3254_v18, %v3253_v8  ;;  %v3304_v8 = vld [vmem:[%s5484_s1 + $0x408] sm:$0xff] }
  0x67   : > { %3828 = vmatpush1.bf16.msra.mxu1 %v3827_v15  ;;  %3541 = vmatprep.mubr.f32.mxu1 %v4600_v22  ;;  %v432_v15 = vld [vmem:[#allocation3 + $0x50] sm:$0xff] }
  0x68   : > { %857 = vmatmul.mubr.f32.gmra.mrb[12].mxu0 %v4609_v41  ;;  %3829 = vmatprep.subr.bf16.mxu1 %v5497_v47 }
  0x69   : > { %861 = vmatprep.mubr.f32.mxu0 %v4194_v40  ;;  %3862 = vmatpush3.bf16.msra.mxu0 %v3859_v4  ;;  %v3272_v4 = vld [vmem:[%s5484_s1 + $0x308] sm:$0xff] }
  0x6a   : > { %3542 = vmatmul.mubr.f32.gmra.mrb[28].mxu1 %v4617_v57  ;;  %3864 = vmatprep.subr.bf16.mxu0 %v3863_v54  ;;  %v4642_v57 = vld [vmem:[#allocation3 + $0x60] sm:$0xff]  ;;  %v3868_v18 = vpack.c.bf16 %v3272_v4, %v3271_v38  ;;  %v3276_v4 = vld [vmem:[%s5484_s1 + $0x328] sm:$0xff] }
  0x6b   : > { %3831 = vmatpush1.bf16.msra.mxu1 %v3830_v3  ;;  %3544 = vmatprep.mubr.f32.mxu1 %v4621_v33  ;;  %v3303_v3 = vld [vmem:[%s5484_s1 + $0x400] sm:$0xff] }
  0x6c   : > { %862 = vmatmul.mubr.f32.gmra.mrb[14].mxu0 %v432_v15  ;;  %3832 = vmatprep.subr.bf16.mxu1 %v5497_v47  ;;  %v4652_v33 = vpack.c.bf16 %v3304_v8, %v3303_v3  ;;  %v3275_v38 = vld [vmem:[%s5484_s1 + $0x320] sm:$0xff]  ;;  %v4677_v3 = vld [vmem:[#allocation3 + $0x78] sm:$0xff] }
  0x6d   : > { %866 = vmatprep.mubr.f32.mxu0 %v4199_v42  ;;  %3866 = vmatpush3.bf16.msra.mxu0 %v3863_v54  ;;  %v3273_v54 = vld [vmem:[%s5484_s1 + $0x310] sm:$0xff]  ;;  %v4690_v8 = vld [vmem:[#allocation3 + $0x80] sm:$0xff] }
  0x6e   : > { %3545 = vmatmul.mubr.f32.gmra.mrb[30].mxu1 %v4632_v7  ;;  %v3274_v7 = vld [vmem:[%s5484_s1 + $0x318] sm:$0xff]  ;;  %3916 = vmatprep.subr.bf16.mxu0 %v4652_v33 }
  0x6f   : > { %3834 = vmatpush1.bf16.msra.mxu1 %v3833_v26  ;;  %1646 = vmatprep.mubr.f32.mxu1 %v4170_v32  ;;  %v4663_v26 = vld [vmem:[#allocation3 + $0x68] sm:$0xff]  ;;  %v3871_v32 = vpack.c.bf16 %v3274_v7, %v3273_v54  ;;  %v3278_v7 = vld [vmem:[%s5484_s1 + $0x338] sm:$0xff]  ;;  %v4703_v54 = vld [vmem:[#allocation3 + $0x90] sm:$0xff] }
  0x70   : > { %867 = vmatmul.mubr.f32.gmra.mrb[16].mxu0 %v4642_v57  ;;  %3867 = vmatprep.subr.bf16.mxu1 %v5497_v47 }
  0x71   : > { %871 = vmatprep.mubr.f32.mxu0 %v4208_v46 }
  0x72   : > { %1647 = vmatmul.mubr.f32.vlgmr.msra.gmra.mrb[32].mxu1 %v4555_v29  ;;  %v3277_v29 = vld [vmem:[%s5484_s1 + $0x330] sm:$0xff] }
  0x73   : > { %3869 = vmatpush1.bf16.msra.mxu1 %v3868_v18  ;;  %1651 = vmatprep.mubr.f32.mxu1 %v4179_v36  ;;  %v3874_v36 = vpack.c.bf16 %v3276_v4, %v3275_v38  ;;  %v3280_v18 = vld [vmem:[%s5484_s1 + $0x348] sm:$0xff]  ;;  %v4715_v38 = vld [vmem:[#allocation3 + $0x98] sm:$0xff] }
  0x74   : > { %872 = vmatmul.mubr.f32.gmra.mrb[18].mxu0 %v4663_v26  ;;  %3870 = vmatprep.subr.bf16.mxu1 %v5497_v47  ;;  %v3284_v4 = vld [vmem:[%s5484_s1 + $0x368] sm:$0xff] }
  0x75   : > { %876 = vmatprep.mubr.f32.mxu0 %v4220_v49 }
  0x76   : > { %1652 = vmatmul.mubr.f32.gmra.mrb[34].mxu1 %v4582_v58  ;;  %v3279_v58 = vld [vmem:[%s5484_s1 + $0x340] sm:$0xff] }
  0x77   : > { %1656 = vmatprep.mubr.f32.mxu1 %v4191_v39  ;;  %3872 = vmatpush1.bf16.msra.mxu1 %v3871_v32  ;;  %v3877_v39 = vpack.c.bf16 %v3278_v7, %v3277_v29  ;;  %v3282_v32 = vld [vmem:[%s5484_s1 + $0x358] sm:$0xff]  ;;  %v3285_v29 = vld [vmem:[%s5484_s1 + $0x370] sm:$0xff] }
  0x78   : > { %877 = vmatmul.mubr.f32.gmra.mrb[20].mxu0 %v4677_v3  ;;  %3873 = vmatprep.subr.bf16.mxu1 %v5497_v47  ;;  %v3286_v7 = vld [vmem:[%s5484_s1 + $0x378] sm:$0xff] }
  0x79   : > { %881 = vmatprep.mubr.f32.mxu0 %v4223_v50 }
  0x7a   : > { %1657 = vmatmul.mubr.f32.gmra.mrb[36].mxu1 %v4609_v41  ;;  %v3281_v41 = vld [vmem:[%s5484_s1 + $0x350] sm:$0xff] }
  0x7b   : > { %1661 = vmatprep.mubr.f32.mxu1 %v4194_v40  ;;  %3875 = vmatpush1.bf16.msra.mxu1 %v3874_v36  ;;  %v3880_v40 = vpack.c.bf16 %v3280_v18, %v3279_v58  ;;  %v4728_v36 = vld [vmem:[#allocation3 + $0xa8] sm:$0xff]  ;;  %v3287_v58 = vld [vmem:[%s5484_s1 + $0x380] sm:$0xff] }
  0x7c   : > { %882 = vmatmul.mubr.f32.gmra.mrb[22].mxu0 %v4690_v8  ;;  %3876 = vmatprep.subr.bf16.mxu1 %v5497_v47  ;;  %v3288_v18 = vld [vmem:[%s5484_s1 + $0x388] sm:$0xff] }
  0x7d   : > { %886 = vmatprep.mubr.f32.mxu0 %v4228_v52 }
  0x7e   : > { %1662 = vmatmul.mubr.f32.gmra.mrb[38].mxu1 %v432_v15  ;;  %v3283_v15 = vld [vmem:[%s5484_s1 + $0x360] sm:$0xff] }
  0x7f   : > { %1666 = vmatprep.mubr.f32.mxu1 %v4199_v42  ;;  %3878 = vmatpush1.bf16.msra.mxu1 %v3877_v39  ;;  %v3883_v42 = vpack.c.bf16 %v3282_v32, %v3281_v41  ;;  %v4741_v39 = vld [vmem:[#allocation3 + $0xb0] sm:$0xff]  ;;  %v3290_v32 = vld [vmem:[%s5484_s1 + $0x398] sm:$0xff] }
  0x80   : > { %887 = vmatmul.mubr.f32.gmra.mrb[24].mxu0 %v4703_v54  ;;  %3879 = vmatprep.subr.bf16.mxu1 %v5497_v47  ;;  %v3289_v41 = vld [vmem:[%s5484_s1 + $0x390] sm:$0xff] }
  0x81   : > { %891 = vmatprep.mubr.f32.mxu0 %v4237_v56 }
  0x82   : > { %1667 = vmatmul.mubr.f32.gmra.mrb[40].mxu1 %v4642_v57 }
  0x83   : > { %1671 = vmatprep.mubr.f32.mxu1 %v4208_v46  ;;  %3881 = vmatpush1.bf16.msra.mxu1 %v3880_v40  ;;  %v3886_v46 = vpack.c.bf16 %v3284_v4, %v3283_v15  ;;  %v4754_v40 = vld [vmem:[#allocation3 + $0xc0] sm:$0xff]  ;;  %v3292_v4 = vld [vmem:[%s5484_s1 + $0x3a8] sm:$0xff] }
  0x84   : > { %892 = vmatmul.mubr.f32.gmra.mrb[26].mxu0 %v4715_v38  ;;  %3882 = vmatprep.subr.bf16.mxu1 %v5497_v47  ;;  %v3291_v15 = vld [vmem:[%s5484_s1 + $0x3a0] sm:$0xff] }
  0x85   : > { %896 = vmatprep.mubr.f32.mxu0 %v4249_v60 }
  0x86   : > { %1672 = vmatmul.mubr.f32.gmra.mrb[42].mxu1 %v4663_v26 }
  0x87   : > { %1676 = vmatprep.mubr.f32.mxu1 %v4220_v49  ;;  %3884 = vmatpush1.bf16.msra.mxu1 %v3883_v42  ;;  %v3889_v49 = vpack.c.bf16 %v3286_v7, %v3285_v29  ;;  %v4767_v42 = vld [vmem:[#allocation3 + $0xc8] sm:$0xff]  ;;  %v3293_v29 = vld [vmem:[%s5484_s1 + $0x3b0] sm:$0xff]  ;;  %v3294_v7 = vld [vmem:[%s5484_s1 + $0x3b8] sm:$0xff] }
  0x88   : > { %897 = vmatmul.mubr.f32.gmra.mrb[28].mxu0 %v4728_v36  ;;  %3885 = vmatprep.subr.bf16.mxu1 %v5497_v47 }
  0x89   : > { %901 = vmatprep.mubr.f32.mxu0 %v4252_v61 }
  0x8a   : > { %1677 = vmatmul.mubr.f32.gmra.mrb[44].mxu1 %v4677_v3 }
  0x8b   : > { %1681 = vmatprep.mubr.f32.mxu1 %v4223_v50  ;;  %3887 = vmatpush1.bf16.msra.mxu1 %v3886_v46  ;;  %v3892_v50 = vpack.c.bf16 %v3288_v18, %v3287_v58  ;;  %v4780_v46 = vld [vmem:[#allocation3 + $0xd8] sm:$0xff]  ;;  %v3295_v58 = vld [vmem:[%s5484_s1 + $0x3c0] sm:$0xff]  ;;  %v3296_v18 = vld [vmem:[%s5484_s1 + $0x3c8] sm:$0xff] }
  0x8c   : > { %902 = vmatmul.mubr.f32.gmra.mrb[30].mxu0 %v4741_v39  ;;  %3888 = vmatprep.subr.bf16.mxu1 %v5497_v47 }
  0x8d   : > { %906 = vmatprep.mubr.f32.mxu0 %v4264_v2 }
  0x8e   : > { %1682 = vmatmul.mubr.f32.gmra.mrb[46].mxu1 %v4690_v8 }
  0x8f   : > { %1686 = vmatprep.mubr.f32.mxu1 %v4228_v52  ;;  %3890 = vmatpush1.bf16.msra.mxu1 %v3889_v49  ;;  %v3895_v52 = vpack.c.bf16 %v3290_v32, %v3289_v41  ;;  %v4793_v49 = vld [vmem:[#allocation3 + $0xe0] sm:$0xff]  ;;  %v3297_v41 = vld [vmem:[%s5484_s1 + $0x3d0] sm:$0xff]  ;;  %v3298_v32 = vld [vmem:[%s5484_s1 + $0x3d8] sm:$0xff] }
  0x90   : > { %907 = vmatmul.mubr.f32.gmra.mrb[32].mxu0 %v4754_v40  ;;  %3891 = vmatprep.subr.bf16.mxu1 %v5497_v47 }
  0x91   : > { %911 = vmatprep.mubr.f32.mxu0 %v4273_v6 }
  0x92   : > { %1687 = vmatmul.mubr.f32.gmra.mrb[48].mxu1 %v4703_v54 }
  0x93   : > { %1691 = vmatprep.mubr.f32.mxu1 %v4237_v56  ;;  %3893 = vmatpush1.bf16.msra.mxu1 %v3892_v50  ;;  %v3898_v56 = vpack.c.bf16 %v3292_v4, %v3291_v15  ;;  %v4806_v50 = vld [vmem:[#allocation3 + $0xf0] sm:$0xff]  ;;  %v3299_v15 = vld [vmem:[%s5484_s1 + $0x3e0] sm:$0xff]  ;;  %v3300_v4 = vld [vmem:[%s5484_s1 + $0x3e8] sm:$0xff] }
  0x94   : > { %912 = vmatmul.mubr.f32.gmra.mrb[34].mxu0 %v4767_v42  ;;  %3894 = vmatprep.subr.bf16.mxu1 %v5497_v47 }
  0x95   : > { %916 = vmatprep.mubr.f32.mxu0 %v4285_v11 }
  0x96   : > { %1692 = vmatmul.mubr.f32.gmra.mrb[50].mxu1 %v4715_v38 }
  0x97   : > { %1696 = vmatprep.mubr.f32.mxu1 %v4249_v60  ;;  %3896 = vmatpush1.bf16.msra.mxu1 %v3895_v52  ;;  %v3901_v60 = vpack.c.bf16 %v3294_v7, %v3293_v29  ;;  %v4819_v52 = vld [vmem:[#allocation3 + $0xf8] sm:$0xff]  ;;  %v3301_v29 = vld [vmem:[%s5484_s1 + $0x3f0] sm:$0xff] }
  0x98   : > { %917 = vmatmul.mubr.f32.gmra.mrb[36].mxu0 %v4780_v46  ;;  %3897 = vmatprep.subr.bf16.mxu1 %v5497_v47  ;;  %v3302_v7 = vld [vmem:[%s5484_s1 + $0x3f8] sm:$0xff] }
  0x99   : > { %921 = vmatprep.mubr.f32.mxu0 %v4288_v12 }
  0x9a   : > { %1697 = vmatmul.mubr.f32.gmra.mrb[52].mxu1 %v4728_v36 }
  0x9b   : > { %1701 = vmatprep.mubr.f32.mxu1 %v4252_v61  ;;  %3899 = vmatpush1.bf16.msra.mxu1 %v3898_v56  ;;  %v3904_v61 = vpack.c.bf16 %v3296_v18, %v3295_v58  ;;  %v4832_v56 = vld [vmem:[#allocation3 + $0x108] sm:$0xff]  ;;  %v4852_v58 = vld [vmem:[#allocation3 + $0x120] sm:$0xff]  ;;  %v1372_v18 = vld [vmem:[#allocation3 + $0x34] sm:$0xff] }
  0x9c   : > { %922 = vmatmul.mubr.f32.gmra.mrb[38].mxu0 %v4793_v49  ;;  %3900 = vmatprep.subr.bf16.mxu1 %v5497_v47 }
  0x9d   : > { %926 = vmatprep.mubr.f32.mxu0 %v4293_v16 }
  0x9e   : > { %1702 = vmatmul.mubr.f32.gmra.mrb[54].mxu1 %v4741_v39 }
  0x9f   : > { %1706 = vmatprep.mubr.f32.mxu1 %v4264_v2  ;;  %3902 = vmatpush1.bf16.msra.mxu1 %v3901_v60  ;;  %v3907_v2 = vpack.c.bf16 %v3298_v32, %v3297_v41  ;;  %v4845_v60 = vld [vmem:[#allocation3 + $0x110] sm:$0xff] }
  0xa0   : > { %927 = vmatmul.mubr.f32.gmra.mrb[40].mxu0 %v4806_v50  ;;  %3903 = vmatprep.subr.bf16.mxu1 %v5497_v47  ;;  %v1374_v41 = vld [vmem:[#allocation3 + $0x4c] sm:$0xff] }
  0xa1   : > { %931 = vmatprep.mubr.f32.mxu0 %v4303_v19 }
  0xa2   : > { %1707 = vmatmul.mubr.f32.gmra.mrb[56].mxu1 %v4754_v40 }
  0xa3   : > { %1711 = vmatprep.mubr.f32.mxu1 %v4273_v6  ;;  %3905 = vmatpush1.bf16.msra.mxu1 %v3904_v61  ;;  %v3910_v6 = vpack.c.bf16 %v3300_v4, %v3299_v15  ;;  %v3306_v61 = vld [vmem:[%s5484_s1 + $0x418] sm:$0xff]  ;;  %v4915_v4 = vld [vmem:[#allocation3 + $0x64] sm:$0xff] }
  0xa4   : > { %932 = vmatmul.mubr.f32.gmra.mrb[42].mxu0 %v4819_v52  ;;  %3906 = vmatprep.subr.bf16.mxu1 %v5497_v47  ;;  %v1375_v15 = vld [vmem:[#allocation3 + $0x54] sm:$0xff] }
  0xa5   : > { %936 = vmatprep.mubr.f32.mxu0 %v4315_v23 }
  0xa6   : > { %1712 = vmatmul.mubr.f32.gmra.mrb[58].mxu1 %v4767_v42 }
  0xa7   : > { %1716 = vmatprep.mubr.f32.mxu1 %v4285_v11  ;;  %3908 = vmatpush1.bf16.msra.mxu1 %v3907_v2  ;;  %v3913_v11 = vpack.c.bf16 %v3302_v7, %v3301_v29  ;;  %v3308_v2 = vld [vmem:[%s5484_s1 + $0x428] sm:$0xff]  ;;  %v3310_v29 = vld [vmem:[%s5484_s1 + $0x438] sm:$0xff] }
  0xa8   : > { %937 = vmatmul.mubr.f32.gmra.mrb[44].mxu0 %v4832_v56  ;;  %3909 = vmatprep.subr.bf16.mxu1 %v5497_v47 }
  0xa9   : > { %941 = vmatprep.mubr.f32.mxu0 %v4318_v24 }
  0xaa   : > { %1717 = vmatmul.mubr.f32.gmra.mrb[60].mxu1 %v4780_v46 }
  0xab   : > { %1721 = vmatprep.mubr.f32.mxu1 %v4288_v12  ;;  %3911 = vmatpush1.bf16.msra.mxu1 %v3910_v6  ;;  %v4858_v12 = vld [vmem:[#allocation3 + $0x128] sm:$0xff] }
  0xac   : > { %942 = vmatmul.mubr.f32.gmra.mrb[46].mxu0 %v4845_v60  ;;  %3912 = vmatprep.subr.bf16.mxu1 %v5497_v47  ;;  %v4864_v47 = vld [vmem:[#allocation3 + $0x138] sm:$0xff] }
  0xad   : > { %946 = vmatprep.mubr.f32.mxu0 %v4326_v28 }
  0xae   : > { %1722 = vmatmul.mubr.f32.gmra.mrb[62].mxu1 %v4793_v49 }
  0xaf   : > { %1726 = vmatprep.mubr.f32.mxu1 %v4293_v16  ;;  %3914 = vmatpush1.bf16.msra.mxu1 %v3913_v11  ;;  %v4870_v16 = vld [vmem:[#allocation3 + $0x140] sm:$0xff]  ;;  %v3312_v11 = vld [vmem:[%s5484_s1 + $0x448] sm:$0xff] }
  0xb0   : > { %947 = vmatmul.mubr.f32.gmra.mrb[48].mxu0 %v4852_v58 }
  0xb1   : > { %951 = vmatprep.mubr.f32.mxu0 %v4333_v31 }
  0xb2   : > { %1727 = vmatmul.mubr.f32.gmra.mrb[64].mxu1 %v4806_v50 }
  0xb3   : > { %1731 = vmatprep.mubr.f32.mxu1 %v4303_v19  ;;  %v4876_v19 = vld [vmem:[#allocation3 + $0x150] sm:$0xff] }
  0xb4   : > { %952 = vmatmul.mubr.f32.gmra.mrb[50].mxu0 %v4858_v12 }
  0xb5   : > { %956 = vmatprep.mubr.f32.mxu0 %v4345_v37 }
  0xb6   : > { %1732 = vmatmul.mubr.f32.gmra.mrb[66].mxu1 %v4819_v52 }
  0xb7   : > { %1736 = vmatprep.mubr.f32.mxu1 %v4315_v23  ;;  %v4882_v23 = vld [vmem:[#allocation3 + $0x158] sm:$0xff] }
  0xb8   : > { %957 = vmatmul.mubr.f32.gmra.mrb[52].mxu0 %v4864_v47 }
  0xb9   : > { %961 = vmatprep.mubr.f32.mxu0 %v4348_v43 }
  0xba   : > { %1737 = vmatmul.mubr.f32.gmra.mrb[68].mxu1 %v4832_v56 }
  0xbb   : > { %1741 = vmatprep.mubr.f32.mxu1 %v4318_v24  ;;  %v4888_v24 = vld [vmem:[#allocation3 + $0x168] sm:$0xff] }
  0xbc   : > { %962 = vmatmul.mubr.f32.gmra.mrb[54].mxu0 %v4870_v16 }
  0xbd   : > { %966 = vmatprep.mubr.f32.mxu0 %v4360_v51 }
  0xbe   : > { %1742 = vmatmul.mubr.f32.gmra.mrb[70].mxu1 %v4845_v60 }
  0xbf   : > { %1746 = vmatprep.mubr.f32.mxu1 %v4326_v28  ;;  %v4894_v28 = vld [vmem:[#allocation3 + $0x170] sm:$0xff] }
  0xc0   : > { %967 = vmatmul.mubr.f32.gmra.mrb[56].mxu0 %v4876_v19 }
  0xc1   : > { %971 = vmatprep.mubr.f32.mxu0 %v4363_v53 }
  0xc2   : > { %1747 = vmatmul.mubr.f32.gmra.mrb[72].mxu1 %v4852_v58 }
  0xc3   : > { %1751 = vmatprep.mubr.f32.mxu1 %v4333_v31  ;;  %v3305_v31 = vld [vmem:[%s5484_s1 + $0x410] sm:$0xff] }
  0xc4   : > { %972 = vmatmul.mubr.f32.gmra.mrb[58].mxu0 %v4882_v23  ;;  %v3919_v32 = vpack.c.bf16 %v3306_v61, %v3305_v31  ;;  %v3314_v31 = vld [vmem:[%s5484_s1 + $0x458] sm:$0xff]  ;;  %v3315_v61 = vld [vmem:[%s5484_s1 + $0x460] sm:$0xff] }
  0xc5   : > { %976 = vmatprep.mubr.f32.mxu0 %v4375_v59 }
  0xc6   : > { %1752 = vmatmul.mubr.f32.gmra.mrb[74].mxu1 %v4858_v12 }
  0xc7   : > { %1756 = vmatprep.mubr.f32.mxu1 %v4345_v37  ;;  %v1373_v37 = vld [vmem:[#allocation3 + $0x3c] sm:$0xff] }
  0xc8   : > { %977 = vmatmul.mubr.f32.gmra.mrb[60].mxu0 %v4888_v24 }
  0xc9   : > { %981 = vmatprep.mubr.f32.mxu0 %v4378_v62 }
  0xca   : > { %1757 = vmatmul.mubr.f32.gmra.mrb[76].mxu1 %v4864_v47 }
  0xcb   : > { %1761 = vmatprep.mubr.f32.mxu1 %v4348_v43  ;;  %v3307_v43 = vld [vmem:[%s5484_s1 + $0x420] sm:$0xff] }
  0xcc   : > { %982 = vmatmul.mubr.f32.gmra.mrb[62].mxu0 %v4894_v28  ;;  %v3923_v6 = vpack.c.bf16 %v3308_v2, %v3307_v43 }
  0xcd   : > { %3579 = vmatprep.mubr.f32.mxu0 %v1372_v18 }
  0xce   : > { %1762 = vmatmul.mubr.f32.gmra.mrb[78].mxu1 %v4870_v16 }
  0xcf   : > { %1766 = vmatprep.mubr.f32.mxu1 %v4360_v51  ;;  %v3309_v51 = vld [vmem:[%s5484_s1 + $0x430] sm:$0xff] }
  0xd0   : > { %3580 = vmatmul.mubr.f32.vlgmr.msra.gmra.mrb[64].mxu0 %v1373_v37  ;;  %v3927_v7 = vpack.c.bf16 %v3310_v29, %v3309_v51  ;;  %v3316_v37 = vld [vmem:[%s5484_s1 + $0x468] sm:$0xff] }
  0xd1   : > { %3582 = vmatprep.mubr.f32.mxu0 %v1374_v41  ;;  %3918 = vmatpush3.bf16.msra.mxu0 %v4652_v33  ;;  %v4925_v33 = vld [vmem:[#allocation3 + $0x6c] sm:$0xff]  ;;  %v3318_v41 = vld [vmem:[%s5484_s1 + $0x478] sm:$0xff] }
  0xd2   : > { %1767 = vmatmul.mubr.f32.gmra.mrb[80].mxu1 %v4876_v19  ;;  %3920 = vmatprep.subr.bf16.mxu0 %v3919_v32  ;;  %v2138_v51 = vld [vmem:[#allocation3 + $0xca] sm:$0xff] }
  0xd3   : > { %1771 = vmatprep.mubr.f32.mxu1 %v4363_v53  ;;  %v3311_v53 = vld [vmem:[%s5484_s1 + $0x440] sm:$0xff] }
  0xd4   : > { %3583 = vmatmul.mubr.f32.gmra.mrb[66].mxu0 %v1375_v15  ;;  %v3931_v18 = vpack.c.bf16 %v3312_v11, %v3311_v53  ;;  %v2197_v53 = vld [vmem:[#allocation3 + $0x94] sm:$0xff] }
  0xd5   : > { %3585 = vmatprep.mubr.f32.mxu0 %v4915_v4  ;;  %3922 = vmatpush3.bf16.msra.mxu0 %v3919_v32  ;;  %v5016_v32 = vld [vmem:[#allocation3 + $0x1a4] sm:$0xff] }
  0xd6   : > { %1772 = vmatmul.mubr.f32.gmra.mrb[82].mxu1 %v4882_v23  ;;  %3924 = vmatprep.subr.bf16.mxu0 %v3923_v6 }
  0xd7   : > { %1776 = vmatprep.mubr.f32.mxu1 %v4375_v59  ;;  %v3313_v59 = vld [vmem:[%s5484_s1 + $0x450] sm:$0xff] }
  0xd8   : > { %3586 = vmatmul.mubr.f32.gmra.mrb[68].mxu0 %v4925_v33 }
  0xd9   : > { %3588 = vmatprep.mubr.f32.mxu0 %v4397_v13  ;;  %3926 = vmatpush3.bf16.msra.mxu0 %v3923_v6  ;;  %v3935_v13 = vpack.c.bf16 %v3314_v31, %v3313_v59  ;;  %v2195_v6 = vld [vmem:[#allocation3 + $0x7c] sm:$0xff] }
  0xda   : > { %1777 = vmatmul.mubr.f32.gmra.mrb[84].mxu1 %v4888_v24  ;;  %3928 = vmatprep.subr.bf16.mxu0 %v3927_v7  ;;  %v2140_v59 = vld [vmem:[#allocation3 + $0xe2] sm:$0xff] }
  0xdb   : > { %1781 = vmatprep.mubr.f32.mxu1 %v4378_v62  ;;  %v4949_v62 = vld [vmem:[#allocation3 + $0x180] sm:$0xff] }
  0xdc   : > { %3589 = vmatmul.mubr.f32.gmra.mrb[70].mxu0 %v4413_v21  ;;  %v3939_v21 = vpack.c.bf16 %v3316_v37, %v3315_v61  ;;  %v2201_v61 = vld [vmem:[#allocation3 + $0xc4] sm:$0xff]  ;;  %v2141_v37 = vld [vmem:[#allocation3 + $0xf2] sm:$0xff] }
  0xdd   : > { %3591 = vmatprep.mubr.f32.mxu0 %v4416_v25  ;;  %3930 = vmatpush3.bf16.msra.mxu0 %v3927_v7  ;;  %v4961_v25 = vld [vmem:[#allocation3 + $0x188] sm:$0xff] }
  0xde   : > { %1782 = vmatmul.mubr.f32.gmra.mrb[86].mxu1 %v4894_v28  ;;  %3932 = vmatprep.subr.bf16.mxu0 %v3931_v18 }
  0xdf   : > { %1786 = vmatprep.mubr.f32.mxu1 %v4531_v5  ;;  %v3317_v5 = vld [vmem:[%s5484_s1 + $0x470] sm:$0xff] }
  0xe0   : > { %3592 = vmatmul.mubr.f32.gmra.mrb[72].mxu0 %v4433_v34  ;;  %v3943_v34 = vpack.c.bf16 %v3318_v41, %v3317_v5  ;;  %v2203_v41 = vld [vmem:[#allocation3 + $0xdc] sm:$0xff] }
  0xe1   : > { %3594 = vmatprep.mubr.f32.mxu0 %v4442_v44  ;;  %3934 = vmatpush3.bf16.msra.mxu0 %v3931_v18  ;;  %v4973_v44 = vld [vmem:[#allocation3 + $0x198] sm:$0xff] }
  0xe2   : > { %1787 = vmatmul.mubr.f32.gmra.mrb[88].mxu1 %v4949_v62  ;;  %3936 = vmatprep.subr.bf16.mxu0 %v3935_v13 }
  0xe3   : > { %1791 = vmatprep.mubr.f32.mxu1 %v4558_v30  ;;  %v5501_v30 = vld [vmem:[#allocation6_spill] sm:$0xff] }
  0xe4   : > { %3595 = vmatmul.mubr.f32.gmra.mrb[74].mxu0 %v4453_v55  ;;  %v4979_v55 = vld [vmem:[#allocation3 + $0x1a0] sm:$0xff] }
  0xe5   : > { %3597 = vmatprep.mubr.f32.mxu0 %v4462_v0  ;;  %3938 = vmatpush3.bf16.msra.mxu0 %v3935_v13  ;;  %v2129_v0 = vld [vmem:[#allocation3 + $0x62] sm:$0xff] }
  0xe6   : > { %1792 = vmatmul.mubr.f32.gmra.mrb[90].mxu1 %v4961_v25  ;;  %3940 = vmatprep.subr.bf16.mxu0 %v3939_v21 }
  0xe7   : > { %1796 = vmatprep.mubr.f32.mxu1 %v4585_v1  ;;  %v4999_v1 = vld [vmem:[#allocation3 + $0x184] sm:$0xff] }
  0xe8   : > { %3598 = vmatmul.mubr.f32.gmra.mrb[76].mxu0 %v4472_v9  ;;  %v2130_v9 = vld [vmem:[#allocation3 + $0x6a] sm:$0xff] }
  0xe9   : > { %3600 = vmatprep.mubr.f32.mxu0 %v4482_v17  ;;  %3942 = vmatpush3.bf16.msra.mxu0 %v3939_v21  ;;  %v2131_v17 = vld [vmem:[#allocation3 + $0x7a] sm:$0xff] }
  0xea   : > { %1797 = vmatmul.mubr.f32.gmra.mrb[92].mxu1 %v4973_v44  ;;  %3944 = vmatprep.subr.bf16.mxu0 %v3943_v34 }
  0xeb   : > { %1801 = vmatprep.mubr.f32.mxu1 %v4612_v45  ;;  %v5504_v45 = vld [vmem:[#allocation9_spill] sm:$0xff] }
  0xec   : > { %3601 = vmatmul.mubr.f32.gmra.mrb[78].mxu0 %v4492_v27  ;;  %v5500_v27 = vld [vmem:[#allocation5_spill] sm:$0xff] }
  0xed   : > { %3603 = vmatprep.mubr.f32.mxu0 %v4502_v35  ;;  %3946 = vmatpush3.bf16.msra.mxu0 %v3943_v34  ;;  %v2132_v35 = vld [vmem:[#allocation3 + $0x82] sm:$0xff]  ;;  %v2142_v34 = vld [vmem:[#allocation3 + $0xfa] sm:$0xff] }
  0xee   : > { %1802 = vmatmul.mubr.f32.gmra.mrb[94].mxu1 %v4979_v55 }
  0xef   : > { %2467 = vmatprep.mubr.f32.mxu1 %v2129_v0 }
  0xf0   : > { %3604 = vmatmul.mubr.f32.gmra.mrb[80].mxu0 %v4512_v48  ;;  %v2133_v48 = vld [vmem:[#allocation3 + $0x92] sm:$0xff] }
  0xf1   : > { %3606 = vmatprep.mubr.f32.mxu0 %v4522_v63  ;;  %v5502_v63 = vld [vmem:[#allocation7_spill] sm:$0xff] }
  0xf2   : > { %2468 = vmatmul.mubr.f32.vlgmr.msra.gmra.mrb[96].mxu1 %v4642_v57  ;;  %v2135_v57 = vld [vmem:[#allocation3 + $0xaa] sm:$0xff] }
  0xf3   : > { %2472 = vmatprep.mubr.f32.mxu1 %v2130_v9 }
  0xf4   : > { %3607 = vmatmul.mubr.f32.gmra.mrb[82].mxu0 %v4536_v10  ;;  %v2134_v10 = vld [vmem:[#allocation3 + $0x9a] sm:$0xff] }
  0xf5   : > { %3609 = vmatprep.mubr.f32.mxu0 %v4546_v20  ;;  %v5503_v20 = vld [vmem:[#allocation8_spill] sm:$0xff] }
  0xf6   : > { %2473 = vmatmul.mubr.f32.gmra.mrb[98].mxu1 %v4663_v26 }
  0xf7   : > { %2477 = vmatprep.mubr.f32.mxu1 %v2131_v17  ;;  %v2205_v17 = vld [vmem:[#allocation3 + $0xf4] sm:$0xff] }
  0xf8   : > { %3610 = vmatmul.mubr.f32.gmra.mrb[84].mxu0 %v5500_v27 }
  0xf9   : > { %3612 = vmatprep.mubr.f32.mxu0 %v5501_v30  ;;  %v2143_v30 = vld [vmem:[#allocation3 + $0x10a] sm:$0xff] }
  0xfa   : > { %2478 = vmatmul.mubr.f32.gmra.mrb[100].mxu1 %v4677_v3  ;;  %v5010_v3 = vld [vmem:[#allocation3 + $0x19c] sm:$0xff] }
  0xfb   : > { %2482 = vmatprep.mubr.f32.mxu1 %v2132_v35 }
  0xfc   : > { %3613 = vmatmul.mubr.f32.gmra.mrb[86].mxu0 %v4590_v14 }
  0xfd   : > { %3615 = vmatprep.mubr.f32.mxu0 %v4600_v22  ;;  %v5005_v22 = vld [vmem:[#allocation3 + $0x18c] sm:$0xff] }
  0xfe   : > { %2483 = vmatmul.mubr.f32.gmra.mrb[102].mxu1 %v4690_v8  ;;  %v2136_v8 = vld [vmem:[#allocation3 + $0xb2] sm:$0xff] }
  0xff   : > { %2487 = vmatprep.mubr.f32.mxu1 %v2133_v48 }
 0x100   : > { %3616 = vmatmul.mubr.f32.gmra.mrb[88].mxu0 %v5502_v63  ;;  %v2206_v63 = vld [vmem:[#allocation3 + $0xfc] sm:$0xff] }
 0x101   : > { %3618 = vmatprep.mubr.f32.mxu0 %v5503_v20  ;;  %v2207_v20 = vld [vmem:[#allocation3 + $0x10c] sm:$0xff] }
 0x102   : > { %2488 = vmatmul.mubr.f32.gmra.mrb[104].mxu1 %v4703_v54 }
 0x103   : > { %2492 = vmatprep.mubr.f32.mxu1 %v2134_v10 }
 0x104   : > { %3619 = vmatmul.mubr.f32.gmra.mrb[90].mxu0 %v5504_v45 }
 0x105   : > { %v5002_v14 = vpop.f32.mrb[0].mxu1  ;;  %3621 = vmatprep.mubr.f32.mxu0 %v4999_v1 }
 0x106   : > { %v5007_v26 = vpop.f32.mrb[1].mxu1  ;;  %2493 = vmatmul.mubr.f32.gmra.mrb[106].mxu1 %v4715_v38  ;;  %v2137_v38 = vld [vmem:[#allocation3 + $0xc2] sm:$0xff] }
 0x107   : > { %2497 = vmatprep.mubr.f32.mxu1 %v2135_v57 }
 0x108   : > { %3622 = vmatmul.mubr.f32.gmra.mrb[92].mxu0 %v5005_v22 }
 0x109   : > { %v5013_v54 = vpop.f32.mrb[2].mxu1  ;;  %3624 = vmatprep.mubr.f32.mxu0 %v5010_v3 }
 0x10a   : > { %v5018_v43 = vpop.f32.mrb[3].mxu1  ;;  %2498 = vmatmul.mubr.f32.gmra.mrb[108].mxu1 %v4728_v36  ;;  %v2196_v36 = vld [vmem:[#allocation3 + $0x84] sm:$0xff] }
 0x10b   : > { %2502 = vmatprep.mubr.f32.mxu1 %v2136_v8 }
 0x10c   : > { %3625 = vmatmul.mubr.f32.gmra.mrb[94].mxu0 %v5016_v32 }
 0x10d   : > { %v5022_v2 = vpop.f32.mrb[4].mxu1  ;;  %3659 = vmatprep.mubr.f32.mxu0 %v4915_v4  ;;  %v2139_v4 = vld [vmem:[#allocation3 + $0xda] sm:$0xff] }
 0x10e   : > { %v5025_v15 = vpop.f32.mrb[5].mxu1  ;;  %2503 = vmatmul.mubr.f32.gmra.mrb[110].mxu1 %v4741_v39  ;;  %v2198_v39 = vld [vmem:[#allocation3 + $0x9c] sm:$0xff] }
 0x10f   : > { %2507 = vmatprep.mubr.f32.mxu1 %v2137_v38  ;;  %v2208_v38 = vld [vmem:[#allocation3 + $0x114] sm:$0xff] }
 0x110   : > { %3660 = vmatmul.mubr.f32.vlgmr.msra.gmra.mrb[96].mxu0 %v4925_v33  ;;  %v2199_v33 = vld [vmem:[#allocation3 + $0xac] sm:$0xff] }
 0x111   : > { %v5029_v29 = vpop.f32.mrb[6].mxu1  ;;  %3662 = vmatprep.mubr.f32.mxu0 %v2195_v6 }
 0x112   : > { %v5031_v7 = vpop.f32.mrb[7].mxu1  ;;  %2508 = vmatmul.mubr.f32.gmra.mrb[112].mxu1 %v4754_v40  ;;  %v2200_v40 = vld [vmem:[#allocation3 + $0xb4] sm:$0xff] }
 0x113   : > { %2512 = vmatprep.mubr.f32.mxu1 %v2138_v51  ;;  %v2209_v51 = vld [vmem:[#allocation3 + $0x124] sm:$0xff] }
 0x114   : > { %3663 = vmatmul.mubr.f32.gmra.mrb[98].mxu0 %v2196_v36 }
 0x115   : > { %v5034_v11 = vpop.f32.mrb[8].mxu1  ;;  %3665 = vmatprep.mubr.f32.mxu0 %v2197_v53  ;;  %v2145_v53 = vld [vmem:[#allocation3 + $0x122] sm:$0xff] }
 0x116   : > { %v5036_v18 = vpop.f32.mrb[9].mxu1  ;;  %2513 = vmatmul.mubr.f32.gmra.mrb[114].mxu1 %v4767_v42  ;;  %v2202_v42 = vld [vmem:[#allocation3 + $0xcc] sm:$0xff] }
 0x117   : > { %2517 = vmatprep.mubr.f32.mxu1 %v2139_v4 }
 0x118   : > { %3666 = vmatmul.mubr.f32.gmra.mrb[100].mxu0 %v2198_v39  ;;  %v2210_v39 = vld [vmem:[#allocation3 + $0x12c] sm:$0xff] }
 0x119   : > { %v5039_v31 = vpop.f32.mrb[10].mxu1  ;;  %3668 = vmatprep.mubr.f32.mxu0 %v2199_v33 }
 0x11a   : > { %v5041_v13 = vpop.f32.mrb[11].mxu1  ;;  %2518 = vmatmul.mubr.f32.gmra.mrb[116].mxu1 %v4780_v46  ;;  %v2204_v46 = vld [vmem:[#allocation3 + $0xe4] sm:$0xff] }
 0x11b   : > { %2522 = vmatprep.mubr.f32.mxu1 %v2140_v59  ;;  %v2211_v59 = vld [vmem:[#allocation3 + $0x13c] sm:$0xff] }
 0x11c   : > { %3669 = vmatmul.mubr.f32.gmra.mrb[102].mxu0 %v2200_v40 }
 0x11d   : > { %v5044_v21 = vpop.f32.mrb[12].mxu1  ;;  %3671 = vmatprep.mubr.f32.mxu0 %v2201_v61  ;;  %v2146_v61 = vld [vmem:[#allocation3 + $0x12a] sm:$0xff] }
 0x11e   : > { %v5046_v5 = vpop.f32.mrb[13].mxu1  ;;  %2523 = vmatmul.mubr.f32.gmra.mrb[118].mxu1 %v4793_v49 }
 0x11f   : > { %2527 = vmatprep.mubr.f32.mxu1 %v2141_v37 }
 0x120   : > { %3672 = vmatmul.mubr.f32.gmra.mrb[104].mxu0 %v2202_v42  ;;  %v2212_v42 = vld [vmem:[#allocation3 + $0x144] sm:$0xff] }
 0x121   : > { %v5049_v0 = vpop.f32.mrb[14].mxu1  ;;  %3674 = vmatprep.mubr.f32.mxu0 %v2203_v41 }
 0x122   : > { %v5051_v9 = vpop.f32.mrb[15].mxu1  ;;  %2528 = vmatmul.mubr.f32.gmra.mrb[120].mxu1 %v4806_v50 }
 0x123   : > { %v828_v27 = vpop.f32.mrb[0].mxu0  ;;  %2532 = vmatprep.mubr.f32.mxu1 %v2142_v34  ;;  %v2213_v34 = vld [vmem:[#allocation3 + $0x154] sm:$0xff] }
 0x124   : > { %v5055_v35 = vadd.f32 %v5007_v26, %v828_v27  ;;  %3675 = vmatmul.mubr.f32.gmra.mrb[106].mxu0 %v2204_v46  ;;  %v830_v49 = vpop.f32.mrb[1].mxu0  ;;  %v2144_v26 = vld [vmem:[#allocation3 + $0x112] sm:$0xff] }
 0x125   : > { %v5057_v48 = vpop.f32.mrb[16].mxu1  ;;  %3677 = vmatprep.mubr.f32.mxu0 %v2205_v17  ;;  %v2214_v49 = vld [vmem:[#allocation3 + $0x15c] sm:$0xff] }
 0x126   : > { %v5059_v10 = vpop.f32.mrb[17].mxu1  ;;  %2533 = vmatmul.mubr.f32.gmra.mrb[122].mxu1 %v4819_v52 }
 0x127   : > { %v833_v45 = vpop.f32.mrb[2].mxu0  ;;  %2537 = vmatprep.mubr.f32.mxu1 %v2143_v30 }
 0x128   : > { %v5063_v50 = vadd.f32 %v5002_v14, %v833_v45  ;;  %3678 = vmatmul.mubr.f32.gmra.mrb[108].mxu0 %v2206_v63  ;;  %v835_v57 = vpop.f32.mrb[3].mxu0  ;;  %v2215_v63 = vld [vmem:[#allocation3 + $0x16c] sm:$0xff] }
 0x129   : > { %v5065_v8 = vpop.f32.mrb[18].mxu1  ;;  %3680 = vmatprep.mubr.f32.mxu0 %v2207_v20 }
 0x12a   : > { %v5067_v6 = vpop.f32.mrb[19].mxu1  ;;  %2538 = vmatmul.mubr.f32.gmra.mrb[124].mxu1 %v4832_v56 }
 0x12b   : > { %v838_v36 = vpop.f32.mrb[4].mxu0  ;;  %2542 = vmatprep.mubr.f32.mxu1 %v2144_v26  ;;  %v2216_v26 = vld [vmem:[#allocation3 + $0x174] sm:$0xff] }
 0x12c   : > { %v5071_v52 = vadd.f32 %v5018_v43, %v838_v36  ;;  %3681 = vmatmul.mubr.f32.gmra.mrb[110].mxu0 %v2208_v38  ;;  %v840_v14 = vpop.f32.mrb[5].mxu0 }
 0x12d   : > { %v5073_v4 = vpop.f32.mrb[20].mxu1  ;;  %3683 = vmatprep.mubr.f32.mxu0 %v2209_v51  ;;  %v2149_v14 = vld [vmem:[#allocation3 + $0x152] sm:$0xff] }
 0x12e   : > { %v5075_v33 = vpop.f32.mrb[21].mxu1  ;;  %2543 = vmatmul.mubr.f32.gmra.mrb[126].mxu1 %v4845_v60 }
 0x12f   : > { %v843_v40 = vpop.f32.mrb[6].mxu0  ;;  %2547 = vmatprep.mubr.f32.mxu1 %v2145_v53 }
 0x130   : > { %v5079_v56 = vadd.f32 %v5013_v54, %v843_v40  ;;  %3684 = vmatmul.mubr.f32.gmra.mrb[112].mxu0 %v2210_v39  ;;  %v845_v43 = vpop.f32.mrb[7].mxu0  ;;  %v2147_v54 = vld [vmem:[#allocation3 + $0x13a] sm:$0xff] }
 0x131   : > { %v5081_v37 = vpop.f32.mrb[22].mxu1  ;;  %3686 = vmatprep.mubr.f32.mxu0 %v2211_v59  ;;  %v2150_v40 = vld [vmem:[#allocation3 + $0x15a] sm:$0xff] }
 0x132   : > { %v5083_v41 = vpop.f32.mrb[23].mxu1  ;;  %2548 = vmatmul.mubr.f32.gmra.mrb[128].mxu1 %v4852_v58 }
 0x133   : > { %v848_v46 = vpop.f32.mrb[8].mxu0  ;;  %2552 = vmatprep.mubr.f32.mxu1 %v2146_v61 }
 0x134   : > { %v5087_v60 = vadd.f32 %v5025_v15, %v848_v46  ;;  %v850_v17 = vpop.f32.mrb[9].mxu0  ;;  %3687 = vmatmul.mubr.f32.gmra.mrb[114].mxu0 %v2212_v42  ;;  %v2148_v15 = vld [vmem:[#allocation3 + $0x142] sm:$0xff]  ;;  %v2151_v42 = vld [vmem:[#allocation3 + $0x16a] sm:$0xff] }
 0x135   : > { %v5089_v27 = vpop.f32.mrb[24].mxu1  ;;  %3689 = vmatprep.mubr.f32.mxu0 %v2213_v34 }
 0x136   : > { %v5091_v30 = vpop.f32.mrb[25].mxu1  ;;  %2553 = vmatmul.mubr.f32.gmra.mrb[130].mxu1 %v4858_v12 }
 0x137   : > { %v853_v20 = vpop.f32.mrb[10].mxu0  ;;  %2557 = vmatprep.mubr.f32.mxu1 %v2147_v54 }
 0x138   : > { %v5095_v58 = vadd.f32 %v5022_v2, %v853_v20  ;;  %v855_v45 = vpop.f32.mrb[11].mxu0  ;;  %3690 = vmatmul.mubr.f32.gmra.mrb[116].mxu0 %v2214_v49 }
 0x139   : > { %v5097_v57 = vpop.f32.mrb[26].mxu1  ;;  %3692 = vmatprep.mubr.f32.mxu0 %v2215_v63 }
 0x13a   : > { %v5099_v38 = vpop.f32.mrb[27].mxu1  ;;  %2558 = vmatmul.mubr.f32.gmra.mrb[132].mxu1 %v4864_v47 }
 0x13b   : > { %v858_v51 = vpop.f32.mrb[12].mxu0  ;;  %2562 = vmatprep.mubr.f32.mxu1 %v2148_v15 }
 0x13c   : > { %v5103_v12 = vadd.f32 %v5031_v7, %v858_v51  ;;  %v860_v36 = vpop.f32.mrb[13].mxu0  ;;  %3693 = vmatmul.mubr.f32.gmra.mrb[118].mxu0 %v2216_v26  ;;  %v3973_v51 = vld [vmem:[#allocation3 + $0x182] sm:$0xff] }
 0x13d   : > { %v5105_v2 = vpop.f32.mrb[28].mxu1  ;;  %3695 = vmatprep.mubr.f32.mxu0 %v4999_v1  ;;  %v2221_v1 = vld [vmem:[#allocation3 + $0x1b4] sm:$0xff] }
 0x13e   : > { %v5108_v53 = vpop.f32.mrb[29].mxu1  ;;  %2563 = vmatmul.mubr.f32.gmra.mrb[134].mxu1 %v4870_v16 }
 0x13f   : > { %v863_v39 = vpop.f32.mrb[14].mxu0  ;;  %2567 = vmatprep.mubr.f32.mxu1 %v2149_v14 }
 0x140   : > { %v5112_v47 = vadd.f32 %v5029_v29, %v863_v39  ;;  %v865_v59 = vpop.f32.mrb[15].mxu0  ;;  %3696 = vmatmul.mubr.f32.gmra.mrb[120].mxu0 %v5005_v22  ;;  %v2222_v22 = vld [vmem:[#allocation3 + $0x1bc] sm:$0xff] }
 0x141   : > { %v5115_v7 = vpop.f32.mrb[30].mxu1  ;;  %3698 = vmatprep.mubr.f32.mxu0 %v5010_v3  ;;  %v2223_v3 = vld [vmem:[#allocation3 + $0x1cc] sm:$0xff] }
 0x142   : > { %v5118_v43 = vpop.f32.mrb[31].mxu1  ;;  %2568 = vmatmul.mubr.f32.gmra.mrb[136].mxu1 %v4876_v19  ;;  %v3974_v59 = vld [vmem:[#allocation3 + $0x18a] sm:$0xff] }
 0x143   : > { %v868_v61 = vpop.f32.mrb[16].mxu0  ;;  %2572 = vmatprep.mubr.f32.mxu1 %v2150_v40 }
 0x144   : > { %v5122_v16 = vadd.f32 %v5036_v18, %v868_v61  ;;  %v870_v29 = vpop.f32.mrb[17].mxu0  ;;  %3699 = vmatmul.mubr.f32.gmra.mrb[122].mxu0 %v5016_v32  ;;  %v2152_v18 = vld [vmem:[#allocation3 + $0x172] sm:$0xff] }
 0x145   : > { %v5125_v34 = vpop.f32.mrb[32].mxu1  ;;  %3701 = vmatprep.mubr.f32.mxu0 %v2221_v1  ;;  %v2224_v32 = vld [vmem:[#allocation3 + $0x1d4] sm:$0xff] }
 0x146   : > { %v1650_v46 = vpop.f32.mrb[33].mxu1  ;;  %2573 = vmatmul.mubr.f32.gmra.mrb[138].mxu1 %v4882_v23  ;;  %v3975_v29 = vld [vmem:[#allocation3 + $0x19a] sm:$0xff] }
 0x147   : > { %v873_v17 = vpop.f32.mrb[18].mxu0  ;;  %2577 = vmatprep.mubr.f32.mxu1 %v2151_v42 }
 0x148   : > { %v5129_v19 = vadd.f32 %v5034_v11, %v873_v17  ;;  %v875_v54 = vpop.f32.mrb[19].mxu0  ;;  %3702 = vmatmul.mubr.f32.gmra.mrb[124].mxu0 %v2222_v22 }
 0x149   : > { %v5131_v49 = vpop.f32.mrb[34].mxu1  ;;  %3704 = vmatprep.mubr.f32.mxu0 %v2223_v3  ;;  %v3976_v3 = vld [vmem:[#allocation3 + $0x1a2] sm:$0xff] }
 0x14a   : > { %v1655_v63 = vpop.f32.mrb[35].mxu1  ;;  %2578 = vmatmul.mubr.f32.gmra.mrb[140].mxu1 %v4888_v24 }
 0x14b   : > { %v878_v20 = vpop.f32.mrb[20].mxu0  ;;  %2582 = vmatprep.mubr.f32.mxu1 %v2152_v18 }
 0x14c   : > { %v5135_v23 = vadd.f32 %v5041_v13, %v878_v20  ;;  %v880_v45 = vpop.f32.mrb[21].mxu0  ;;  %3705 = vmatmul.mubr.f32.gmra.mrb[126].mxu0 %v2224_v32 }
 0x14d   : > { %v5137_v15 = vpop.f32.mrb[36].mxu1 }
 0x14e   : > { %v1660_v11 = vpop.f32.mrb[37].mxu1  ;;  %2583 = vmatmul.mubr.f32.gmra.mrb[142].mxu1 %v4894_v28 }
 0x14f   : > { %v883_v26 = vpop.f32.mrb[22].mxu0  ;;  %2587 = vmatprep.mubr.f32.mxu1 %v3973_v51 }
 0x150   : > { %v5141_v36 = vadd.f32 %v5039_v31, %v883_v26  ;;  %v885_v14 = vpop.f32.mrb[23].mxu0  ;;  %v3977_v26 = vld [vmem:[#allocation3] sm:$0xff] }
 0x151   : > { %v5143_v24 = vpop.f32.mrb[38].mxu1 }
 0x152   : > { %v1665_v39 = vpop.f32.mrb[39].mxu1  ;;  %2588 = vmatmul.mubr.f32.gmra.mrb[144].mxu1 %v4949_v62 }
 0x153   : > { %v888_v13 = vpop.f32.mrb[24].mxu0  ;;  %2592 = vmatprep.mubr.f32.mxu1 %v3974_v59  ;;  %v2159_v39 = vld [vmem:[#allocation3 + $0x1ca] sm:$0xff] }
 0x154   : > { %v5147_v40 = vadd.f32 %v5046_v5, %v888_v13  ;;  %v890_v1 = vpop.f32.mrb[25].mxu0 }
 0x155   : > { %v5149_v28 = vpop.f32.mrb[40].mxu1 }
 0x156   : > { %v1670_v61 = vpop.f32.mrb[41].mxu1  ;;  %2593 = vmatmul.mubr.f32.gmra.mrb[146].mxu1 %v4961_v25  ;;  %v2157_v25 = vld [vmem:[#allocation3 + $0x1b2] sm:$0xff] }
 0x157   : > { %v893_v31 = vpop.f32.mrb[26].mxu0  ;;  %2597 = vmatprep.mubr.f32.mxu1 %v3975_v29  ;;  %v2160_v61 = vld [vmem:[#allocation3 + $0x1d2] sm:$0xff] }
 0x158   : > { %v5153_v42 = vadd.f32 %v5044_v21, %v893_v31  ;;  %v895_v22 = vpop.f32.mrb[27].mxu0 }
 0x159   : > { %v5155_v62 = vpop.f32.mrb[42].mxu1 }
 0x15a   : > { %v1675_v46 = vpop.f32.mrb[43].mxu1  ;;  %2598 = vmatmul.mubr.f32.gmra.mrb[148].mxu1 %v4973_v44  ;;  %v2158_v44 = vld [vmem:[#allocation3 + $0x1ba] sm:$0xff] }
 0x15b   : > { %v898_v5 = vpop.f32.mrb[28].mxu0  ;;  %2602 = vmatprep.mubr.f32.mxu1 %v3976_v3 }
 0x15c   : > { %v5159_v17 = vadd.f32 %v5051_v9, %v898_v5  ;;  %v900_v54 = vpop.f32.mrb[29].mxu0 }
 0x15d   : > { %v5161_v18 = vpop.f32.mrb[44].mxu1 }
 0x15e   : > { %v1680_v32 = vpop.f32.mrb[45].mxu1  ;;  %2603 = vmatmul.mubr.f32.gmra.mrb[150].mxu1 %v4979_v55 }
 0x15f   : > { %v903_v21 = vpop.f32.mrb[30].mxu0  ;;  %2607 = vmatprep.mubr.f32.mxu1 %v2157_v25 }
 0x160   : > { %v5165_v63 = vadd.f32 %v5049_v0, %v903_v21  ;;  %v905_v20 = vpop.f32.mrb[31].mxu0 }
 0x161   : > { %v5167_v45 = vpop.f32.mrb[46].mxu1 }
 0x162   : > { %v1685_v11 = vpop.f32.mrb[47].mxu1  ;;  %2608 = vmatmul.mubr.f32.gmra.mrb[152].mxu1 %v3977_v26 }
 0x163   : > { %v908_v9 = vpop.f32.mrb[32].mxu0  ;;  %2612 = vmatprep.mubr.f32.mxu1 %v2158_v44 }
 0x164   : > { %v5170_v51 = vadd.f32 %v5059_v10, %v908_v9  ;;  %v910_v14 = vpop.f32.mrb[33].mxu0 }
 0x165   : > { %v5172_v55 = vpop.f32.mrb[48].mxu1 }
 0x166   : > { %v1690_v13 = vpop.f32.mrb[49].mxu1  ;;  %2613 = vmatmul.mubr.f32.gmra.mrb[154].mxu1 %v3977_v26 }
 0x167   : > { %v913_v0 = vpop.f32.mrb[34].mxu0  ;;  %2617 = vmatprep.mubr.f32.mxu1 %v2159_v39 }
 0x168   : > { %v5175_v59 = vadd.f32 %v5057_v48, %v913_v0  ;;  %v915_v1 = vpop.f32.mrb[35].mxu0 }
 0x169   : > { %v5177_v31 = vpop.f32.mrb[50].mxu1 }
 0x16a   : > { %v1695_v29 = vpop.f32.mrb[51].mxu1  ;;  %2618 = vmatmul.mubr.f32.gmra.mrb[156].mxu1 %v3977_v26 }
 0x16b   : > { %v918_v22 = vpop.f32.mrb[36].mxu0  ;;  %2622 = vmatprep.mubr.f32.mxu1 %v2160_v61 }
 0x16c   : > { %v5180_v10 = vadd.f32 %v5067_v6, %v918_v22  ;;  %v920_v46 = vpop.f32.mrb[37].mxu0 }
 0x16d   : > { %v5182_v5 = vpop.f32.mrb[52].mxu1 }
 0x16e   : > { %v1700_v3 = vpop.f32.mrb[53].mxu1  ;;  %2623 = vmatmul.mubr.f32.gmra.mrb[158].mxu1 %v3977_v26 }
 0x16f   : > { %v923_v54 = vpop.f32.mrb[38].mxu0 }
 0x170   : > { %v5185_v48 = vadd.f32 %v5065_v8, %v923_v54  ;;  %v925_v25 = vpop.f32.mrb[39].mxu0 }
 0x171   : > { %v5187_v32 = vpop.f32.mrb[54].mxu1 }
 0x172   : > { %v1705_v21 = vpop.f32.mrb[55].mxu1 }
 0x173   : > { %v928_v20 = vpop.f32.mrb[40].mxu0 }
 0x174   : > { %v5190_v44 = vadd.f32 %v5075_v33, %v928_v20  ;;  %v930_v11 = vpop.f32.mrb[41].mxu0 }
 0x175   : > { %v5192_v6 = vpop.f32.mrb[56].mxu1 }
 0x176   : > { %v1710_v9 = vpop.f32.mrb[57].mxu1 }
 0x177   : > { %v933_v14 = vpop.f32.mrb[42].mxu0 }
 0x178   : > { %v5195_v39 = vadd.f32 %v5073_v4, %v933_v14  ;;  %v935_v26 = vpop.f32.mrb[43].mxu0 }
 0x179   : > { %v5197_v13 = vpop.f32.mrb[58].mxu1 }
 0x17a   : > { %v1715_v8 = vpop.f32.mrb[59].mxu1 }
 0x17b   : > { %v938_v0 = vpop.f32.mrb[44].mxu0 }
 0x17c   : > { %v5200_v1 = vadd.f32 %v5083_v41, %v938_v0  ;;  %v940_v61 = vpop.f32.mrb[45].mxu0 }
 0x17d   : > { %v5202_v29 = vpop.f32.mrb[60].mxu1 }
 0x17e   : > { %v1720_v33 = vpop.f32.mrb[61].mxu1 }
 0x17f   : > { %v943_v22 = vpop.f32.mrb[46].mxu0 }
 0x180   : > { %v5205_v46 = vadd.f32 %v5081_v37, %v943_v22  ;;  %v945_v3 = vpop.f32.mrb[47].mxu0 }
 0x181   : > { %v5207_v54 = vpop.f32.mrb[62].mxu1 }
 0x182   : > { %v1725_v4 = vpop.f32.mrb[63].mxu1 }
 0x183   : > { %v948_v25 = vpop.f32.mrb[48].mxu0 }
 0x184   : > { %v5210_v21 = vadd.f32 %v5091_v30, %v948_v25  ;;  %v950_v20 = vpop.f32.mrb[49].mxu0 }
 0x185   : > { %v5212_v11 = vpop.f32.mrb[64].mxu1 }
 0x186   : > { %v1730_v41 = vpop.f32.mrb[65].mxu1 }
 0x187   : > { %v953_v9 = vpop.f32.mrb[50].mxu0 }
 0x188   : > { %v5215_v14 = vadd.f32 %v5089_v27, %v953_v9  ;;  %v955_v26 = vpop.f32.mrb[51].mxu0 }
 0x189   : > { %v5217_v8 = vpop.f32.mrb[66].mxu1 }
 0x18a   : > { %v1735_v37 = vpop.f32.mrb[67].mxu1 }
 0x18b   : > { %v958_v0 = vpop.f32.mrb[52].mxu0 }
 0x18c   : > { %v5220_v61 = vadd.f32 %v5099_v38, %v958_v0  ;;  %v960_v33 = vpop.f32.mrb[53].mxu0 }
 0x18d   : > { %v5222_v22 = vpop.f32.mrb[68].mxu1 }
 0x18e   : > { %5505 = vst [vmem:[#allocation5_spill] sm:$0xff] %v5220_v61  ;;  %v1740_v30 = vpop.f32.mrb[69].mxu1 }
 0x18f   : > { %v963_v3 = vpop.f32.mrb[54].mxu0 }
 0x190   : > { %v5225_v4 = vadd.f32 %v5097_v57, %v963_v3  ;;  %v965_v25 = vpop.f32.mrb[55].mxu0 }
 0x191   : > { %v5227_v20 = vpop.f32.mrb[70].mxu1 }
 0x192   : > { %5506 = vst [vmem:[#allocation6_spill] sm:$0xff] %v5225_v4  ;;  %v1745_v27 = vpop.f32.mrb[71].mxu1 }
 0x193   : > { %v968_v41 = vpop.f32.mrb[56].mxu0 }
 0x194   : > { %v5230_v9 = vadd.f32 %v5108_v53, %v968_v41  ;;  %v970_v26 = vpop.f32.mrb[57].mxu0 }
 0x195   : > { %v5232_v37 = vpop.f32.mrb[72].mxu1 }
 0x196   : > { %5507 = vst [vmem:[#allocation7_spill] sm:$0xff] %v5230_v9  ;;  %v1750_v38 = vpop.f32.mrb[73].mxu1 }
 0x197   : > { %v973_v0 = vpop.f32.mrb[58].mxu0 }
 0x198   : > { %v5235_v33 = vadd.f32 %v5105_v2, %v973_v0  ;;  %v975_v30 = vpop.f32.mrb[59].mxu0 }
 0x199   : > { %v5237_v61 = vpop.f32.mrb[74].mxu1 }
 0x19a   : > { %5508 = vst [vmem:[#allocation8_spill] sm:$0xff] %v5235_v33  ;;  %v1755_v57 = vpop.f32.mrb[75].mxu1 }
 0x19b   : > { %v978_v3 = vpop.f32.mrb[60].mxu0 }
 0x19c   : > { %v5240_v25 = vadd.f32 %v5118_v43, %v978_v3  ;;  %v980_v27 = vpop.f32.mrb[61].mxu0 }
 0x19d   : > { %v5242_v4 = vpop.f32.mrb[76].mxu1 }
 0x19e   : > { %5509 = vst [vmem:[#allocation9_spill] sm:$0xff] %v5240_v25  ;;  %v1760_v53 = vpop.f32.mrb[77].mxu1 }
 0x19f   : > { %v983_v41 = vpop.f32.mrb[62].mxu0 }
 0x1a0   : > { %v5245_v26 = vadd.f32 %v5115_v7, %v983_v41  ;;  %v985_v38 = vpop.f32.mrb[63].mxu0 }
 0x1a1   : > { %v5247_v9 = vpop.f32.mrb[78].mxu1 }
 0x1a2   : > { %v1765_v2 = vpop.f32.mrb[79].mxu1 }
 0x1a3   : > { %v3581_v0 = vpop.f32.mrb[64].mxu0 }
 0x1a4   : > { %v1879_v30 = vadd.f32 %v3581_v0, %v5131_v49  ;;  %v1873_v57 = vpop.f32.mrb[65].mxu0 }
 0x1a5   : > { %v5250_v33 = vpop.f32.mrb[80].mxu1  ;;  %v1874_v43 = vadd.f32 %v1873_v57, %v5125_v34 }
 0x1a6   : > { %v5254_v3 = vadd.f32 %v1879_v30, %v5063_v50  ;;  %v1770_v27 = vpop.f32.mrb[81].mxu1 }
 0x1a7   : > { %v5257_v53 = vadd.f32 %v1874_v43, %v5055_v35  ;;  %v3584_v7 = vpop.f32.mrb[66].mxu0 }
 0x1a8   : > { %v1889_v41 = vadd.f32 %v3584_v7, %v5143_v24  ;;  %v1883_v38 = vpop.f32.mrb[67].mxu0 }
 0x1a9   : > { %v5260_v2 = vpop.f32.mrb[82].mxu1  ;;  %v1884_v49 = vadd.f32 %v1883_v38, %v5137_v15 }
 0x1aa   : > { %v5264_v0 = vadd.f32 %v1889_v41, %v5079_v56  ;;  %v1775_v25 = vpop.f32.mrb[83].mxu1 }
 0x1ab   : > { %v5267_v34 = vadd.f32 %v1884_v49, %v5071_v52  ;;  %v3587_v50 = vpop.f32.mrb[68].mxu0 }
 0x1ac   : > { %v1899_v30 = vadd.f32 %v3587_v50, %v5155_v62  ;;  %v1893_v35 = vpop.f32.mrb[69].mxu0 }
 0x1ad   : > { %v5270_v57 = vpop.f32.mrb[84].mxu1  ;;  %v1894_v24 = vadd.f32 %v1893_v35, %v5149_v28 }
 0x1ae   : > { %v5274_v43 = vadd.f32 %v1899_v30, %v5095_v58  ;;  %v1780_v27 = vpop.f32.mrb[85].mxu1 }
 0x1af   : > { %v5277_v15 = vadd.f32 %v1894_v24, %v5087_v60  ;;  %v3590_v56 = vpop.f32.mrb[70].mxu0 }
 0x1b0   : > { %v1909_v25 = vadd.f32 %v3590_v56, %v5167_v45  ;;  %v1903_v52 = vpop.f32.mrb[71].mxu0 }
 0x1b1   : > { %v5280_v7 = vpop.f32.mrb[86].mxu1  ;;  %v1904_v62 = vadd.f32 %v1903_v52, %v5161_v18 }
 0x1b2   : > { %v5284_v41 = vadd.f32 %v1909_v25, %v5112_v47  ;;  %v1785_v38 = vpop.f32.mrb[87].mxu1 }
 0x1b3   : > { %v5287_v28 = vadd.f32 %v1904_v62, %v5103_v12  ;;  %v3593_v58 = vpop.f32.mrb[72].mxu0 }
 0x1b4   : > { %v1919_v49 = vadd.f32 %v3593_v58, %v5177_v31  ;;  %v1913_v60 = vpop.f32.mrb[73].mxu0 }
 0x1b5   : > { %v5290_v50 = vpop.f32.mrb[88].mxu1  ;;  %v1914_v45 = vadd.f32 %v1913_v60, %v5172_v55 }
 0x1b6   : > { %v5294_v30 = vadd.f32 %v1919_v49, %v5129_v19  ;;  %v1790_v35 = vpop.f32.mrb[89].mxu1 }
 0x1b7   : > { %v5297_v18 = vadd.f32 %v1914_v45, %v5122_v16  ;;  %v3596_v47 = vpop.f32.mrb[74].mxu0 }
 0x1b8   : > { %v1929_v24 = vadd.f32 %v3596_v47, %v5187_v32  ;;  %v1923_v12 = vpop.f32.mrb[75].mxu0 }
 0x1b9   : > { %v5300_v27 = vpop.f32.mrb[90].mxu1  ;;  %v1924_v31 = vadd.f32 %v1923_v12, %v5182_v5 }
 0x1ba   : > { %v5304_v56 = vadd.f32 %v1929_v24, %v5141_v36  ;;  %v1795_v25 = vpop.f32.mrb[91].mxu1 }
 0x1bb   : > { %v5307_v55 = vadd.f32 %v1924_v31, %v5135_v23  ;;  %v3599_v19 = vpop.f32.mrb[76].mxu0 }
 0x1bc   : > { %v1939_v52 = vadd.f32 %v3599_v19, %v5197_v13  ;;  %v1933_v16 = vpop.f32.mrb[77].mxu0 }
 0x1bd   : > { %v5310_v62 = vpop.f32.mrb[92].mxu1  ;;  %v1934_v32 = vadd.f32 %v1933_v16, %v5192_v6 }
 0x1be   : > { %v5314_v38 = vadd.f32 %v1939_v52, %v5153_v42  ;;  %v1800_v58 = vpop.f32.mrb[93].mxu1 }
 0x1bf   : > { %v5317_v5 = vadd.f32 %v1934_v32, %v5147_v40  ;;  %v3602_v36 = vpop.f32.mrb[78].mxu0 }
 0x1c0   : > { %v1949_v49 = vadd.f32 %v3602_v36, %v5207_v54  ;;  %v1943_v23 = vpop.f32.mrb[79].mxu0 }
 0x1c1   : > { %v1803_v60 = vpop.f32.mrb[94].mxu1  ;;  %v1944_v45 = vadd.f32 %v1943_v23, %v5202_v29 }
 0x1c2   : > { %v5322_v13 = vadd.f32 %v1949_v49, %v5165_v63  ;;  %v1805_v35 = vpop.f32.mrb[95].mxu1 }
 0x1c3   : > { %v5325_v6 = vadd.f32 %v1944_v45, %v5159_v17  ;;  %v3605_v42 = vpop.f32.mrb[80].mxu0 }
 0x1c4   : > { %v1959_v47 = vadd.f32 %v3605_v42, %v5217_v8  ;;  %v1953_v24 = vpop.f32.mrb[81].mxu0 }
 0x1c5   : > { %v1954_v40 = vadd.f32 %v1953_v24, %v5212_v11  ;;  %v5329_v12 = vpop.f32.mrb[96].mxu1 }
 0x1c6   : > { %v5332_v54 = vadd.f32 %v1959_v47, %v5175_v59  ;;  %v2471_v31 = vpop.f32.mrb[97].mxu1 }
 0x1c7   : > { %v5335_v29 = vadd.f32 %v1954_v40, %v5170_v51  ;;  %v3608_v63 = vpop.f32.mrb[82].mxu0 }
 0x1c8   : > { %v1969_v25 = vadd.f32 %v3608_v63, %v5227_v20  ;;  %v1963_v17 = vpop.f32.mrb[83].mxu0 }
 0x1c9   : > { %v1964_v19 = vadd.f32 %v1963_v17, %v5222_v22  ;;  %v2474_v52 = vpop.f32.mrb[98].mxu1 }
 0x1ca   : > { %v5340_v8 = vadd.f32 %v1969_v25, %v5185_v48  ;;  %v2476_v11 = vpop.f32.mrb[99].mxu1 }
 0x1cb   : > { %v5343_v16 = vadd.f32 %v1964_v19, %v5180_v10  ;;  %v3611_v59 = vpop.f32.mrb[84].mxu0  ;;  %v5510_v19 = vld [vmem:[#allocation6_spill] sm:$0xff] }
 0x1cc   : > { %v1979_v32 = vadd.f32 %v3611_v59, %v5237_v61  ;;  %v1973_v58 = vpop.f32.mrb[85].mxu0 }
 0x1cd   : > { %v1974_v51 = vadd.f32 %v1973_v58, %v5232_v37  ;;  %v2479_v36 = vpop.f32.mrb[100].mxu1 }
 0x1ce   : > { %v5348_v20 = vadd.f32 %v1979_v32, %v5195_v39  ;;  %v2481_v49 = vpop.f32.mrb[101].mxu1 }
 0x1cf   : > { %v5351_v22 = vadd.f32 %v1974_v51, %v5190_v44  ;;  %v3614_v48 = vpop.f32.mrb[86].mxu0 }
 0x1d0   : > { %v1989_v23 = vadd.f32 %v3614_v48, %v5247_v9  ;;  %v1983_v45 = vpop.f32.mrb[87].mxu0  ;;  %v5513_v48 = vld [vmem:[#allocation7_spill] sm:$0xff] }
 0x1d1   : > { %v1984_v10 = vadd.f32 %v1983_v45, %v5242_v4  ;;  %v2484_v35 = vpop.f32.mrb[102].mxu1 }
 0x1d2   : > { %v5356_v61 = vadd.f32 %v1989_v23, %v5205_v46  ;;  %v2486_v42 = vpop.f32.mrb[103].mxu1 }
 0x1d3   : > { %v5359_v37 = vadd.f32 %v1984_v10, %v5200_v1  ;;  %v3617_v39 = vpop.f32.mrb[88].mxu0 }
 0x1d4   : > { %v1999_v47 = vadd.f32 %v3617_v39, %v5260_v2  ;;  %v1993_v24 = vpop.f32.mrb[89].mxu0 }
 0x1d5   : > { %v1994_v44 = vadd.f32 %v1993_v24, %v5250_v33  ;;  %v2489_v40 = vpop.f32.mrb[104].mxu1  ;;  %v5511_v33 = vld [vmem:[#allocation5_spill] sm:$0xff] }
 0x1d6   : > { %v5364_v9 = vadd.f32 %v1999_v47, %v5215_v14  ;;  %v2491_v31 = vpop.f32.mrb[105].mxu1 }
 0x1d7   : > { %v5367_v4 = vadd.f32 %v1994_v44, %v5210_v21  ;;  %v3620_v46 = vpop.f32.mrb[90].mxu0 }
 0x1d8   : > { %v2009_v63 = vadd.f32 %v3620_v46, %v5280_v7  ;;  %v2003_v25 = vpop.f32.mrb[91].mxu0  ;;  %v5512_v7 = vld [vmem:[#allocation8_spill] sm:$0xff] }
 0x1d9   : > { %v2004_v1 = vadd.f32 %v2003_v25, %v5270_v57  ;;  %v2494_v17 = vpop.f32.mrb[106].mxu1 }
 0x1da   : > { %v5372_v2 = vadd.f32 %v2009_v63, %v5510_v19  ;;  %v2496_v11 = vpop.f32.mrb[107].mxu1 }
 0x1db   : > { %v5375_v59 = vadd.f32 %v2004_v1, %v5511_v33  ;;  %v3623_v14 = vpop.f32.mrb[92].mxu0 }
 0x1dc   : > { %v2019_v32 = vadd.f32 %v3623_v14, %v5300_v27  ;;  %v2013_v58 = vpop.f32.mrb[93].mxu0 }
 0x1dd   : > { %v2014_v21 = vadd.f32 %v2013_v58, %v5290_v50  ;;  %v2499_v51 = vpop.f32.mrb[108].mxu1  ;;  %v5514_v50 = vld [vmem:[#allocation9_spill] sm:$0xff] }
 0x1de   : > { %v5380_v49 = vadd.f32 %v2019_v32, %v5512_v7  ;;  %v2501_v57 = vpop.f32.mrb[109].mxu1 }
 0x1df   : > { %v5383_v23 = vadd.f32 %v2014_v21, %v5513_v48  ;;  %v3626_v45 = vpop.f32.mrb[94].mxu0 }
 0x1e0   : > { %v2029_v10 = vadd.f32 %v3626_v45, %v1803_v60  ;;  %v2023_v42 = vpop.f32.mrb[95].mxu0 }
 0x1e1   : > { %v2024_v39 = vadd.f32 %v2023_v42, %v5310_v62  ;;  %v2504_v47 = vpop.f32.mrb[110].mxu1 }
 0x1e2   : > { %v5387_v27 = vadd.f32 %v2029_v10, %v5245_v26  ;;  %v2506_v24 = vpop.f32.mrb[111].mxu1 }
 0x1e3   : > { %v5390_v44 = vadd.f32 %v2024_v39, %v5514_v50  ;;  %v3661_v31 = vpop.f32.mrb[96].mxu0 }
 0x1e4   : > { %v2700_v46 = vadd.f32 %v3661_v31, %v2474_v52  ;;  %v2694_v63 = vpop.f32.mrb[97].mxu0 }
 0x1e5   : > { %v2509_v62 = vpop.f32.mrb[112].mxu1  ;;  %v2695_v60 = vadd.f32 %v2694_v63, %v5329_v12 }
 0x1e6   : > { %v2854_v26 = vadd.f32 %v2700_v46, %v5254_v3  ;;  %v2511_v25 = vpop.f32.mrb[113].mxu1 }
 0x1e7   : > { %v2853_v1 = vadd.f32 %v2695_v60, %v5257_v53  ;;  %v3664_v19 = vpop.f32.mrb[98].mxu0 }
 0x1e8   : > { %2921 = vst [vmem:[%s5397_s29 + $0x8] sm:$0xff] %v2854_v26  ;;  %v2990_v52 = vmul.f32 %v2854_v26, %v2854_v26  ;;  %v2710_v11 = vadd.f32 %v3664_v19, %v2484_v35  ;;  %v2704_v33 = vpop.f32.mrb[99].mxu0 }
 0x1e9   : > { %2920 = vst [vmem:[%s5397_s29] sm:$0xff] %v2853_v1  ;;  %v2952_v14 = vadd.f32 %v2854_v26, %v2853_v1  ;;  %v2989_v32 = vmul.f32 %v2853_v1, %v2853_v1  ;;  %v2514_v58 = vpop.f32.mrb[114].mxu1  ;;  %v2705_v21 = vadd.f32 %v2704_v33, %v2479_v36 }
 0x1ea   : > { %v2856_v7 = vadd.f32 %v2710_v11, %v5264_v0  ;;  %v2516_v12 = vpop.f32.mrb[115].mxu1 }
 0x1eb   : > { %v3021_v57 = vadd.f32 %v2990_v52, %v2989_v32  ;;  %v2855_v3 = vadd.f32 %v2705_v21, %v5267_v34  ;;  %v3667_v48 = vpop.f32.mrb[100].mxu0 }
 0x1ec   : > { %2923 = vst [vmem:[%s5397_s29 + $0x18] sm:$0xff] %v2856_v7  ;;  %v2720_v53 = vadd.f32 %v3667_v48, %v2494_v17  ;;  %v2714_v45 = vpop.f32.mrb[101].mxu0  ;;  %v2992_v50 = vmul.f32 %v2856_v7, %v2856_v7 }
 0x1ed   : > { %2922 = vst [vmem:[%s5397_s29 + $0x10] sm:$0xff] %v2855_v3  ;;  %v2953_v35 = vadd.f32 %v2952_v14, %v2855_v3  ;;  %v2991_v10 = vmul.f32 %v2855_v3, %v2855_v3  ;;  %v2519_v42 = vpop.f32.mrb[116].mxu1  ;;  %v2715_v39 = vadd.f32 %v2714_v45, %v2489_v40 }
 0x1ee   : > { %v2858_v24 = vadd.f32 %v2720_v53, %v5274_v43  ;;  %v2521_v36 = vpop.f32.mrb[117].mxu1 }
 0x1ef   : > { %v3022_v0 = vadd.f32 %v3021_v57, %v2991_v10  ;;  %v2857_v31 = vadd.f32 %v2715_v39, %v5277_v15  ;;  %v2954_v46 = vadd.f32 %v2953_v35, %v2856_v7  ;;  %v3670_v34 = vpop.f32.mrb[102].mxu0 }
 0x1f0   : > { %2925 = vst [vmem:[%s5397_s29 + $0x28] sm:$0xff] %v2858_v24  ;;  %v2730_v63 = vadd.f32 %v3670_v34, %v2504_v47  ;;  %v2724_v17 = vpop.f32.mrb[103].mxu0  ;;  %v2994_v52 = vmul.f32 %v2858_v24, %v2858_v24 }
 0x1f1   : > { %2924 = vst [vmem:[%s5397_s29 + $0x20] sm:$0xff] %v2857_v31  ;;  %v2955_v60 = vadd.f32 %v2954_v46, %v2857_v31  ;;  %v2993_v26 = vmul.f32 %v2857_v31, %v2857_v31  ;;  %v3023_v25 = vadd.f32 %v3022_v0, %v2992_v50  ;;  %v2524_v1 = vpop.f32.mrb[118].mxu1  ;;  %v2725_v40 = vadd.f32 %v2724_v17, %v2499_v51 }
 0x1f2   : > { %v2860_v43 = vadd.f32 %v2730_v63, %v5284_v41  ;;  %v2526_v19 = vpop.f32.mrb[119].mxu1 }
 0x1f3   : > { %v3024_v11 = vadd.f32 %v3023_v25, %v2993_v26  ;;  %v2859_v15 = vadd.f32 %v2725_v40, %v5287_v28  ;;  %v2956_v33 = vadd.f32 %v2955_v60, %v2858_v24  ;;  %v3673_v14 = vpop.f32.mrb[104].mxu0 }
 0x1f4   : > { %2927 = vst [vmem:[%s5397_s29 + $0x38] sm:$0xff] %v2860_v43  ;;  %v2740_v47 = vadd.f32 %v3673_v14, %v2514_v58  ;;  %v2734_v32 = vpop.f32.mrb[105].mxu0  ;;  %v2996_v48 = vmul.f32 %v2860_v43, %v2860_v43 }
 0x1f5   : > { %2926 = vst [vmem:[%s5397_s29 + $0x30] sm:$0xff] %v2859_v15  ;;  %v2957_v21 = vadd.f32 %v2956_v33, %v2859_v15  ;;  %v2995_v7 = vmul.f32 %v2859_v15, %v2859_v15  ;;  %v3025_v12 = vadd.f32 %v3024_v11, %v2994_v52  ;;  %v2529_v57 = vpop.f32.mrb[120].mxu1  ;;  %v2735_v51 = vadd.f32 %v2734_v32, %v2509_v62 }
 0x1f6   : > { %v2862_v41 = vadd.f32 %v2740_v47, %v5294_v30  ;;  %v2531_v3 = vpop.f32.mrb[121].mxu1 }
 0x1f7   : > { %v3026_v53 = vadd.f32 %v3025_v12, %v2995_v7  ;;  %v2861_v28 = vadd.f32 %v2735_v51, %v5297_v18  ;;  %v2958_v45 = vadd.f32 %v2957_v21, %v2860_v43  ;;  %v3676_v35 = vpop.f32.mrb[106].mxu0 }
 0x1f8   : > { %2929 = vst [vmem:[%s5397_s29 + $0x48] sm:$0xff] %v2862_v41  ;;  %v2750_v58 = vadd.f32 %v3676_v35, %v2524_v1  ;;  %v2744_v10 = vpop.f32.mrb[107].mxu0  ;;  %v2998_v31 = vmul.f32 %v2862_v41, %v2862_v41 }
 0x1f9   : > { %2928 = vst [vmem:[%s5397_s29 + $0x40] sm:$0xff] %v2861_v28  ;;  %v2959_v39 = vadd.f32 %v2958_v45, %v2861_v28  ;;  %v2997_v24 = vmul.f32 %v2861_v28, %v2861_v28  ;;  %v3027_v36 = vadd.f32 %v3026_v53, %v2996_v48  ;;  %v2534_v50 = vpop.f32.mrb[122].mxu1  ;;  %v2745_v62 = vadd.f32 %v2744_v10, %v2519_v42 }
 0x1fa   : > { %v2864_v30 = vadd.f32 %v2750_v58, %v5304_v56  ;;  %v2536_v0 = vpop.f32.mrb[123].mxu1 }
 0x1fb   : > { %v3028_v46 = vadd.f32 %v3027_v36, %v2997_v24  ;;  %v2863_v18 = vadd.f32 %v2745_v62, %v5307_v55  ;;  %v2960_v34 = vadd.f32 %v2959_v39, %v2862_v41  ;;  %v3679_v63 = vpop.f32.mrb[108].mxu0 }
 0x1fc   : > { %2931 = vst [vmem:[%s5397_s29 + $0x58] sm:$0xff] %v2864_v30  ;;  %v2760_v17 = vadd.f32 %v3679_v63, %v2534_v50  ;;  %v2754_v60 = vpop.f32.mrb[109].mxu0  ;;  %v3000_v19 = vmul.f32 %v2864_v30, %v2864_v30 }
 0x1fd   : > { %2930 = vst [vmem:[%s5397_s29 + $0x50] sm:$0xff] %v2863_v18  ;;  %v2961_v26 = vadd.f32 %v2960_v34, %v2863_v18  ;;  %v2999_v25 = vmul.f32 %v2863_v18, %v2863_v18  ;;  %v3029_v1 = vadd.f32 %v3028_v46, %v2998_v31  ;;  %v2539_v40 = vpop.f32.mrb[124].mxu1  ;;  %v2755_v42 = vadd.f32 %v2754_v60, %v2529_v57 }
 0x1fe   : > { %v2866_v56 = vadd.f32 %v2760_v17, %v5314_v38  ;;  %v2541_v43 = vpop.f32.mrb[125].mxu1 }
 0x1ff   : > { %v3030_v52 = vadd.f32 %v3029_v1, %v2999_v25  ;;  %v2865_v55 = vadd.f32 %v2755_v42, %v5317_v5  ;;  %v2962_v11 = vadd.f32 %v2961_v26, %v2864_v30  ;;  %v3682_v15 = vpop.f32.mrb[110].mxu0 }
 0x200   : > { %2933 = vst [vmem:[%s5397_s29 + $0x68] sm:$0xff] %v2866_v56  ;;  %v2764_v33 = vpop.f32.mrb[111].mxu0  ;;  %v3002_v38 = vmul.f32 %v2866_v56, %v2866_v56 }
 0x201   : > { %2932 = vst [vmem:[%s5397_s29 + $0x60] sm:$0xff] %v2865_v55  ;;  %v2963_v14 = vadd.f32 %v2962_v11, %v2865_v55  ;;  %v3001_v47 = vmul.f32 %v2865_v55, %v2865_v55  ;;  %v3031_v32 = vadd.f32 %v3030_v52, %v3000_v19  ;;  %v2544_v21 = vpop.f32.mrb[126].mxu1  ;;  %v2765_v7 = vadd.f32 %v2764_v33, %v2539_v40 }
 0x202   : > { %v2770_v12 = vadd.f32 %v3682_v15, %v2544_v21  ;;  %v2546_v57 = vpop.f32.mrb[127].mxu1 }
 0x203   : > { %v3032_v51 = vadd.f32 %v3031_v32, %v3001_v47  ;;  %v2867_v41 = vadd.f32 %v2765_v7, %v5325_v6  ;;  %v2964_v3 = vadd.f32 %v2963_v14, %v2866_v56  ;;  %v3685_v5 = vpop.f32.mrb[112].mxu0 }
 0x204   : > { %v2868_v48 = vadd.f32 %v2770_v12, %v5322_v13  ;;  %v2774_v53 = vpop.f32.mrb[113].mxu0 }
 0x205   : > { %2934 = vst [vmem:[%s5397_s29 + $0x70] sm:$0xff] %v2867_v41  ;;  %v2965_v28 = vadd.f32 %v2964_v3, %v2867_v41  ;;  %v3003_v45 = vmul.f32 %v2867_v41, %v2867_v41  ;;  %v3033_v35 = vadd.f32 %v3032_v51, %v3002_v38  ;;  %v2549_v58 = vpop.f32.mrb[128].mxu1 }
 0x206   : > { %2935 = vst [vmem:[%s5397_s29 + $0x78] sm:$0xff] %v2868_v48  ;;  %v2775_v10 = vadd.f32 %v2774_v53, %v2549_v58  ;;  %v2551_v39 = vpop.f32.mrb[129].mxu1  ;;  %v3004_v24 = vmul.f32 %v2868_v48, %v2868_v48 }
 0x207   : > { %v3034_v36 = vadd.f32 %v3033_v35, %v3003_v45  ;;  %v2966_v50 = vadd.f32 %v2965_v28, %v2868_v48  ;;  %v3688_v62 = vpop.f32.mrb[114].mxu0 }
 0x208   : > { %v2869_v6 = vadd.f32 %v2775_v10, %v5335_v29  ;;  %v2784_v30 = vpop.f32.mrb[115].mxu0 }
 0x209   : > { %v3035_v0 = vadd.f32 %v3034_v36, %v3004_v24  ;;  %v2554_v13 = vpop.f32.mrb[130].mxu1 }
 0x20a   : > { %2936 = vst [vmem:[%s5397_s29 + $0x80] sm:$0xff] %v2869_v6  ;;  %v2967_v31 = vadd.f32 %v2966_v50, %v2869_v6  ;;  %v3005_v46 = vmul.f32 %v2869_v6, %v2869_v6  ;;  %v2780_v18 = vadd.f32 %v3685_v5, %v2554_v13  ;;  %v2556_v34 = vpop.f32.mrb[131].mxu1 }
 0x20b   : > { %v3691_v63 = vpop.f32.mrb[116].mxu0 }
 0x20c   : > { %v3036_v17 = vadd.f32 %v3035_v0, %v3005_v46  ;;  %v2870_v60 = vadd.f32 %v2780_v18, %v5332_v54  ;;  %v2794_v26 = vpop.f32.mrb[117].mxu0 }
 0x20d   : > { %v2559_v25 = vpop.f32.mrb[132].mxu1 }
 0x20e   : > { %2937 = vst [vmem:[%s5397_s29 + $0x88] sm:$0xff] %v2870_v60  ;;  %v2968_v1 = vadd.f32 %v2967_v31, %v2870_v60  ;;  %v3006_v40 = vmul.f32 %v2870_v60, %v2870_v60  ;;  %v2785_v42 = vadd.f32 %v2784_v30, %v2559_v25  ;;  %v2561_v29 = vpop.f32.mrb[133].mxu1 }
 0x20f   : > { %v3694_v56 = vpop.f32.mrb[118].mxu0 }
 0x210   : > { %v3037_v43 = vadd.f32 %v3036_v17, %v3006_v40  ;;  %v2871_v19 = vadd.f32 %v2785_v42, %v5343_v16  ;;  %v2804_v52 = vpop.f32.mrb[119].mxu0 }
 0x211   : > { %v2564_v55 = vpop.f32.mrb[134].mxu1 }
 0x212   : > { %2938 = vst [vmem:[%s5397_s29 + $0x90] sm:$0xff] %v2871_v19  ;;  %v2969_v11 = vadd.f32 %v2968_v1, %v2871_v19  ;;  %v3007_v15 = vmul.f32 %v2871_v19, %v2871_v19  ;;  %v2790_v33 = vadd.f32 %v3688_v62, %v2564_v55  ;;  %v2566_v14 = vpop.f32.mrb[135].mxu1 }
 0x213   : > { %v3697_v54 = vpop.f32.mrb[120].mxu0 }
 0x214   : > { %v3038_v47 = vadd.f32 %v3037_v43, %v3007_v15  ;;  %v2872_v32 = vadd.f32 %v2790_v33, %v5340_v8  ;;  %v2814_v21 = vpop.f32.mrb[121].mxu0 }
 0x215   : > { %v2569_v7 = vpop.f32.mrb[136].mxu1 }
 0x216   : > { %2939 = vst [vmem:[%s5397_s29 + $0x98] sm:$0xff] %v2872_v32  ;;  %v2970_v12 = vadd.f32 %v2969_v11, %v2872_v32  ;;  %v3008_v57 = vmul.f32 %v2872_v32, %v2872_v32  ;;  %v2795_v38 = vadd.f32 %v2794_v26, %v2569_v7  ;;  %v2571_v51 = vpop.f32.mrb[137].mxu1 }
 0x217   : > { %v3700_v16 = vpop.f32.mrb[122].mxu0 }
 0x218   : > { %v3039_v41 = vadd.f32 %v3038_v47, %v3008_v57  ;;  %v2873_v3 = vadd.f32 %v2795_v38, %v5351_v22  ;;  %v2824_v5 = vpop.f32.mrb[123].mxu0 }
 0x219   : > { %v2574_v48 = vpop.f32.mrb[138].mxu1 }
 0x21a   : > { %2940 = vst [vmem:[%s5397_s29 + $0xa0] sm:$0xff] %v2873_v3  ;;  %v2971_v53 = vadd.f32 %v2970_v12, %v2873_v3  ;;  %v3009_v28 = vmul.f32 %v2873_v3, %v2873_v3  ;;  %v2800_v45 = vadd.f32 %v3691_v63, %v2574_v48  ;;  %v2576_v35 = vpop.f32.mrb[139].mxu1 }
 0x21b   : > { %v5442_v8 = vpop.f32.mrb[124].mxu0 }
 0x21c   : > { %v3040_v58 = vadd.f32 %v3039_v41, %v3009_v28  ;;  %v2874_v10 = vadd.f32 %v2800_v45, %v5348_v20  ;;  %v2834_v39 = vpop.f32.mrb[125].mxu0 }
 0x21d   : > { %v2579_v24 = vpop.f32.mrb[140].mxu1 }
 0x21e   : > { %2941 = vst [vmem:[%s5397_s29 + $0xa8] sm:$0xff] %v2874_v10  ;;  %v2972_v36 = vadd.f32 %v2971_v53, %v2874_v10  ;;  %v3010_v50 = vmul.f32 %v2874_v10, %v2874_v10  ;;  %v2805_v22 = vadd.f32 %v2804_v52, %v2579_v24  ;;  %v2581_v62 = vpop.f32.mrb[141].mxu1 }
 0x21f   : > { %v5446_v6 = vpop.f32.mrb[126].mxu0 }
 0x220   : > { %v3041_v30 = vadd.f32 %v3040_v58, %v3010_v50  ;;  %v2875_v0 = vadd.f32 %v2805_v22, %v5359_v37  ;;  %v2844_v13 = vpop.f32.mrb[127].mxu0 }
 0x221   : > { %v2584_v31 = vpop.f32.mrb[142].mxu1 }
 0x222   : > { %2942 = vst [vmem:[%s5397_s29 + $0xb0] sm:$0xff] %v2875_v0  ;;  %v2973_v46 = vadd.f32 %v2972_v36, %v2875_v0  ;;  %v3011_v18 = vmul.f32 %v2875_v0, %v2875_v0  ;;  %v2810_v20 = vadd.f32 %v3694_v56, %v2584_v31  ;;  %v2586_v34 = vpop.f32.mrb[143].mxu1 }
 0x224   : > { %v3042_v63 = vadd.f32 %v3041_v30, %v3011_v18  ;;  %v2876_v17 = vadd.f32 %v2810_v20, %v5356_v61 }
 0x225   : > { %v2589_v60 = vpop.f32.mrb[144].mxu1 }
 0x226   : > { %2943 = vst [vmem:[%s5397_s29 + $0xb8] sm:$0xff] %v2876_v17  ;;  %v2974_v26 = vadd.f32 %v2973_v46, %v2876_v17  ;;  %v3012_v25 = vmul.f32 %v2876_v17, %v2876_v17  ;;  %v2815_v1 = vadd.f32 %v2814_v21, %v2589_v60  ;;  %v2591_v40 = vpop.f32.mrb[145].mxu1 }
 0x228   : > { %v3043_v42 = vadd.f32 %v3042_v63, %v3012_v25  ;;  %v2877_v37 = vadd.f32 %v2815_v1, %v5367_v4 }
 0x229   : > { %v2594_v29 = vpop.f32.mrb[146].mxu1 }
 0x22a   : > { %2944 = vst [vmem:[%s5397_s29 + $0xc0] sm:$0xff] %v2877_v37  ;;  %v2975_v43 = vadd.f32 %v2974_v26, %v2877_v37  ;;  %v3013_v19 = vmul.f32 %v2877_v37, %v2877_v37  ;;  %v2820_v56 = vadd.f32 %v3697_v54, %v2594_v29  ;;  %v2596_v52 = vpop.f32.mrb[147].mxu1 }
 0x22c   : > { %v3044_v55 = vadd.f32 %v3043_v42, %v3013_v19  ;;  %v2878_v61 = vadd.f32 %v2820_v56, %v5364_v9 }
 0x22d   : > { %v2599_v11 = vpop.f32.mrb[148].mxu1 }
 0x22e   : > { %2945 = vst [vmem:[%s5397_s29 + $0xc8] sm:$0xff] %v2878_v61  ;;  %v2976_v15 = vadd.f32 %v2975_v43, %v2878_v61  ;;  %v3014_v33 = vmul.f32 %v2878_v61, %v2878_v61  ;;  %v2825_v14 = vadd.f32 %v2824_v5, %v2599_v11  ;;  %v2601_v47 = vpop.f32.mrb[149].mxu1 }
 0x230   : > { %v3045_v32 = vadd.f32 %v3044_v55, %v3014_v33  ;;  %v2879_v4 = vadd.f32 %v2825_v14, %v5375_v59 }
 0x231   : > { %v2604_v21 = vpop.f32.mrb[150].mxu1 }
 0x232   : > { %2946 = vst [vmem:[%s5397_s29 + $0xd0] sm:$0xff] %v2879_v4  ;;  %v2977_v7 = vadd.f32 %v2976_v15, %v2879_v4  ;;  %v3015_v12 = vmul.f32 %v2879_v4, %v2879_v4  ;;  %v2830_v54 = vadd.f32 %v3700_v16, %v2604_v21  ;;  %v2606_v57 = vpop.f32.mrb[151].mxu1 }
 0x234   : > { %v3046_v38 = vadd.f32 %v3045_v32, %v3015_v12  ;;  %v2880_v9 = vadd.f32 %v2830_v54, %v5372_v2 }
 0x235   : > { %v2609_v51 = vpop.f32.mrb[152].mxu1 }
 0x236   : > { %2947 = vst [vmem:[%s5397_s29 + $0xd8] sm:$0xff] %v2880_v9  ;;  %v2978_v41 = vadd.f32 %v2977_v7, %v2880_v9  ;;  %v3016_v3 = vmul.f32 %v2880_v9, %v2880_v9  ;;  %v2835_v5 = vadd.f32 %v2834_v39, %v2609_v51  ;;  %v2611_v48 = vpop.f32.mrb[153].mxu1 }
 0x238   : > { %v3047_v53 = vadd.f32 %v3046_v38, %v3016_v3  ;;  %v2881_v59 = vadd.f32 %v2835_v5, %v5383_v23 }
 0x239   : > { %v2614_v28 = vpop.f32.mrb[154].mxu1 }
 0x23a   : > { %2948 = vst [vmem:[%s5397_s29 + $0xe0] sm:$0xff] %v2881_v59  ;;  %v2979_v45 = vadd.f32 %v2978_v41, %v2881_v59  ;;  %v3017_v35 = vmul.f32 %v2881_v59, %v2881_v59  ;;  %v2840_v16 = vadd.f32 %v5442_v8, %v2614_v28  ;;  %v2616_v58 = vpop.f32.mrb[155].mxu1 }
 0x23c   : > { %v3048_v10 = vadd.f32 %v3047_v53, %v3017_v35  ;;  %v2882_v2 = vadd.f32 %v2840_v16, %v5380_v49 }
 0x23d   : > { %v2619_v24 = vpop.f32.mrb[156].mxu1 }
 0x23e   : > { %2949 = vst [vmem:[%s5397_s29 + $0xe8] sm:$0xff] %v2882_v2  ;;  %v2980_v36 = vadd.f32 %v2979_v45, %v2882_v2  ;;  %v3018_v39 = vmul.f32 %v2882_v2, %v2882_v2  ;;  %v2845_v50 = vadd.f32 %v2844_v13, %v2619_v24  ;;  %v2621_v22 = vpop.f32.mrb[157].mxu1 }
 0x240   : > { %v3049_v62 = vadd.f32 %v3048_v10, %v3018_v39  ;;  %v2883_v23 = vadd.f32 %v2845_v50, %v5390_v44 }
 0x241   : > { %v2624_v30 = vpop.f32.mrb[158].mxu1 }
 0x242   : > { %2950 = vst [vmem:[%s5397_s29 + $0xf0] sm:$0xff] %v2883_v23  ;;  %v2981_v0 = vadd.f32 %v2980_v36, %v2883_v23  ;;  %v3019_v31 = vmul.f32 %v2883_v23, %v2883_v23  ;;  %v2850_v8 = vadd.f32 %v5446_v6, %v2624_v30  ;;  %v2626_v46 = vpop.f32.mrb[159].mxu1 }
 0x244   : > { %v3050_v18 = vadd.f32 %v3049_v62, %v3019_v31  ;;  %v2884_v49 = vadd.f32 %v2850_v8, %v5387_v27 }
 0x246   : > { %2951 = vst [vmem:[%s5397_s29 + $0xf8] sm:$0xff] %v2884_v49  ;;  %v2982_v20 = vadd.f32 %v2981_v0, %v2884_v49  ;;  %v3020_v34 = vmul.f32 %v2884_v49, %v2884_v49 }
 0x248   : > { %v2983_v63 = vrot.slane %v2982_v20, 4  ;;  %v3051_v13 = vadd.f32 %v3050_v18, %v3020_v34 }
 0x24a   : > { %v2984_v17 = vadd.f32 %v2983_v63, %v2982_v20  ;;  %v3052_v60 = vrot.slane %v3051_v13, 4 }
 0x24c   : > { %v2985_v26 = vrot.slane %v2984_v17, 2  ;;  %v3053_v44 = vadd.f32 %v3052_v60, %v3051_v13 }
 0x24e   : > { %v2986_v25 = vadd.f32 %v2985_v26, %v2984_v17  ;;  %v3054_v1 = vrot.slane %v3053_v44, 2 }
 0x250   : > { %v2987_v40 = vrot.slane %v2986_v25, 1  ;;  %v3055_v42 = vadd.f32 %v3054_v1, %v3053_v44 }
 0x252   : > { %v3056_v6 = vrot.slane %v3055_v42, 1  ;;  %v2988_v27 = vadd.f32 %v2987_v40, %v2986_v25 }
 0x254   : > { %v3057_v37 = vadd.f32 %v3056_v6, %v3055_v42 }
 0x256   : > { %v3059_v29 = vsel %vm3058_vm0, %v2988_v27, %v3057_v37 }
 0x257   : > { %3060 = vst [vmem:[%s244_s6] sm:$0x3] %v3059_v29 }
 0x258 PF: > { %s14_s14 = sadd.s32 1, %s4000_s14   ;;  %s5515_s12 = smov %s3996_s13 }
 0x259   : > { %p11_p5 = scmp.ge.s32.totalorder %s14_s14, 4   ;;  %s5516_s13 = smov %s5518_s15 }
 0x25b   :  { %13 = sbr.rel (!%p11_p5) target bundleno = 2 (0x2), region = 88 }

</bundles_post_ra>
